<compile_context>
chip_gen: v7x
topology: tpu7x:2x2x1
jax: 0.10.0
libtpu: 0.0.40
codegen_flags: <defaults>
</compile_context>

<pallas_src>
import math

import jax
import jax.numpy as jnp
from jax import lax
from jax.experimental import pallas as pl
from jax.experimental.pallas import tpu as pltpu

# ----------------------------- model config ---------------------------------
BATCH = 2
SEQ = 8
HIDDEN = 32           # "bert_dim"
N_HEADS = 4
HEAD_DIM = HIDDEN // N_HEADS
FFN = 64
N_LAYERS = 2
VOCAB = 100
TYPE_VOCAB = 2
RE_LABEL_SIZE = 2
LN_EPS = 1e-12
LOGITS_PAD = 128      # lane-dense logits width inside the kernel


def _layernorm(x, g, b):
    mu = jnp.mean(x, axis=-1, keepdims=True)
    var = jnp.mean((x - mu) ** 2, axis=-1, keepdims=True)
    return (x - mu) * lax.rsqrt(var + LN_EPS) * g + b


# --------------------------- fused Pallas kernel ------------------------------
def fused_re_model_kernel(emb_ref, mask_ref, eg_ref, eb_ref,
                          wqkv_ref, bqkv_ref, wo_ref, bo_ref,
                          ln1g_ref, ln1b_ref, w1_ref, b1_ref,
                          w2_ref, b2_ref, ln2g_ref, ln2b_ref,
                          wp_ref, bp_ref, wc_ref, bc_ref,
                          o_ref):
    # Embedding LayerNorm over the flattened batch (B*S, H).
    x = _layernorm(emb_ref[...].astype(jnp.float32), eg_ref[...], eb_ref[...])
    mask_add = mask_ref[...]                         # (B, S) additive mask (precomputed)

    for l in range(N_LAYERS):                        # static layer loop (weights VMEM-resident)
        # Fused QKV projection: one (B*S, H) @ (H, 3H) MXU op.
        qkv = jnp.dot(x, wqkv_ref[l], preferred_element_type=jnp.float32) + bqkv_ref[l]
        q = qkv[:, :HIDDEN]                          # Wq/bq pre-scaled by 1/sqrt(head_dim)
        k = qkv[:, HIDDEN:2 * HIDDEN]
        v = qkv[:, 2 * HIDDEN:]

        # Per (batch, head) attention — tiny static unrolled loop (B*N_HEADS = 8).
        ctx_rows = []
        for b in range(BATCH):
            mrow = mask_add[b:b + 1, :]              # (1, S)
            rs = slice(b * SEQ, (b + 1) * SEQ)
            head_ctx = []
            for h in range(N_HEADS):
                cs = slice(h * HEAD_DIM, (h + 1) * HEAD_DIM)
                qh, kh, vh = q[rs, cs], k[rs, cs], v[rs, cs]
                # Contract head dims directly (no kh.T materialization).
                scores = lax.dot_general(qh, kh, (((1,), (1,)), ((), ())),
                                         preferred_element_type=jnp.float32)
                scores = scores + mrow
                scores = scores - jnp.max(scores, axis=-1, keepdims=True)
                p = jnp.exp(scores)
                p = p * pl.reciprocal(jnp.sum(p, axis=-1, keepdims=True), approx=True)
                head_ctx.append(jnp.dot(p, vh, preferred_element_type=jnp.float32))
            ctx_rows.append(jnp.concatenate(head_ctx, axis=1))           # (S, H)
        ctx = jnp.concatenate(ctx_rows, axis=0)                          # (B*S, H)

        # Single output projection over the concatenated heads.
        attn_out = jnp.dot(ctx, wo_ref[l], preferred_element_type=jnp.float32) + bo_ref[l]
        h1 = _layernorm(x + attn_out, ln1g_ref[l], ln1b_ref[l])

        ff = jnp.dot(h1, w1_ref[l], preferred_element_type=jnp.float32) + b1_ref[l]
        # TODO(synk): HF BERT default GELU is erf-based; tanh approximation used here.
        ff = jax.nn.gelu(ff, approximate=True)
        ff = jnp.dot(ff, w2_ref[l], preferred_element_type=jnp.float32) + b2_ref[l]
        x = _layernorm(h1 + ff, ln2g_ref[l], ln2b_ref[l])

    # Pooler (tanh dense on CLS), dropout (eval identity), RE classifier.
    cls = jnp.concatenate([x[b * SEQ:b * SEQ + 1, :] for b in range(BATCH)], axis=0)  # (B, H)
    pooled = jnp.tanh(
        jnp.dot(cls, wp_ref[...], preferred_element_type=jnp.float32) + bp_ref[...])
    logits = jnp.dot(pooled, wc_ref[...], preferred_element_type=jnp.float32) + bc_ref[...]
    o_ref[...] = logits.astype(o_ref.dtype)          # (B, 128) lane-dense store


# ----------------------------- wrapper ----------------------------------------
def re_model_forward(params, enc_input_ids, enc_attention_mask=None,
                     token_type_ids=None, re_tags=None):
    B, S = enc_input_ids.shape
    if enc_attention_mask is None:
        enc_attention_mask = jnp.ones((B, S), jnp.float32)
    if token_type_ids is None:
        token_type_ids = jnp.zeros((B, S), jnp.int32)

    # Embedding table gathers (glue, plain JAX).
    pos = jnp.arange(S)
    emb = (params["word_emb"][enc_input_ids]
           + params["pos_emb"][pos][None, :, :]
           + params["type_emb"][token_type_ids])
    emb_flat = emb.reshape(B * S, HIDDEN)
    mask_add = (1.0 - enc_attention_mask.astype(jnp.float32)) * -1e9     # (B, S)

    p = params["packed"]
    full = lambda shape: pl.BlockSpec(shape, lambda i: tuple(0 for _ in shape))
    in_specs = [
        full((B * S, HIDDEN)),                                   # embeddings
        full((B, S)),                                            # additive mask
        full((1, HIDDEN)), full((1, HIDDEN)),                    # emb LN gamma/beta
        full((N_LAYERS, HIDDEN, 3 * HIDDEN)), full((N_LAYERS, 1, 3 * HIDDEN)),  # Wqkv, bqkv
        full((N_LAYERS, HIDDEN, HIDDEN)), full((N_LAYERS, 1, HIDDEN)),          # Wo, bo
        full((N_LAYERS, 1, HIDDEN)), full((N_LAYERS, 1, HIDDEN)),               # ln1
        full((N_LAYERS, HIDDEN, FFN)), full((N_LAYERS, 1, FFN)),                # W1, b1
        full((N_LAYERS, FFN, HIDDEN)), full((N_LAYERS, 1, HIDDEN)),             # W2, b2
        full((N_LAYERS, 1, HIDDEN)), full((N_LAYERS, 1, HIDDEN)),               # ln2
        full((HIDDEN, HIDDEN)), full((1, HIDDEN)),                              # pooler
        full((HIDDEN, LOGITS_PAD)), full((1, LOGITS_PAD)),                      # classifier (padded)
    ]
    # Single grid point: whole model fits in VMEM, work is launch-overhead bound.
    # (On v7x a grid=(B,) "parallel" split over TensorCores is possible but not
    #  worth the extra per-step overhead at this size.)
    logits_pad = pl.pallas_call(
        fused_re_model_kernel,
        out_shape=jax.ShapeDtypeStruct((B, LOGITS_PAD), jnp.float32),
        grid=(1,),
        in_specs=in_specs,
        out_specs=full((B, LOGITS_PAD)),
        compiler_params=pltpu.CompilerParams(dimension_semantics=("arbitrary",)),
    )(emb_flat, mask_add,
      p["emb_ln_g"], p["emb_ln_b"],
      p["wqkv"], p["bqkv"], p["wo"], p["bo"],
      p["ln1_g"], p["ln1_b"], p["w1"], p["b1"],
      p["w2"], p["b2"], p["ln2_g"], p["ln2_b"],
      p["pooler_w"], p["pooler_b"], p["cls_w_pad"], p["cls_b_pad"])

    re_logits = logits_pad[:, :RE_LABEL_SIZE]
    # TODO(synk): re_tags / loss-function branch not implemented (inference path).
    return (-1, re_logits)


# ------------------------- parameter initialization --------------------------
def init_params(key):
    ks = iter(jax.random.split(key, 64))
    nrm = lambda shape: jax.random.normal(next(ks), shape, jnp.float32) * 0.02
    params = {
        "word_emb": nrm((VOCAB, HIDDEN)),
        "pos_emb": nrm((SEQ, HIDDEN)),
        "type_emb": nrm((TYPE_VOCAB, HIDDEN)),
        "emb_ln_g": jnp.ones((1, HIDDEN), jnp.float32),
        "emb_ln_b": jnp.zeros((1, HIDDEN), jnp.float32),
        "pooler_w": nrm((HIDDEN, HIDDEN)),
        "pooler_b": jnp.zeros((1, HIDDEN), jnp.float32),
        "cls_w": nrm((HIDDEN, RE_LABEL_SIZE)),               # re_classifier
        "cls_b": jnp.zeros((1, RE_LABEL_SIZE), jnp.float32),
        "layers": [],
    }
    for _ in range(N_LAYERS):
        params["layers"].append({
            "wq": nrm((HIDDEN, HIDDEN)), "bq": jnp.zeros((1, HIDDEN), jnp.float32),
            "wk": nrm((HIDDEN, HIDDEN)), "bk": jnp.zeros((1, HIDDEN), jnp.float32),
            "wv": nrm((HIDDEN, HIDDEN)), "bv": jnp.zeros((1, HIDDEN), jnp.float32),
            "wo": nrm((HIDDEN, HIDDEN)), "bo": jnp.zeros((1, HIDDEN), jnp.float32),
            "ln1_g": jnp.ones((1, HIDDEN), jnp.float32),
            "ln1_b": jnp.zeros((1, HIDDEN), jnp.float32),
            "w1": nrm((HIDDEN, FFN)), "b1": jnp.zeros((1, FFN), jnp.float32),
            "w2": nrm((FFN, HIDDEN)), "b2": jnp.zeros((1, HIDDEN), jnp.float32),
            "ln2_g": jnp.ones((1, HIDDEN), jnp.float32),
            "ln2_b": jnp.zeros((1, HIDDEN), jnp.float32),
        })
    return params


def pack_params(params):
    """Kernel-ready packing: stack per-layer weights (leading layer axis),
    fuse Q/K/V into one (H,3H) weight, fold the 1/sqrt(head_dim) score scale
    into Wq/bq, and zero-pad the classifier to a lane-dense width."""
    scale = 1.0 / math.sqrt(HEAD_DIM)
    stk = lambda name: jnp.stack([lp[name] for lp in params["layers"]], axis=0)
    wq, bq = stk("wq") * scale, stk("bq") * scale
    cls_w_pad = jnp.zeros((HIDDEN, LOGITS_PAD), jnp.float32)
    cls_w_pad = cls_w_pad.at[:, :RE_LABEL_SIZE].set(params["cls_w"])
    cls_b_pad = jnp.zeros((1, LOGITS_PAD), jnp.float32)
    cls_b_pad = cls_b_pad.at[:, :RE_LABEL_SIZE].set(params["cls_b"])
    return {
        "emb_ln_g": params["emb_ln_g"], "emb_ln_b": params["emb_ln_b"],
        "wqkv": jnp.concatenate([wq, stk("wk"), stk("wv")], axis=-1),   # (L, H, 3H)
        "bqkv": jnp.concatenate([bq, stk("bk"), stk("bv")], axis=-1),   # (L, 1, 3H)
        "wo": stk("wo"), "bo": stk("bo"),
        "ln1_g": stk("ln1_g"), "ln1_b": stk("ln1_b"),
        "w1": stk("w1"), "b1": stk("b1"),
        "w2": stk("w2"), "b2": stk("b2"),
        "ln2_g": stk("ln2_g"), "ln2_b": stk("ln2_b"),
        "pooler_w": params["pooler_w"], "pooler_b": params["pooler_b"],
        "cls_w_pad": cls_w_pad, "cls_b_pad": cls_b_pad,
    }


# --------------------------------- main ---------------------------------------
if __name__ == "__main__":
    key = jax.random.PRNGKey(0)
    k_param, k_ids = jax.random.split(key)
    params = init_params(k_param)
    params["packed"] = pack_params(params)

    enc_input_ids = jax.random.randint(k_ids, (BATCH, SEQ), 0, VOCAB,
                                       dtype=jnp.int32)
    enc_attention_mask = jnp.ones((BATCH, SEQ), jnp.float32)
    token_type_ids = jnp.zeros((BATCH, SEQ), jnp.int32)

    flag, re_logits = re_model_forward(params, enc_input_ids,
                                       enc_attention_mask, token_type_ids)
    jax.block_until_ready(re_logits)
    assert flag == -1
    assert re_logits.shape == (BATCH, RE_LABEL_SIZE)
    assert bool(jnp.all(jnp.isfinite(re_logits)))
    print("KERNEL_OK")
</pallas_src>

<mosaic_0001>
module attributes {stable_mosaic.version = 11 : i64} {
  func.func @fused_re_model_kernel(%arg0: i32, %arg1: memref<16x32xf32, #tpu.memory_space<vmem>>, %arg2: memref<2x8xf32, #tpu.memory_space<vmem>>, %arg3: memref<1x32xf32, #tpu.memory_space<vmem>>, %arg4: memref<1x32xf32, #tpu.memory_space<vmem>>, %arg5: memref<2x32x96xf32, #tpu.memory_space<vmem>>, %arg6: memref<2x1x96xf32, #tpu.memory_space<vmem>>, %arg7: memref<2x32x32xf32, #tpu.memory_space<vmem>>, %arg8: memref<2x1x32xf32, #tpu.memory_space<vmem>>, %arg9: memref<2x1x32xf32, #tpu.memory_space<vmem>>, %arg10: memref<2x1x32xf32, #tpu.memory_space<vmem>>, %arg11: memref<2x32x64xf32, #tpu.memory_space<vmem>>, %arg12: memref<2x1x64xf32, #tpu.memory_space<vmem>>, %arg13: memref<2x64x32xf32, #tpu.memory_space<vmem>>, %arg14: memref<2x1x32xf32, #tpu.memory_space<vmem>>, %arg15: memref<2x1x32xf32, #tpu.memory_space<vmem>>, %arg16: memref<2x1x32xf32, #tpu.memory_space<vmem>>, %arg17: memref<32x32xf32, #tpu.memory_space<vmem>>, %arg18: memref<1x32xf32, #tpu.memory_space<vmem>>, %arg19: memref<32x128xf32, #tpu.memory_space<vmem>>, %arg20: memref<1x128xf32, #tpu.memory_space<vmem>>, %arg21: memref<2x128xf32, #tpu.memory_space<vmem>>) attributes {dimension_semantics = [#tpu.dimension_semantics<arbitrary>], iteration_bounds = array<i64: 1>, scalar_prefetch = 0 : i64, scratch_operands = 0 : i64, tpu.core_type = #tpu.core_type<tc>, window_params = [{pipeline_mode = #tpu.pipeline_mode<synchronous>, transform_indices = @transform_0, window_bounds = array<i64: 16, 32>}, {pipeline_mode = #tpu.pipeline_mode<synchronous>, transform_indices = @transform_1, window_bounds = array<i64: 2, 8>}, {pipeline_mode = #tpu.pipeline_mode<synchronous>, transform_indices = @transform_2, window_bounds = array<i64: 1, 32>}, {pipeline_mode = #tpu.pipeline_mode<synchronous>, transform_indices = @transform_3, window_bounds = array<i64: 1, 32>}, {pipeline_mode = #tpu.pipeline_mode<synchronous>, transform_indices = @transform_4, window_bounds = array<i64: 2, 32, 96>}, {pipeline_mode = #tpu.pipeline_mode<synchronous>, transform_indices = @transform_5, window_bounds = array<i64: 2, 1, 96>}, {pipeline_mode = #tpu.pipeline_mode<synchronous>, transform_indices = @transform_6, window_bounds = array<i64: 2, 32, 32>}, {pipeline_mode = #tpu.pipeline_mode<synchronous>, transform_indices = @transform_7, window_bounds = array<i64: 2, 1, 32>}, {pipeline_mode = #tpu.pipeline_mode<synchronous>, transform_indices = @transform_8, window_bounds = array<i64: 2, 1, 32>}, {pipeline_mode = #tpu.pipeline_mode<synchronous>, transform_indices = @transform_9, window_bounds = array<i64: 2, 1, 32>}, {pipeline_mode = #tpu.pipeline_mode<synchronous>, transform_indices = @transform_10, window_bounds = array<i64: 2, 32, 64>}, {pipeline_mode = #tpu.pipeline_mode<synchronous>, transform_indices = @transform_11, window_bounds = array<i64: 2, 1, 64>}, {pipeline_mode = #tpu.pipeline_mode<synchronous>, transform_indices = @transform_12, window_bounds = array<i64: 2, 64, 32>}, {pipeline_mode = #tpu.pipeline_mode<synchronous>, transform_indices = @transform_13, window_bounds = array<i64: 2, 1, 32>}, {pipeline_mode = #tpu.pipeline_mode<synchronous>, transform_indices = @transform_14, window_bounds = array<i64: 2, 1, 32>}, {pipeline_mode = #tpu.pipeline_mode<synchronous>, transform_indices = @transform_15, window_bounds = array<i64: 2, 1, 32>}, {pipeline_mode = #tpu.pipeline_mode<synchronous>, transform_indices = @transform_16, window_bounds = array<i64: 32, 32>}, {pipeline_mode = #tpu.pipeline_mode<synchronous>, transform_indices = @transform_17, window_bounds = array<i64: 1, 32>}, {pipeline_mode = #tpu.pipeline_mode<synchronous>, transform_indices = @transform_18, window_bounds = array<i64: 32, 128>}, {pipeline_mode = #tpu.pipeline_mode<synchronous>, transform_indices = @transform_19, window_bounds = array<i64: 1, 128>}, {pipeline_mode = #tpu.pipeline_mode<synchronous>, transform_indices = @transform_20, window_bounds = array<i64: 2, 128>}]} {
    %c0 = arith.constant 0 : index
    %c0_0 = arith.constant 0 : index
    %0 = vector.load %arg1[%c0, %c0_0] : memref<16x32xf32, #tpu.memory_space<vmem>>, vector<16x32xf32>
    %c0_1 = arith.constant 0 : index
    %c0_2 = arith.constant 0 : index
    %1 = vector.load %arg3[%c0_1, %c0_2] : memref<1x32xf32, #tpu.memory_space<vmem>>, vector<1x32xf32>
    %c0_3 = arith.constant 0 : index
    %c0_4 = arith.constant 0 : index
    %2 = vector.load %arg4[%c0_3, %c0_4] : memref<1x32xf32, #tpu.memory_space<vmem>>, vector<1x32xf32>
    %cst = arith.constant dense<0.000000e+00> : vector<16xf32>
    %3 = vector.multi_reduction <add>, %0, %cst [1] : vector<16x32xf32> to vector<16xf32>
    %4 = vector.shape_cast %3 : vector<16xf32> to vector<16x1xf32>
    %cst_5 = arith.constant 3.200000e+01 : f32
    %5 = vector.broadcast %cst_5 : f32 to vector<16x1xf32>
    %6 = arith.divf %4, %5 : vector<16x1xf32>
    %7 = vector.broadcast %6 : vector<16x1xf32> to vector<16x32xf32>
    %8 = arith.subf %0, %7 : vector<16x32xf32>
    %9 = arith.mulf %8, %8 : vector<16x32xf32>
    %cst_6 = arith.constant dense<0.000000e+00> : vector<16xf32>
    %10 = vector.multi_reduction <add>, %9, %cst_6 [1] : vector<16x32xf32> to vector<16xf32>
    %11 = vector.shape_cast %10 : vector<16xf32> to vector<16x1xf32>
    %cst_7 = arith.constant 3.200000e+01 : f32
    %12 = vector.broadcast %cst_7 : f32 to vector<16x1xf32>
    %13 = arith.divf %11, %12 : vector<16x1xf32>
    %14 = vector.broadcast %6 : vector<16x1xf32> to vector<16x32xf32>
    %15 = arith.subf %0, %14 : vector<16x32xf32>
    %cst_8 = arith.constant 9.99999996E-13 : f32
    %16 = vector.broadcast %cst_8 : f32 to vector<16x1xf32>
    %17 = arith.addf %13, %16 : vector<16x1xf32>
    %18 = math.rsqrt %17 : vector<16x1xf32>
    %19 = vector.broadcast %18 : vector<16x1xf32> to vector<16x32xf32>
    %20 = arith.mulf %15, %19 : vector<16x32xf32>
    %21 = vector.broadcast %1 : vector<1x32xf32> to vector<16x32xf32>
    %22 = arith.mulf %20, %21 : vector<16x32xf32>
    %23 = vector.broadcast %2 : vector<1x32xf32> to vector<16x32xf32>
    %24 = arith.addf %22, %23 : vector<16x32xf32>
    %c0_9 = arith.constant 0 : index
    %c0_10 = arith.constant 0 : index
    %25 = vector.load %arg2[%c0_9, %c0_10] : memref<2x8xf32, #tpu.memory_space<vmem>>, vector<2x8xf32>
    %c0_11 = arith.constant 0 : index
    %c0_12 = arith.constant 0 : index
    %c0_13 = arith.constant 0 : index
    %26 = vector.load %arg5[%c0_11, %c0_12, %c0_13] : memref<2x32x96xf32, #tpu.memory_space<vmem>>, vector<1x32x96xf32>
    %27 = vector.shape_cast %26 : vector<1x32x96xf32> to vector<32x96xf32>
    %cst_14 = arith.constant dense<0.000000e+00> : vector<16x96xf32>
    %28 = tpu.matmul %24, %27, %cst_14 {dimension_numbers = #tpu.dot_dimension_numbers<[1], [0], [0], [1], [0, 0, 1, 1], [], []>} : vector<16x32xf32>, vector<32x96xf32>, vector<16x96xf32> -> vector<16x96xf32>
    %c0_15 = arith.constant 0 : index
    %c0_16 = arith.constant 0 : index
    %c0_17 = arith.constant 0 : index
    %29 = vector.load %arg6[%c0_15, %c0_16, %c0_17] : memref<2x1x96xf32, #tpu.memory_space<vmem>>, vector<1x1x96xf32>
    %30 = vector.shape_cast %29 : vector<1x1x96xf32> to vector<1x96xf32>
    %31 = vector.broadcast %30 : vector<1x96xf32> to vector<16x96xf32>
    %32 = arith.addf %28, %31 : vector<16x96xf32>
    %33 = vector.extract_strided_slice %32 {offsets = [0, 0], sizes = [16, 32], strides = [1, 1]} : vector<16x96xf32> to vector<16x32xf32>
    %34 = vector.extract_strided_slice %32 {offsets = [0, 32], sizes = [16, 32], strides = [1, 1]} : vector<16x96xf32> to vector<16x32xf32>
    %35 = vector.extract_strided_slice %32 {offsets = [0, 64], sizes = [16, 32], strides = [1, 1]} : vector<16x96xf32> to vector<16x32xf32>
    %36 = vector.extract_strided_slice %25 {offsets = [0, 0], sizes = [1, 8], strides = [1, 1]} : vector<2x8xf32> to vector<1x8xf32>
    %37 = vector.extract_strided_slice %33 {offsets = [0, 0], sizes = [8, 8], strides = [1, 1]} : vector<16x32xf32> to vector<8x8xf32>
    %38 = vector.extract_strided_slice %34 {offsets = [0, 0], sizes = [8, 8], strides = [1, 1]} : vector<16x32xf32> to vector<8x8xf32>
    %39 = vector.extract_strided_slice %35 {offsets = [0, 0], sizes = [8, 8], strides = [1, 1]} : vector<16x32xf32> to vector<8x8xf32>
    %cst_18 = arith.constant dense<0.000000e+00> : vector<8x8xf32>
    %40 = tpu.matmul %37, %38, %cst_18 {dimension_numbers = #tpu.dot_dimension_numbers<[1], [1], [0], [0], [0, 0, 1, 0], [], []>} : vector<8x8xf32>, vector<8x8xf32>, vector<8x8xf32> -> vector<8x8xf32>
    %41 = vector.broadcast %36 : vector<1x8xf32> to vector<8x8xf32>
    %42 = arith.addf %40, %41 : vector<8x8xf32>
    %cst_19 = arith.constant dense<0xFF800000> : vector<8xf32>
    %43 = vector.multi_reduction <maximumf>, %42, %cst_19 [1] : vector<8x8xf32> to vector<8xf32>
    %44 = vector.shape_cast %43 : vector<8xf32> to vector<8x1xf32>
    %45 = vector.broadcast %44 : vector<8x1xf32> to vector<8x8xf32>
    %46 = arith.subf %42, %45 : vector<8x8xf32>
    %47 = math.exp %46 : vector<8x8xf32>
    %cst_20 = arith.constant dense<0.000000e+00> : vector<8xf32>
    %48 = vector.multi_reduction <add>, %47, %cst_20 [1] : vector<8x8xf32> to vector<8xf32>
    %49 = vector.shape_cast %48 : vector<8xf32> to vector<8x1xf32>
    %50 = tpu.reciprocal %49 {approx = true} : vector<8x1xf32> -> vector<8x1xf32>
    %51 = vector.broadcast %50 : vector<8x1xf32> to vector<8x8xf32>
    %52 = arith.mulf %47, %51 : vector<8x8xf32>
    %cst_21 = arith.constant dense<0.000000e+00> : vector<8x8xf32>
    %53 = tpu.matmul %52, %39, %cst_21 {dimension_numbers = #tpu.dot_dimension_numbers<[1], [0], [0], [1], [0, 0, 1, 1], [], []>} : vector<8x8xf32>, vector<8x8xf32>, vector<8x8xf32> -> vector<8x8xf32>
    %54 = vector.extract_strided_slice %33 {offsets = [0, 8], sizes = [8, 8], strides = [1, 1]} : vector<16x32xf32> to vector<8x8xf32>
    %55 = vector.extract_strided_slice %34 {offsets = [0, 8], sizes = [8, 8], strides = [1, 1]} : vector<16x32xf32> to vector<8x8xf32>
    %56 = vector.extract_strided_slice %35 {offsets = [0, 8], sizes = [8, 8], strides = [1, 1]} : vector<16x32xf32> to vector<8x8xf32>
    %cst_22 = arith.constant dense<0.000000e+00> : vector<8x8xf32>
    %57 = tpu.matmul %54, %55, %cst_22 {dimension_numbers = #tpu.dot_dimension_numbers<[1], [1], [0], [0], [0, 0, 1, 0], [], []>} : vector<8x8xf32>, vector<8x8xf32>, vector<8x8xf32> -> vector<8x8xf32>
    %58 = vector.broadcast %36 : vector<1x8xf32> to vector<8x8xf32>
    %59 = arith.addf %57, %58 : vector<8x8xf32>
    %cst_23 = arith.constant dense<0xFF800000> : vector<8xf32>
    %60 = vector.multi_reduction <maximumf>, %59, %cst_23 [1] : vector<8x8xf32> to vector<8xf32>
    %61 = vector.shape_cast %60 : vector<8xf32> to vector<8x1xf32>
    %62 = vector.broadcast %61 : vector<8x1xf32> to vector<8x8xf32>
    %63 = arith.subf %59, %62 : vector<8x8xf32>
    %64 = math.exp %63 : vector<8x8xf32>
    %cst_24 = arith.constant dense<0.000000e+00> : vector<8xf32>
    %65 = vector.multi_reduction <add>, %64, %cst_24 [1] : vector<8x8xf32> to vector<8xf32>
    %66 = vector.shape_cast %65 : vector<8xf32> to vector<8x1xf32>
    %67 = tpu.reciprocal %66 {approx = true} : vector<8x1xf32> -> vector<8x1xf32>
    %68 = vector.broadcast %67 : vector<8x1xf32> to vector<8x8xf32>
    %69 = arith.mulf %64, %68 : vector<8x8xf32>
    %cst_25 = arith.constant dense<0.000000e+00> : vector<8x8xf32>
    %70 = tpu.matmul %69, %56, %cst_25 {dimension_numbers = #tpu.dot_dimension_numbers<[1], [0], [0], [1], [0, 0, 1, 1], [], []>} : vector<8x8xf32>, vector<8x8xf32>, vector<8x8xf32> -> vector<8x8xf32>
    %71 = vector.extract_strided_slice %33 {offsets = [0, 16], sizes = [8, 8], strides = [1, 1]} : vector<16x32xf32> to vector<8x8xf32>
    %72 = vector.extract_strided_slice %34 {offsets = [0, 16], sizes = [8, 8], strides = [1, 1]} : vector<16x32xf32> to vector<8x8xf32>
    %73 = vector.extract_strided_slice %35 {offsets = [0, 16], sizes = [8, 8], strides = [1, 1]} : vector<16x32xf32> to vector<8x8xf32>
    %cst_26 = arith.constant dense<0.000000e+00> : vector<8x8xf32>
    %74 = tpu.matmul %71, %72, %cst_26 {dimension_numbers = #tpu.dot_dimension_numbers<[1], [1], [0], [0], [0, 0, 1, 0], [], []>} : vector<8x8xf32>, vector<8x8xf32>, vector<8x8xf32> -> vector<8x8xf32>
    %75 = vector.broadcast %36 : vector<1x8xf32> to vector<8x8xf32>
    %76 = arith.addf %74, %75 : vector<8x8xf32>
    %cst_27 = arith.constant dense<0xFF800000> : vector<8xf32>
    %77 = vector.multi_reduction <maximumf>, %76, %cst_27 [1] : vector<8x8xf32> to vector<8xf32>
    %78 = vector.shape_cast %77 : vector<8xf32> to vector<8x1xf32>
    %79 = vector.broadcast %78 : vector<8x1xf32> to vector<8x8xf32>
    %80 = arith.subf %76, %79 : vector<8x8xf32>
    %81 = math.exp %80 : vector<8x8xf32>
    %cst_28 = arith.constant dense<0.000000e+00> : vector<8xf32>
    %82 = vector.multi_reduction <add>, %81, %cst_28 [1] : vector<8x8xf32> to vector<8xf32>
    %83 = vector.shape_cast %82 : vector<8xf32> to vector<8x1xf32>
    %84 = tpu.reciprocal %83 {approx = true} : vector<8x1xf32> -> vector<8x1xf32>
    %85 = vector.broadcast %84 : vector<8x1xf32> to vector<8x8xf32>
    %86 = arith.mulf %81, %85 : vector<8x8xf32>
    %cst_29 = arith.constant dense<0.000000e+00> : vector<8x8xf32>
    %87 = tpu.matmul %86, %73, %cst_29 {dimension_numbers = #tpu.dot_dimension_numbers<[1], [0], [0], [1], [0, 0, 1, 1], [], []>} : vector<8x8xf32>, vector<8x8xf32>, vector<8x8xf32> -> vector<8x8xf32>
    %88 = vector.extract_strided_slice %33 {offsets = [0, 24], sizes = [8, 8], strides = [1, 1]} : vector<16x32xf32> to vector<8x8xf32>
    %89 = vector.extract_strided_slice %34 {offsets = [0, 24], sizes = [8, 8], strides = [1, 1]} : vector<16x32xf32> to vector<8x8xf32>
    %90 = vector.extract_strided_slice %35 {offsets = [0, 24], sizes = [8, 8], strides = [1, 1]} : vector<16x32xf32> to vector<8x8xf32>
    %cst_30 = arith.constant dense<0.000000e+00> : vector<8x8xf32>
    %91 = tpu.matmul %88, %89, %cst_30 {dimension_numbers = #tpu.dot_dimension_numbers<[1], [1], [0], [0], [0, 0, 1, 0], [], []>} : vector<8x8xf32>, vector<8x8xf32>, vector<8x8xf32> -> vector<8x8xf32>
    %92 = vector.broadcast %36 : vector<1x8xf32> to vector<8x8xf32>
    %93 = arith.addf %91, %92 : vector<8x8xf32>
    %cst_31 = arith.constant dense<0xFF800000> : vector<8xf32>
    %94 = vector.multi_reduction <maximumf>, %93, %cst_31 [1] : vector<8x8xf32> to vector<8xf32>
    %95 = vector.shape_cast %94 : vector<8xf32> to vector<8x1xf32>
    %96 = vector.broadcast %95 : vector<8x1xf32> to vector<8x8xf32>
    %97 = arith.subf %93, %96 : vector<8x8xf32>
    %98 = math.exp %97 : vector<8x8xf32>
    %cst_32 = arith.constant dense<0.000000e+00> : vector<8xf32>
    %99 = vector.multi_reduction <add>, %98, %cst_32 [1] : vector<8x8xf32> to vector<8xf32>
    %100 = vector.shape_cast %99 : vector<8xf32> to vector<8x1xf32>
    %101 = tpu.reciprocal %100 {approx = true} : vector<8x1xf32> -> vector<8x1xf32>
    %102 = vector.broadcast %101 : vector<8x1xf32> to vector<8x8xf32>
    %103 = arith.mulf %98, %102 : vector<8x8xf32>
    %cst_33 = arith.constant dense<0.000000e+00> : vector<8x8xf32>
    %104 = tpu.matmul %103, %90, %cst_33 {dimension_numbers = #tpu.dot_dimension_numbers<[1], [0], [0], [1], [0, 0, 1, 1], [], []>} : vector<8x8xf32>, vector<8x8xf32>, vector<8x8xf32> -> vector<8x8xf32>
    %105 = tpu.concatenate %53, %70, %87, %104 in 1 : vector<8x8xf32>, vector<8x8xf32>, vector<8x8xf32>, vector<8x8xf32> -> vector<8x32xf32>
    %106 = vector.extract_strided_slice %25 {offsets = [1, 0], sizes = [1, 8], strides = [1, 1]} : vector<2x8xf32> to vector<1x8xf32>
    %107 = vector.extract_strided_slice %33 {offsets = [8, 0], sizes = [8, 8], strides = [1, 1]} : vector<16x32xf32> to vector<8x8xf32>
    %108 = vector.extract_strided_slice %34 {offsets = [8, 0], sizes = [8, 8], strides = [1, 1]} : vector<16x32xf32> to vector<8x8xf32>
    %109 = vector.extract_strided_slice %35 {offsets = [8, 0], sizes = [8, 8], strides = [1, 1]} : vector<16x32xf32> to vector<8x8xf32>
    %cst_34 = arith.constant dense<0.000000e+00> : vector<8x8xf32>
    %110 = tpu.matmul %107, %108, %cst_34 {dimension_numbers = #tpu.dot_dimension_numbers<[1], [1], [0], [0], [0, 0, 1, 0], [], []>} : vector<8x8xf32>, vector<8x8xf32>, vector<8x8xf32> -> vector<8x8xf32>
    %111 = vector.broadcast %106 : vector<1x8xf32> to vector<8x8xf32>
    %112 = arith.addf %110, %111 : vector<8x8xf32>
    %cst_35 = arith.constant dense<0xFF800000> : vector<8xf32>
    %113 = vector.multi_reduction <maximumf>, %112, %cst_35 [1] : vector<8x8xf32> to vector<8xf32>
    %114 = vector.shape_cast %113 : vector<8xf32> to vector<8x1xf32>
    %115 = vector.broadcast %114 : vector<8x1xf32> to vector<8x8xf32>
    %116 = arith.subf %112, %115 : vector<8x8xf32>
    %117 = math.exp %116 : vector<8x8xf32>
    %cst_36 = arith.constant dense<0.000000e+00> : vector<8xf32>
    %118 = vector.multi_reduction <add>, %117, %cst_36 [1] : vector<8x8xf32> to vector<8xf32>
    %119 = vector.shape_cast %118 : vector<8xf32> to vector<8x1xf32>
    %120 = tpu.reciprocal %119 {approx = true} : vector<8x1xf32> -> vector<8x1xf32>
    %121 = vector.broadcast %120 : vector<8x1xf32> to vector<8x8xf32>
    %122 = arith.mulf %117, %121 : vector<8x8xf32>
    %cst_37 = arith.constant dense<0.000000e+00> : vector<8x8xf32>
    %123 = tpu.matmul %122, %109, %cst_37 {dimension_numbers = #tpu.dot_dimension_numbers<[1], [0], [0], [1], [0, 0, 1, 1], [], []>} : vector<8x8xf32>, vector<8x8xf32>, vector<8x8xf32> -> vector<8x8xf32>
    %124 = vector.extract_strided_slice %33 {offsets = [8, 8], sizes = [8, 8], strides = [1, 1]} : vector<16x32xf32> to vector<8x8xf32>
    %125 = vector.extract_strided_slice %34 {offsets = [8, 8], sizes = [8, 8], strides = [1, 1]} : vector<16x32xf32> to vector<8x8xf32>
    %126 = vector.extract_strided_slice %35 {offsets = [8, 8], sizes = [8, 8], strides = [1, 1]} : vector<16x32xf32> to vector<8x8xf32>
    %cst_38 = arith.constant dense<0.000000e+00> : vector<8x8xf32>
    %127 = tpu.matmul %124, %125, %cst_38 {dimension_numbers = #tpu.dot_dimension_numbers<[1], [1], [0], [0], [0, 0, 1, 0], [], []>} : vector<8x8xf32>, vector<8x8xf32>, vector<8x8xf32> -> vector<8x8xf32>
    %128 = vector.broadcast %106 : vector<1x8xf32> to vector<8x8xf32>
    %129 = arith.addf %127, %128 : vector<8x8xf32>
    %cst_39 = arith.constant dense<0xFF800000> : vector<8xf32>
    %130 = vector.multi_reduction <maximumf>, %129, %cst_39 [1] : vector<8x8xf32> to vector<8xf32>
    %131 = vector.shape_cast %130 : vector<8xf32> to vector<8x1xf32>
    %132 = vector.broadcast %131 : vector<8x1xf32> to vector<8x8xf32>
    %133 = arith.subf %129, %132 : vector<8x8xf32>
    %134 = math.exp %133 : vector<8x8xf32>
    %cst_40 = arith.constant dense<0.000000e+00> : vector<8xf32>
    %135 = vector.multi_reduction <add>, %134, %cst_40 [1] : vector<8x8xf32> to vector<8xf32>
    %136 = vector.shape_cast %135 : vector<8xf32> to vector<8x1xf32>
    %137 = tpu.reciprocal %136 {approx = true} : vector<8x1xf32> -> vector<8x1xf32>
    %138 = vector.broadcast %137 : vector<8x1xf32> to vector<8x8xf32>
    %139 = arith.mulf %134, %138 : vector<8x8xf32>
    %cst_41 = arith.constant dense<0.000000e+00> : vector<8x8xf32>
    %140 = tpu.matmul %139, %126, %cst_41 {dimension_numbers = #tpu.dot_dimension_numbers<[1], [0], [0], [1], [0, 0, 1, 1], [], []>} : vector<8x8xf32>, vector<8x8xf32>, vector<8x8xf32> -> vector<8x8xf32>
    %141 = vector.extract_strided_slice %33 {offsets = [8, 16], sizes = [8, 8], strides = [1, 1]} : vector<16x32xf32> to vector<8x8xf32>
    %142 = vector.extract_strided_slice %34 {offsets = [8, 16], sizes = [8, 8], strides = [1, 1]} : vector<16x32xf32> to vector<8x8xf32>
    %143 = vector.extract_strided_slice %35 {offsets = [8, 16], sizes = [8, 8], strides = [1, 1]} : vector<16x32xf32> to vector<8x8xf32>
    %cst_42 = arith.constant dense<0.000000e+00> : vector<8x8xf32>
    %144 = tpu.matmul %141, %142, %cst_42 {dimension_numbers = #tpu.dot_dimension_numbers<[1], [1], [0], [0], [0, 0, 1, 0], [], []>} : vector<8x8xf32>, vector<8x8xf32>, vector<8x8xf32> -> vector<8x8xf32>
    %145 = vector.broadcast %106 : vector<1x8xf32> to vector<8x8xf32>
    %146 = arith.addf %144, %145 : vector<8x8xf32>
    %cst_43 = arith.constant dense<0xFF800000> : vector<8xf32>
    %147 = vector.multi_reduction <maximumf>, %146, %cst_43 [1] : vector<8x8xf32> to vector<8xf32>
    %148 = vector.shape_cast %147 : vector<8xf32> to vector<8x1xf32>
    %149 = vector.broadcast %148 : vector<8x1xf32> to vector<8x8xf32>
    %150 = arith.subf %146, %149 : vector<8x8xf32>
    %151 = math.exp %150 : vector<8x8xf32>
    %cst_44 = arith.constant dense<0.000000e+00> : vector<8xf32>
    %152 = vector.multi_reduction <add>, %151, %cst_44 [1] : vector<8x8xf32> to vector<8xf32>
    %153 = vector.shape_cast %152 : vector<8xf32> to vector<8x1xf32>
    %154 = tpu.reciprocal %153 {approx = true} : vector<8x1xf32> -> vector<8x1xf32>
    %155 = vector.broadcast %154 : vector<8x1xf32> to vector<8x8xf32>
    %156 = arith.mulf %151, %155 : vector<8x8xf32>
    %cst_45 = arith.constant dense<0.000000e+00> : vector<8x8xf32>
    %157 = tpu.matmul %156, %143, %cst_45 {dimension_numbers = #tpu.dot_dimension_numbers<[1], [0], [0], [1], [0, 0, 1, 1], [], []>} : vector<8x8xf32>, vector<8x8xf32>, vector<8x8xf32> -> vector<8x8xf32>
    %158 = vector.extract_strided_slice %33 {offsets = [8, 24], sizes = [8, 8], strides = [1, 1]} : vector<16x32xf32> to vector<8x8xf32>
    %159 = vector.extract_strided_slice %34 {offsets = [8, 24], sizes = [8, 8], strides = [1, 1]} : vector<16x32xf32> to vector<8x8xf32>
    %160 = vector.extract_strided_slice %35 {offsets = [8, 24], sizes = [8, 8], strides = [1, 1]} : vector<16x32xf32> to vector<8x8xf32>
    %cst_46 = arith.constant dense<0.000000e+00> : vector<8x8xf32>
    %161 = tpu.matmul %158, %159, %cst_46 {dimension_numbers = #tpu.dot_dimension_numbers<[1], [1], [0], [0], [0, 0, 1, 0], [], []>} : vector<8x8xf32>, vector<8x8xf32>, vector<8x8xf32> -> vector<8x8xf32>
    %162 = vector.broadcast %106 : vector<1x8xf32> to vector<8x8xf32>
    %163 = arith.addf %161, %162 : vector<8x8xf32>
    %cst_47 = arith.constant dense<0xFF800000> : vector<8xf32>
    %164 = vector.multi_reduction <maximumf>, %163, %cst_47 [1] : vector<8x8xf32> to vector<8xf32>
    %165 = vector.shape_cast %164 : vector<8xf32> to vector<8x1xf32>
    %166 = vector.broadcast %165 : vector<8x1xf32> to vector<8x8xf32>
    %167 = arith.subf %163, %166 : vector<8x8xf32>
    %168 = math.exp %167 : vector<8x8xf32>
    %cst_48 = arith.constant dense<0.000000e+00> : vector<8xf32>
    %169 = vector.multi_reduction <add>, %168, %cst_48 [1] : vector<8x8xf32> to vector<8xf32>
    %170 = vector.shape_cast %169 : vector<8xf32> to vector<8x1xf32>
    %171 = tpu.reciprocal %170 {approx = true} : vector<8x1xf32> -> vector<8x1xf32>
    %172 = vector.broadcast %171 : vector<8x1xf32> to vector<8x8xf32>
    %173 = arith.mulf %168, %172 : vector<8x8xf32>
    %cst_49 = arith.constant dense<0.000000e+00> : vector<8x8xf32>
    %174 = tpu.matmul %173, %160, %cst_49 {dimension_numbers = #tpu.dot_dimension_numbers<[1], [0], [0], [1], [0, 0, 1, 1], [], []>} : vector<8x8xf32>, vector<8x8xf32>, vector<8x8xf32> -> vector<8x8xf32>
    %175 = tpu.concatenate %123, %140, %157, %174 in 1 : vector<8x8xf32>, vector<8x8xf32>, vector<8x8xf32>, vector<8x8xf32> -> vector<8x32xf32>
    %176 = tpu.concatenate %105, %175 in 0 : vector<8x32xf32>, vector<8x32xf32> -> vector<16x32xf32>
    %c0_50 = arith.constant 0 : index
    %c0_51 = arith.constant 0 : index
    %c0_52 = arith.constant 0 : index
    %177 = vector.load %arg7[%c0_50, %c0_51, %c0_52] : memref<2x32x32xf32, #tpu.memory_space<vmem>>, vector<1x32x32xf32>
    %178 = vector.shape_cast %177 : vector<1x32x32xf32> to vector<32x32xf32>
    %cst_53 = arith.constant dense<0.000000e+00> : vector<16x32xf32>
    %179 = tpu.matmul %176, %178, %cst_53 {dimension_numbers = #tpu.dot_dimension_numbers<[1], [0], [0], [1], [0, 0, 1, 1], [], []>} : vector<16x32xf32>, vector<32x32xf32>, vector<16x32xf32> -> vector<16x32xf32>
    %c0_54 = arith.constant 0 : index
    %c0_55 = arith.constant 0 : index
    %c0_56 = arith.constant 0 : index
    %180 = vector.load %arg8[%c0_54, %c0_55, %c0_56] : memref<2x1x32xf32, #tpu.memory_space<vmem>>, vector<1x1x32xf32>
    %181 = vector.shape_cast %180 : vector<1x1x32xf32> to vector<1x32xf32>
    %182 = vector.broadcast %181 : vector<1x32xf32> to vector<16x32xf32>
    %183 = arith.addf %179, %182 : vector<16x32xf32>
    %184 = arith.addf %24, %183 : vector<16x32xf32>
    %c0_57 = arith.constant 0 : index
    %c0_58 = arith.constant 0 : index
    %c0_59 = arith.constant 0 : index
    %185 = vector.load %arg9[%c0_57, %c0_58, %c0_59] : memref<2x1x32xf32, #tpu.memory_space<vmem>>, vector<1x1x32xf32>
    %186 = vector.shape_cast %185 : vector<1x1x32xf32> to vector<1x32xf32>
    %c0_60 = arith.constant 0 : index
    %c0_61 = arith.constant 0 : index
    %c0_62 = arith.constant 0 : index
    %187 = vector.load %arg10[%c0_60, %c0_61, %c0_62] : memref<2x1x32xf32, #tpu.memory_space<vmem>>, vector<1x1x32xf32>
    %188 = vector.shape_cast %187 : vector<1x1x32xf32> to vector<1x32xf32>
    %cst_63 = arith.constant dense<0.000000e+00> : vector<16xf32>
    %189 = vector.multi_reduction <add>, %184, %cst_63 [1] : vector<16x32xf32> to vector<16xf32>
    %190 = vector.shape_cast %189 : vector<16xf32> to vector<16x1xf32>
    %cst_64 = arith.constant 3.200000e+01 : f32
    %191 = vector.broadcast %cst_64 : f32 to vector<16x1xf32>
    %192 = arith.divf %190, %191 : vector<16x1xf32>
    %193 = vector.broadcast %192 : vector<16x1xf32> to vector<16x32xf32>
    %194 = arith.subf %184, %193 : vector<16x32xf32>
    %195 = arith.mulf %194, %194 : vector<16x32xf32>
    %cst_65 = arith.constant dense<0.000000e+00> : vector<16xf32>
    %196 = vector.multi_reduction <add>, %195, %cst_65 [1] : vector<16x32xf32> to vector<16xf32>
    %197 = vector.shape_cast %196 : vector<16xf32> to vector<16x1xf32>
    %cst_66 = arith.constant 3.200000e+01 : f32
    %198 = vector.broadcast %cst_66 : f32 to vector<16x1xf32>
    %199 = arith.divf %197, %198 : vector<16x1xf32>
    %200 = vector.broadcast %192 : vector<16x1xf32> to vector<16x32xf32>
    %201 = arith.subf %184, %200 : vector<16x32xf32>
    %cst_67 = arith.constant 9.99999996E-13 : f32
    %202 = vector.broadcast %cst_67 : f32 to vector<16x1xf32>
    %203 = arith.addf %199, %202 : vector<16x1xf32>
    %204 = math.rsqrt %203 : vector<16x1xf32>
    %205 = vector.broadcast %204 : vector<16x1xf32> to vector<16x32xf32>
    %206 = arith.mulf %201, %205 : vector<16x32xf32>
    %207 = vector.broadcast %186 : vector<1x32xf32> to vector<16x32xf32>
    %208 = arith.mulf %206, %207 : vector<16x32xf32>
    %209 = vector.broadcast %188 : vector<1x32xf32> to vector<16x32xf32>
    %210 = arith.addf %208, %209 : vector<16x32xf32>
    %c0_68 = arith.constant 0 : index
    %c0_69 = arith.constant 0 : index
    %c0_70 = arith.constant 0 : index
    %211 = vector.load %arg11[%c0_68, %c0_69, %c0_70] : memref<2x32x64xf32, #tpu.memory_space<vmem>>, vector<1x32x64xf32>
    %212 = vector.shape_cast %211 : vector<1x32x64xf32> to vector<32x64xf32>
    %cst_71 = arith.constant dense<0.000000e+00> : vector<16x64xf32>
    %213 = tpu.matmul %210, %212, %cst_71 {dimension_numbers = #tpu.dot_dimension_numbers<[1], [0], [0], [1], [0, 0, 1, 1], [], []>} : vector<16x32xf32>, vector<32x64xf32>, vector<16x64xf32> -> vector<16x64xf32>
    %c0_72 = arith.constant 0 : index
    %c0_73 = arith.constant 0 : index
    %c0_74 = arith.constant 0 : index
    %214 = vector.load %arg12[%c0_72, %c0_73, %c0_74] : memref<2x1x64xf32, #tpu.memory_space<vmem>>, vector<1x1x64xf32>
    %215 = vector.shape_cast %214 : vector<1x1x64xf32> to vector<1x64xf32>
    %216 = vector.broadcast %215 : vector<1x64xf32> to vector<16x64xf32>
    %217 = arith.addf %213, %216 : vector<16x64xf32>
    %218 = arith.mulf %217, %217 : vector<16x64xf32>
    %219 = arith.mulf %217, %218 : vector<16x64xf32>
    %cst_75 = arith.constant 4.471500e-02 : f32
    %220 = vector.broadcast %cst_75 : f32 to vector<16x64xf32>
    %221 = arith.mulf %220, %219 : vector<16x64xf32>
    %222 = arith.addf %217, %221 : vector<16x64xf32>
    %cst_76 = arith.constant 0.797884583 : f32
    %223 = vector.broadcast %cst_76 : f32 to vector<16x64xf32>
    %224 = arith.mulf %223, %222 : vector<16x64xf32>
    %225 = math.tanh %224 : vector<16x64xf32>
    %cst_77 = arith.constant 1.000000e+00 : f32
    %226 = vector.broadcast %cst_77 : f32 to vector<16x64xf32>
    %227 = arith.addf %226, %225 : vector<16x64xf32>
    %cst_78 = arith.constant 5.000000e-01 : f32
    %228 = vector.broadcast %cst_78 : f32 to vector<16x64xf32>
    %229 = arith.mulf %228, %227 : vector<16x64xf32>
    %230 = arith.mulf %217, %229 : vector<16x64xf32>
    %c0_79 = arith.constant 0 : index
    %c0_80 = arith.constant 0 : index
    %c0_81 = arith.constant 0 : index
    %231 = vector.load %arg13[%c0_79, %c0_80, %c0_81] : memref<2x64x32xf32, #tpu.memory_space<vmem>>, vector<1x64x32xf32>
    %232 = vector.shape_cast %231 : vector<1x64x32xf32> to vector<64x32xf32>
    %cst_82 = arith.constant dense<0.000000e+00> : vector<16x32xf32>
    %233 = tpu.matmul %230, %232, %cst_82 {dimension_numbers = #tpu.dot_dimension_numbers<[1], [0], [0], [1], [0, 0, 1, 1], [], []>} : vector<16x64xf32>, vector<64x32xf32>, vector<16x32xf32> -> vector<16x32xf32>
    %c0_83 = arith.constant 0 : index
    %c0_84 = arith.constant 0 : index
    %c0_85 = arith.constant 0 : index
    %234 = vector.load %arg14[%c0_83, %c0_84, %c0_85] : memref<2x1x32xf32, #tpu.memory_space<vmem>>, vector<1x1x32xf32>
    %235 = vector.shape_cast %234 : vector<1x1x32xf32> to vector<1x32xf32>
    %236 = vector.broadcast %235 : vector<1x32xf32> to vector<16x32xf32>
    %237 = arith.addf %233, %236 : vector<16x32xf32>
    %238 = arith.addf %210, %237 : vector<16x32xf32>
    %c0_86 = arith.constant 0 : index
    %c0_87 = arith.constant 0 : index
    %c0_88 = arith.constant 0 : index
    %239 = vector.load %arg15[%c0_86, %c0_87, %c0_88] : memref<2x1x32xf32, #tpu.memory_space<vmem>>, vector<1x1x32xf32>
    %240 = vector.shape_cast %239 : vector<1x1x32xf32> to vector<1x32xf32>
    %c0_89 = arith.constant 0 : index
    %c0_90 = arith.constant 0 : index
    %c0_91 = arith.constant 0 : index
    %241 = vector.load %arg16[%c0_89, %c0_90, %c0_91] : memref<2x1x32xf32, #tpu.memory_space<vmem>>, vector<1x1x32xf32>
    %242 = vector.shape_cast %241 : vector<1x1x32xf32> to vector<1x32xf32>
    %cst_92 = arith.constant dense<0.000000e+00> : vector<16xf32>
    %243 = vector.multi_reduction <add>, %238, %cst_92 [1] : vector<16x32xf32> to vector<16xf32>
    %244 = vector.shape_cast %243 : vector<16xf32> to vector<16x1xf32>
    %cst_93 = arith.constant 3.200000e+01 : f32
    %245 = vector.broadcast %cst_93 : f32 to vector<16x1xf32>
    %246 = arith.divf %244, %245 : vector<16x1xf32>
    %247 = vector.broadcast %246 : vector<16x1xf32> to vector<16x32xf32>
    %248 = arith.subf %238, %247 : vector<16x32xf32>
    %249 = arith.mulf %248, %248 : vector<16x32xf32>
    %cst_94 = arith.constant dense<0.000000e+00> : vector<16xf32>
    %250 = vector.multi_reduction <add>, %249, %cst_94 [1] : vector<16x32xf32> to vector<16xf32>
    %251 = vector.shape_cast %250 : vector<16xf32> to vector<16x1xf32>
    %cst_95 = arith.constant 3.200000e+01 : f32
    %252 = vector.broadcast %cst_95 : f32 to vector<16x1xf32>
    %253 = arith.divf %251, %252 : vector<16x1xf32>
    %254 = vector.broadcast %246 : vector<16x1xf32> to vector<16x32xf32>
    %255 = arith.subf %238, %254 : vector<16x32xf32>
    %cst_96 = arith.constant 9.99999996E-13 : f32
    %256 = vector.broadcast %cst_96 : f32 to vector<16x1xf32>
    %257 = arith.addf %253, %256 : vector<16x1xf32>
    %258 = math.rsqrt %257 : vector<16x1xf32>
    %259 = vector.broadcast %258 : vector<16x1xf32> to vector<16x32xf32>
    %260 = arith.mulf %255, %259 : vector<16x32xf32>
    %261 = vector.broadcast %240 : vector<1x32xf32> to vector<16x32xf32>
    %262 = arith.mulf %260, %261 : vector<16x32xf32>
    %263 = vector.broadcast %242 : vector<1x32xf32> to vector<16x32xf32>
    %264 = arith.addf %262, %263 : vector<16x32xf32>
    %c1 = arith.constant 1 : index
    %c0_97 = arith.constant 0 : index
    %c0_98 = arith.constant 0 : index
    %265 = vector.load %arg5[%c1, %c0_97, %c0_98] : memref<2x32x96xf32, #tpu.memory_space<vmem>>, vector<1x32x96xf32>
    %266 = vector.shape_cast %265 : vector<1x32x96xf32> to vector<32x96xf32>
    %cst_99 = arith.constant dense<0.000000e+00> : vector<16x96xf32>
    %267 = tpu.matmul %264, %266, %cst_99 {dimension_numbers = #tpu.dot_dimension_numbers<[1], [0], [0], [1], [0, 0, 1, 1], [], []>} : vector<16x32xf32>, vector<32x96xf32>, vector<16x96xf32> -> vector<16x96xf32>
    %c1_100 = arith.constant 1 : index
    %c0_101 = arith.constant 0 : index
    %c0_102 = arith.constant 0 : index
    %268 = vector.load %arg6[%c1_100, %c0_101, %c0_102] : memref<2x1x96xf32, #tpu.memory_space<vmem>>, vector<1x1x96xf32>
    %269 = vector.shape_cast %268 : vector<1x1x96xf32> to vector<1x96xf32>
    %270 = vector.broadcast %269 : vector<1x96xf32> to vector<16x96xf32>
    %271 = arith.addf %267, %270 : vector<16x96xf32>
    %272 = vector.extract_strided_slice %271 {offsets = [0, 0], sizes = [16, 32], strides = [1, 1]} : vector<16x96xf32> to vector<16x32xf32>
    %273 = vector.extract_strided_slice %271 {offsets = [0, 32], sizes = [16, 32], strides = [1, 1]} : vector<16x96xf32> to vector<16x32xf32>
    %274 = vector.extract_strided_slice %271 {offsets = [0, 64], sizes = [16, 32], strides = [1, 1]} : vector<16x96xf32> to vector<16x32xf32>
    %275 = vector.extract_strided_slice %25 {offsets = [0, 0], sizes = [1, 8], strides = [1, 1]} : vector<2x8xf32> to vector<1x8xf32>
    %276 = vector.extract_strided_slice %272 {offsets = [0, 0], sizes = [8, 8], strides = [1, 1]} : vector<16x32xf32> to vector<8x8xf32>
    %277 = vector.extract_strided_slice %273 {offsets = [0, 0], sizes = [8, 8], strides = [1, 1]} : vector<16x32xf32> to vector<8x8xf32>
    %278 = vector.extract_strided_slice %274 {offsets = [0, 0], sizes = [8, 8], strides = [1, 1]} : vector<16x32xf32> to vector<8x8xf32>
    %cst_103 = arith.constant dense<0.000000e+00> : vector<8x8xf32>
    %279 = tpu.matmul %276, %277, %cst_103 {dimension_numbers = #tpu.dot_dimension_numbers<[1], [1], [0], [0], [0, 0, 1, 0], [], []>} : vector<8x8xf32>, vector<8x8xf32>, vector<8x8xf32> -> vector<8x8xf32>
    %280 = vector.broadcast %275 : vector<1x8xf32> to vector<8x8xf32>
    %281 = arith.addf %279, %280 : vector<8x8xf32>
    %cst_104 = arith.constant dense<0xFF800000> : vector<8xf32>
    %282 = vector.multi_reduction <maximumf>, %281, %cst_104 [1] : vector<8x8xf32> to vector<8xf32>
    %283 = vector.shape_cast %282 : vector<8xf32> to vector<8x1xf32>
    %284 = vector.broadcast %283 : vector<8x1xf32> to vector<8x8xf32>
    %285 = arith.subf %281, %284 : vector<8x8xf32>
    %286 = math.exp %285 : vector<8x8xf32>
    %cst_105 = arith.constant dense<0.000000e+00> : vector<8xf32>
    %287 = vector.multi_reduction <add>, %286, %cst_105 [1] : vector<8x8xf32> to vector<8xf32>
    %288 = vector.shape_cast %287 : vector<8xf32> to vector<8x1xf32>
    %289 = tpu.reciprocal %288 {approx = true} : vector<8x1xf32> -> vector<8x1xf32>
    %290 = vector.broadcast %289 : vector<8x1xf32> to vector<8x8xf32>
    %291 = arith.mulf %286, %290 : vector<8x8xf32>
    %cst_106 = arith.constant dense<0.000000e+00> : vector<8x8xf32>
    %292 = tpu.matmul %291, %278, %cst_106 {dimension_numbers = #tpu.dot_dimension_numbers<[1], [0], [0], [1], [0, 0, 1, 1], [], []>} : vector<8x8xf32>, vector<8x8xf32>, vector<8x8xf32> -> vector<8x8xf32>
    %293 = vector.extract_strided_slice %272 {offsets = [0, 8], sizes = [8, 8], strides = [1, 1]} : vector<16x32xf32> to vector<8x8xf32>
    %294 = vector.extract_strided_slice %273 {offsets = [0, 8], sizes = [8, 8], strides = [1, 1]} : vector<16x32xf32> to vector<8x8xf32>
    %295 = vector.extract_strided_slice %274 {offsets = [0, 8], sizes = [8, 8], strides = [1, 1]} : vector<16x32xf32> to vector<8x8xf32>
    %cst_107 = arith.constant dense<0.000000e+00> : vector<8x8xf32>
    %296 = tpu.matmul %293, %294, %cst_107 {dimension_numbers = #tpu.dot_dimension_numbers<[1], [1], [0], [0], [0, 0, 1, 0], [], []>} : vector<8x8xf32>, vector<8x8xf32>, vector<8x8xf32> -> vector<8x8xf32>
    %297 = vector.broadcast %275 : vector<1x8xf32> to vector<8x8xf32>
    %298 = arith.addf %296, %297 : vector<8x8xf32>
    %cst_108 = arith.constant dense<0xFF800000> : vector<8xf32>
    %299 = vector.multi_reduction <maximumf>, %298, %cst_108 [1] : vector<8x8xf32> to vector<8xf32>
    %300 = vector.shape_cast %299 : vector<8xf32> to vector<8x1xf32>
    %301 = vector.broadcast %300 : vector<8x1xf32> to vector<8x8xf32>
    %302 = arith.subf %298, %301 : vector<8x8xf32>
    %303 = math.exp %302 : vector<8x8xf32>
    %cst_109 = arith.constant dense<0.000000e+00> : vector<8xf32>
    %304 = vector.multi_reduction <add>, %303, %cst_109 [1] : vector<8x8xf32> to vector<8xf32>
    %305 = vector.shape_cast %304 : vector<8xf32> to vector<8x1xf32>
    %306 = tpu.reciprocal %305 {approx = true} : vector<8x1xf32> -> vector<8x1xf32>
    %307 = vector.broadcast %306 : vector<8x1xf32> to vector<8x8xf32>
    %308 = arith.mulf %303, %307 : vector<8x8xf32>
    %cst_110 = arith.constant dense<0.000000e+00> : vector<8x8xf32>
    %309 = tpu.matmul %308, %295, %cst_110 {dimension_numbers = #tpu.dot_dimension_numbers<[1], [0], [0], [1], [0, 0, 1, 1], [], []>} : vector<8x8xf32>, vector<8x8xf32>, vector<8x8xf32> -> vector<8x8xf32>
    %310 = vector.extract_strided_slice %272 {offsets = [0, 16], sizes = [8, 8], strides = [1, 1]} : vector<16x32xf32> to vector<8x8xf32>
    %311 = vector.extract_strided_slice %273 {offsets = [0, 16], sizes = [8, 8], strides = [1, 1]} : vector<16x32xf32> to vector<8x8xf32>
    %312 = vector.extract_strided_slice %274 {offsets = [0, 16], sizes = [8, 8], strides = [1, 1]} : vector<16x32xf32> to vector<8x8xf32>
    %cst_111 = arith.constant dense<0.000000e+00> : vector<8x8xf32>
    %313 = tpu.matmul %310, %311, %cst_111 {dimension_numbers = #tpu.dot_dimension_numbers<[1], [1], [0], [0], [0, 0, 1, 0], [], []>} : vector<8x8xf32>, vector<8x8xf32>, vector<8x8xf32> -> vector<8x8xf32>
    %314 = vector.broadcast %275 : vector<1x8xf32> to vector<8x8xf32>
    %315 = arith.addf %313, %314 : vector<8x8xf32>
    %cst_112 = arith.constant dense<0xFF800000> : vector<8xf32>
    %316 = vector.multi_reduction <maximumf>, %315, %cst_112 [1] : vector<8x8xf32> to vector<8xf32>
    %317 = vector.shape_cast %316 : vector<8xf32> to vector<8x1xf32>
    %318 = vector.broadcast %317 : vector<8x1xf32> to vector<8x8xf32>
    %319 = arith.subf %315, %318 : vector<8x8xf32>
    %320 = math.exp %319 : vector<8x8xf32>
    %cst_113 = arith.constant dense<0.000000e+00> : vector<8xf32>
    %321 = vector.multi_reduction <add>, %320, %cst_113 [1] : vector<8x8xf32> to vector<8xf32>
    %322 = vector.shape_cast %321 : vector<8xf32> to vector<8x1xf32>
    %323 = tpu.reciprocal %322 {approx = true} : vector<8x1xf32> -> vector<8x1xf32>
    %324 = vector.broadcast %323 : vector<8x1xf32> to vector<8x8xf32>
    %325 = arith.mulf %320, %324 : vector<8x8xf32>
    %cst_114 = arith.constant dense<0.000000e+00> : vector<8x8xf32>
    %326 = tpu.matmul %325, %312, %cst_114 {dimension_numbers = #tpu.dot_dimension_numbers<[1], [0], [0], [1], [0, 0, 1, 1], [], []>} : vector<8x8xf32>, vector<8x8xf32>, vector<8x8xf32> -> vector<8x8xf32>
    %327 = vector.extract_strided_slice %272 {offsets = [0, 24], sizes = [8, 8], strides = [1, 1]} : vector<16x32xf32> to vector<8x8xf32>
    %328 = vector.extract_strided_slice %273 {offsets = [0, 24], sizes = [8, 8], strides = [1, 1]} : vector<16x32xf32> to vector<8x8xf32>
    %329 = vector.extract_strided_slice %274 {offsets = [0, 24], sizes = [8, 8], strides = [1, 1]} : vector<16x32xf32> to vector<8x8xf32>
    %cst_115 = arith.constant dense<0.000000e+00> : vector<8x8xf32>
    %330 = tpu.matmul %327, %328, %cst_115 {dimension_numbers = #tpu.dot_dimension_numbers<[1], [1], [0], [0], [0, 0, 1, 0], [], []>} : vector<8x8xf32>, vector<8x8xf32>, vector<8x8xf32> -> vector<8x8xf32>
    %331 = vector.broadcast %275 : vector<1x8xf32> to vector<8x8xf32>
    %332 = arith.addf %330, %331 : vector<8x8xf32>
    %cst_116 = arith.constant dense<0xFF800000> : vector<8xf32>
    %333 = vector.multi_reduction <maximumf>, %332, %cst_116 [1] : vector<8x8xf32> to vector<8xf32>
    %334 = vector.shape_cast %333 : vector<8xf32> to vector<8x1xf32>
    %335 = vector.broadcast %334 : vector<8x1xf32> to vector<8x8xf32>
    %336 = arith.subf %332, %335 : vector<8x8xf32>
    %337 = math.exp %336 : vector<8x8xf32>
    %cst_117 = arith.constant dense<0.000000e+00> : vector<8xf32>
    %338 = vector.multi_reduction <add>, %337, %cst_117 [1] : vector<8x8xf32> to vector<8xf32>
    %339 = vector.shape_cast %338 : vector<8xf32> to vector<8x1xf32>
    %340 = tpu.reciprocal %339 {approx = true} : vector<8x1xf32> -> vector<8x1xf32>
    %341 = vector.broadcast %340 : vector<8x1xf32> to vector<8x8xf32>
    %342 = arith.mulf %337, %341 : vector<8x8xf32>
    %cst_118 = arith.constant dense<0.000000e+00> : vector<8x8xf32>
    %343 = tpu.matmul %342, %329, %cst_118 {dimension_numbers = #tpu.dot_dimension_numbers<[1], [0], [0], [1], [0, 0, 1, 1], [], []>} : vector<8x8xf32>, vector<8x8xf32>, vector<8x8xf32> -> vector<8x8xf32>
    %344 = tpu.concatenate %292, %309, %326, %343 in 1 : vector<8x8xf32>, vector<8x8xf32>, vector<8x8xf32>, vector<8x8xf32> -> vector<8x32xf32>
    %345 = vector.extract_strided_slice %25 {offsets = [1, 0], sizes = [1, 8], strides = [1, 1]} : vector<2x8xf32> to vector<1x8xf32>
    %346 = vector.extract_strided_slice %272 {offsets = [8, 0], sizes = [8, 8], strides = [1, 1]} : vector<16x32xf32> to vector<8x8xf32>
    %347 = vector.extract_strided_slice %273 {offsets = [8, 0], sizes = [8, 8], strides = [1, 1]} : vector<16x32xf32> to vector<8x8xf32>
    %348 = vector.extract_strided_slice %274 {offsets = [8, 0], sizes = [8, 8], strides = [1, 1]} : vector<16x32xf32> to vector<8x8xf32>
    %cst_119 = arith.constant dense<0.000000e+00> : vector<8x8xf32>
    %349 = tpu.matmul %346, %347, %cst_119 {dimension_numbers = #tpu.dot_dimension_numbers<[1], [1], [0], [0], [0, 0, 1, 0], [], []>} : vector<8x8xf32>, vector<8x8xf32>, vector<8x8xf32> -> vector<8x8xf32>
    %350 = vector.broadcast %345 : vector<1x8xf32> to vector<8x8xf32>
    %351 = arith.addf %349, %350 : vector<8x8xf32>
    %cst_120 = arith.constant dense<0xFF800000> : vector<8xf32>
    %352 = vector.multi_reduction <maximumf>, %351, %cst_120 [1] : vector<8x8xf32> to vector<8xf32>
    %353 = vector.shape_cast %352 : vector<8xf32> to vector<8x1xf32>
    %354 = vector.broadcast %353 : vector<8x1xf32> to vector<8x8xf32>
    %355 = arith.subf %351, %354 : vector<8x8xf32>
    %356 = math.exp %355 : vector<8x8xf32>
    %cst_121 = arith.constant dense<0.000000e+00> : vector<8xf32>
    %357 = vector.multi_reduction <add>, %356, %cst_121 [1] : vector<8x8xf32> to vector<8xf32>
    %358 = vector.shape_cast %357 : vector<8xf32> to vector<8x1xf32>
    %359 = tpu.reciprocal %358 {approx = true} : vector<8x1xf32> -> vector<8x1xf32>
    %360 = vector.broadcast %359 : vector<8x1xf32> to vector<8x8xf32>
    %361 = arith.mulf %356, %360 : vector<8x8xf32>
    %cst_122 = arith.constant dense<0.000000e+00> : vector<8x8xf32>
    %362 = tpu.matmul %361, %348, %cst_122 {dimension_numbers = #tpu.dot_dimension_numbers<[1], [0], [0], [1], [0, 0, 1, 1], [], []>} : vector<8x8xf32>, vector<8x8xf32>, vector<8x8xf32> -> vector<8x8xf32>
    %363 = vector.extract_strided_slice %272 {offsets = [8, 8], sizes = [8, 8], strides = [1, 1]} : vector<16x32xf32> to vector<8x8xf32>
    %364 = vector.extract_strided_slice %273 {offsets = [8, 8], sizes = [8, 8], strides = [1, 1]} : vector<16x32xf32> to vector<8x8xf32>
    %365 = vector.extract_strided_slice %274 {offsets = [8, 8], sizes = [8, 8], strides = [1, 1]} : vector<16x32xf32> to vector<8x8xf32>
    %cst_123 = arith.constant dense<0.000000e+00> : vector<8x8xf32>
    %366 = tpu.matmul %363, %364, %cst_123 {dimension_numbers = #tpu.dot_dimension_numbers<[1], [1], [0], [0], [0, 0, 1, 0], [], []>} : vector<8x8xf32>, vector<8x8xf32>, vector<8x8xf32> -> vector<8x8xf32>
    %367 = vector.broadcast %345 : vector<1x8xf32> to vector<8x8xf32>
    %368 = arith.addf %366, %367 : vector<8x8xf32>
    %cst_124 = arith.constant dense<0xFF800000> : vector<8xf32>
    %369 = vector.multi_reduction <maximumf>, %368, %cst_124 [1] : vector<8x8xf32> to vector<8xf32>
    %370 = vector.shape_cast %369 : vector<8xf32> to vector<8x1xf32>
    %371 = vector.broadcast %370 : vector<8x1xf32> to vector<8x8xf32>
    %372 = arith.subf %368, %371 : vector<8x8xf32>
    %373 = math.exp %372 : vector<8x8xf32>
    %cst_125 = arith.constant dense<0.000000e+00> : vector<8xf32>
    %374 = vector.multi_reduction <add>, %373, %cst_125 [1] : vector<8x8xf32> to vector<8xf32>
    %375 = vector.shape_cast %374 : vector<8xf32> to vector<8x1xf32>
    %376 = tpu.reciprocal %375 {approx = true} : vector<8x1xf32> -> vector<8x1xf32>
    %377 = vector.broadcast %376 : vector<8x1xf32> to vector<8x8xf32>
    %378 = arith.mulf %373, %377 : vector<8x8xf32>
    %cst_126 = arith.constant dense<0.000000e+00> : vector<8x8xf32>
    %379 = tpu.matmul %378, %365, %cst_126 {dimension_numbers = #tpu.dot_dimension_numbers<[1], [0], [0], [1], [0, 0, 1, 1], [], []>} : vector<8x8xf32>, vector<8x8xf32>, vector<8x8xf32> -> vector<8x8xf32>
    %380 = vector.extract_strided_slice %272 {offsets = [8, 16], sizes = [8, 8], strides = [1, 1]} : vector<16x32xf32> to vector<8x8xf32>
    %381 = vector.extract_strided_slice %273 {offsets = [8, 16], sizes = [8, 8], strides = [1, 1]} : vector<16x32xf32> to vector<8x8xf32>
    %382 = vector.extract_strided_slice %274 {offsets = [8, 16], sizes = [8, 8], strides = [1, 1]} : vector<16x32xf32> to vector<8x8xf32>
    %cst_127 = arith.constant dense<0.000000e+00> : vector<8x8xf32>
    %383 = tpu.matmul %380, %381, %cst_127 {dimension_numbers = #tpu.dot_dimension_numbers<[1], [1], [0], [0], [0, 0, 1, 0], [], []>} : vector<8x8xf32>, vector<8x8xf32>, vector<8x8xf32> -> vector<8x8xf32>
    %384 = vector.broadcast %345 : vector<1x8xf32> to vector<8x8xf32>
    %385 = arith.addf %383, %384 : vector<8x8xf32>
    %cst_128 = arith.constant dense<0xFF800000> : vector<8xf32>
    %386 = vector.multi_reduction <maximumf>, %385, %cst_128 [1] : vector<8x8xf32> to vector<8xf32>
    %387 = vector.shape_cast %386 : vector<8xf32> to vector<8x1xf32>
    %388 = vector.broadcast %387 : vector<8x1xf32> to vector<8x8xf32>
    %389 = arith.subf %385, %388 : vector<8x8xf32>
    %390 = math.exp %389 : vector<8x8xf32>
    %cst_129 = arith.constant dense<0.000000e+00> : vector<8xf32>
    %391 = vector.multi_reduction <add>, %390, %cst_129 [1] : vector<8x8xf32> to vector<8xf32>
    %392 = vector.shape_cast %391 : vector<8xf32> to vector<8x1xf32>
    %393 = tpu.reciprocal %392 {approx = true} : vector<8x1xf32> -> vector<8x1xf32>
    %394 = vector.broadcast %393 : vector<8x1xf32> to vector<8x8xf32>
    %395 = arith.mulf %390, %394 : vector<8x8xf32>
    %cst_130 = arith.constant dense<0.000000e+00> : vector<8x8xf32>
    %396 = tpu.matmul %395, %382, %cst_130 {dimension_numbers = #tpu.dot_dimension_numbers<[1], [0], [0], [1], [0, 0, 1, 1], [], []>} : vector<8x8xf32>, vector<8x8xf32>, vector<8x8xf32> -> vector<8x8xf32>
    %397 = vector.extract_strided_slice %272 {offsets = [8, 24], sizes = [8, 8], strides = [1, 1]} : vector<16x32xf32> to vector<8x8xf32>
    %398 = vector.extract_strided_slice %273 {offsets = [8, 24], sizes = [8, 8], strides = [1, 1]} : vector<16x32xf32> to vector<8x8xf32>
    %399 = vector.extract_strided_slice %274 {offsets = [8, 24], sizes = [8, 8], strides = [1, 1]} : vector<16x32xf32> to vector<8x8xf32>
    %cst_131 = arith.constant dense<0.000000e+00> : vector<8x8xf32>
    %400 = tpu.matmul %397, %398, %cst_131 {dimension_numbers = #tpu.dot_dimension_numbers<[1], [1], [0], [0], [0, 0, 1, 0], [], []>} : vector<8x8xf32>, vector<8x8xf32>, vector<8x8xf32> -> vector<8x8xf32>
    %401 = vector.broadcast %345 : vector<1x8xf32> to vector<8x8xf32>
    %402 = arith.addf %400, %401 : vector<8x8xf32>
    %cst_132 = arith.constant dense<0xFF800000> : vector<8xf32>
    %403 = vector.multi_reduction <maximumf>, %402, %cst_132 [1] : vector<8x8xf32> to vector<8xf32>
    %404 = vector.shape_cast %403 : vector<8xf32> to vector<8x1xf32>
    %405 = vector.broadcast %404 : vector<8x1xf32> to vector<8x8xf32>
    %406 = arith.subf %402, %405 : vector<8x8xf32>
    %407 = math.exp %406 : vector<8x8xf32>
    %cst_133 = arith.constant dense<0.000000e+00> : vector<8xf32>
    %408 = vector.multi_reduction <add>, %407, %cst_133 [1] : vector<8x8xf32> to vector<8xf32>
    %409 = vector.shape_cast %408 : vector<8xf32> to vector<8x1xf32>
    %410 = tpu.reciprocal %409 {approx = true} : vector<8x1xf32> -> vector<8x1xf32>
    %411 = vector.broadcast %410 : vector<8x1xf32> to vector<8x8xf32>
    %412 = arith.mulf %407, %411 : vector<8x8xf32>
    %cst_134 = arith.constant dense<0.000000e+00> : vector<8x8xf32>
    %413 = tpu.matmul %412, %399, %cst_134 {dimension_numbers = #tpu.dot_dimension_numbers<[1], [0], [0], [1], [0, 0, 1, 1], [], []>} : vector<8x8xf32>, vector<8x8xf32>, vector<8x8xf32> -> vector<8x8xf32>
    %414 = tpu.concatenate %362, %379, %396, %413 in 1 : vector<8x8xf32>, vector<8x8xf32>, vector<8x8xf32>, vector<8x8xf32> -> vector<8x32xf32>
    %415 = tpu.concatenate %344, %414 in 0 : vector<8x32xf32>, vector<8x32xf32> -> vector<16x32xf32>
    %c1_135 = arith.constant 1 : index
    %c0_136 = arith.constant 0 : index
    %c0_137 = arith.constant 0 : index
    %416 = vector.load %arg7[%c1_135, %c0_136, %c0_137] : memref<2x32x32xf32, #tpu.memory_space<vmem>>, vector<1x32x32xf32>
    %417 = vector.shape_cast %416 : vector<1x32x32xf32> to vector<32x32xf32>
    %cst_138 = arith.constant dense<0.000000e+00> : vector<16x32xf32>
    %418 = tpu.matmul %415, %417, %cst_138 {dimension_numbers = #tpu.dot_dimension_numbers<[1], [0], [0], [1], [0, 0, 1, 1], [], []>} : vector<16x32xf32>, vector<32x32xf32>, vector<16x32xf32> -> vector<16x32xf32>
    %c1_139 = arith.constant 1 : index
    %c0_140 = arith.constant 0 : index
    %c0_141 = arith.constant 0 : index
    %419 = vector.load %arg8[%c1_139, %c0_140, %c0_141] : memref<2x1x32xf32, #tpu.memory_space<vmem>>, vector<1x1x32xf32>
    %420 = vector.shape_cast %419 : vector<1x1x32xf32> to vector<1x32xf32>
    %421 = vector.broadcast %420 : vector<1x32xf32> to vector<16x32xf32>
    %422 = arith.addf %418, %421 : vector<16x32xf32>
    %423 = arith.addf %264, %422 : vector<16x32xf32>
    %c1_142 = arith.constant 1 : index
    %c0_143 = arith.constant 0 : index
    %c0_144 = arith.constant 0 : index
    %424 = vector.load %arg9[%c1_142, %c0_143, %c0_144] : memref<2x1x32xf32, #tpu.memory_space<vmem>>, vector<1x1x32xf32>
    %425 = vector.shape_cast %424 : vector<1x1x32xf32> to vector<1x32xf32>
    %c1_145 = arith.constant 1 : index
    %c0_146 = arith.constant 0 : index
    %c0_147 = arith.constant 0 : index
    %426 = vector.load %arg10[%c1_145, %c0_146, %c0_147] : memref<2x1x32xf32, #tpu.memory_space<vmem>>, vector<1x1x32xf32>
    %427 = vector.shape_cast %426 : vector<1x1x32xf32> to vector<1x32xf32>
    %cst_148 = arith.constant dense<0.000000e+00> : vector<16xf32>
    %428 = vector.multi_reduction <add>, %423, %cst_148 [1] : vector<16x32xf32> to vector<16xf32>
    %429 = vector.shape_cast %428 : vector<16xf32> to vector<16x1xf32>
    %cst_149 = arith.constant 3.200000e+01 : f32
    %430 = vector.broadcast %cst_149 : f32 to vector<16x1xf32>
    %431 = arith.divf %429, %430 : vector<16x1xf32>
    %432 = vector.broadcast %431 : vector<16x1xf32> to vector<16x32xf32>
    %433 = arith.subf %423, %432 : vector<16x32xf32>
    %434 = arith.mulf %433, %433 : vector<16x32xf32>
    %cst_150 = arith.constant dense<0.000000e+00> : vector<16xf32>
    %435 = vector.multi_reduction <add>, %434, %cst_150 [1] : vector<16x32xf32> to vector<16xf32>
    %436 = vector.shape_cast %435 : vector<16xf32> to vector<16x1xf32>
    %cst_151 = arith.constant 3.200000e+01 : f32
    %437 = vector.broadcast %cst_151 : f32 to vector<16x1xf32>
    %438 = arith.divf %436, %437 : vector<16x1xf32>
    %439 = vector.broadcast %431 : vector<16x1xf32> to vector<16x32xf32>
    %440 = arith.subf %423, %439 : vector<16x32xf32>
    %cst_152 = arith.constant 9.99999996E-13 : f32
    %441 = vector.broadcast %cst_152 : f32 to vector<16x1xf32>
    %442 = arith.addf %438, %441 : vector<16x1xf32>
    %443 = math.rsqrt %442 : vector<16x1xf32>
    %444 = vector.broadcast %443 : vector<16x1xf32> to vector<16x32xf32>
    %445 = arith.mulf %440, %444 : vector<16x32xf32>
    %446 = vector.broadcast %425 : vector<1x32xf32> to vector<16x32xf32>
    %447 = arith.mulf %445, %446 : vector<16x32xf32>
    %448 = vector.broadcast %427 : vector<1x32xf32> to vector<16x32xf32>
    %449 = arith.addf %447, %448 : vector<16x32xf32>
    %c1_153 = arith.constant 1 : index
    %c0_154 = arith.constant 0 : index
    %c0_155 = arith.constant 0 : index
    %450 = vector.load %arg11[%c1_153, %c0_154, %c0_155] : memref<2x32x64xf32, #tpu.memory_space<vmem>>, vector<1x32x64xf32>
    %451 = vector.shape_cast %450 : vector<1x32x64xf32> to vector<32x64xf32>
    %cst_156 = arith.constant dense<0.000000e+00> : vector<16x64xf32>
    %452 = tpu.matmul %449, %451, %cst_156 {dimension_numbers = #tpu.dot_dimension_numbers<[1], [0], [0], [1], [0, 0, 1, 1], [], []>} : vector<16x32xf32>, vector<32x64xf32>, vector<16x64xf32> -> vector<16x64xf32>
    %c1_157 = arith.constant 1 : index
    %c0_158 = arith.constant 0 : index
    %c0_159 = arith.constant 0 : index
    %453 = vector.load %arg12[%c1_157, %c0_158, %c0_159] : memref<2x1x64xf32, #tpu.memory_space<vmem>>, vector<1x1x64xf32>
    %454 = vector.shape_cast %453 : vector<1x1x64xf32> to vector<1x64xf32>
    %455 = vector.broadcast %454 : vector<1x64xf32> to vector<16x64xf32>
    %456 = arith.addf %452, %455 : vector<16x64xf32>
    %457 = arith.mulf %456, %456 : vector<16x64xf32>
    %458 = arith.mulf %456, %457 : vector<16x64xf32>
    %cst_160 = arith.constant 4.471500e-02 : f32
    %459 = vector.broadcast %cst_160 : f32 to vector<16x64xf32>
    %460 = arith.mulf %459, %458 : vector<16x64xf32>
    %461 = arith.addf %456, %460 : vector<16x64xf32>
    %cst_161 = arith.constant 0.797884583 : f32
    %462 = vector.broadcast %cst_161 : f32 to vector<16x64xf32>
    %463 = arith.mulf %462, %461 : vector<16x64xf32>
    %464 = math.tanh %463 : vector<16x64xf32>
    %cst_162 = arith.constant 1.000000e+00 : f32
    %465 = vector.broadcast %cst_162 : f32 to vector<16x64xf32>
    %466 = arith.addf %465, %464 : vector<16x64xf32>
    %cst_163 = arith.constant 5.000000e-01 : f32
    %467 = vector.broadcast %cst_163 : f32 to vector<16x64xf32>
    %468 = arith.mulf %467, %466 : vector<16x64xf32>
    %469 = arith.mulf %456, %468 : vector<16x64xf32>
    %c1_164 = arith.constant 1 : index
    %c0_165 = arith.constant 0 : index
    %c0_166 = arith.constant 0 : index
    %470 = vector.load %arg13[%c1_164, %c0_165, %c0_166] : memref<2x64x32xf32, #tpu.memory_space<vmem>>, vector<1x64x32xf32>
    %471 = vector.shape_cast %470 : vector<1x64x32xf32> to vector<64x32xf32>
    %cst_167 = arith.constant dense<0.000000e+00> : vector<16x32xf32>
    %472 = tpu.matmul %469, %471, %cst_167 {dimension_numbers = #tpu.dot_dimension_numbers<[1], [0], [0], [1], [0, 0, 1, 1], [], []>} : vector<16x64xf32>, vector<64x32xf32>, vector<16x32xf32> -> vector<16x32xf32>
    %c1_168 = arith.constant 1 : index
    %c0_169 = arith.constant 0 : index
    %c0_170 = arith.constant 0 : index
    %473 = vector.load %arg14[%c1_168, %c0_169, %c0_170] : memref<2x1x32xf32, #tpu.memory_space<vmem>>, vector<1x1x32xf32>
    %474 = vector.shape_cast %473 : vector<1x1x32xf32> to vector<1x32xf32>
    %475 = vector.broadcast %474 : vector<1x32xf32> to vector<16x32xf32>
    %476 = arith.addf %472, %475 : vector<16x32xf32>
    %477 = arith.addf %449, %476 : vector<16x32xf32>
    %c1_171 = arith.constant 1 : index
    %c0_172 = arith.constant 0 : index
    %c0_173 = arith.constant 0 : index
    %478 = vector.load %arg15[%c1_171, %c0_172, %c0_173] : memref<2x1x32xf32, #tpu.memory_space<vmem>>, vector<1x1x32xf32>
    %479 = vector.shape_cast %478 : vector<1x1x32xf32> to vector<1x32xf32>
    %c1_174 = arith.constant 1 : index
    %c0_175 = arith.constant 0 : index
    %c0_176 = arith.constant 0 : index
    %480 = vector.load %arg16[%c1_174, %c0_175, %c0_176] : memref<2x1x32xf32, #tpu.memory_space<vmem>>, vector<1x1x32xf32>
    %481 = vector.shape_cast %480 : vector<1x1x32xf32> to vector<1x32xf32>
    %cst_177 = arith.constant dense<0.000000e+00> : vector<16xf32>
    %482 = vector.multi_reduction <add>, %477, %cst_177 [1] : vector<16x32xf32> to vector<16xf32>
    %483 = vector.shape_cast %482 : vector<16xf32> to vector<16x1xf32>
    %cst_178 = arith.constant 3.200000e+01 : f32
    %484 = vector.broadcast %cst_178 : f32 to vector<16x1xf32>
    %485 = arith.divf %483, %484 : vector<16x1xf32>
    %486 = vector.broadcast %485 : vector<16x1xf32> to vector<16x32xf32>
    %487 = arith.subf %477, %486 : vector<16x32xf32>
    %488 = arith.mulf %487, %487 : vector<16x32xf32>
    %cst_179 = arith.constant dense<0.000000e+00> : vector<16xf32>
    %489 = vector.multi_reduction <add>, %488, %cst_179 [1] : vector<16x32xf32> to vector<16xf32>
    %490 = vector.shape_cast %489 : vector<16xf32> to vector<16x1xf32>
    %cst_180 = arith.constant 3.200000e+01 : f32
    %491 = vector.broadcast %cst_180 : f32 to vector<16x1xf32>
    %492 = arith.divf %490, %491 : vector<16x1xf32>
    %493 = vector.broadcast %485 : vector<16x1xf32> to vector<16x32xf32>
    %494 = arith.subf %477, %493 : vector<16x32xf32>
    %cst_181 = arith.constant 9.99999996E-13 : f32
    %495 = vector.broadcast %cst_181 : f32 to vector<16x1xf32>
    %496 = arith.addf %492, %495 : vector<16x1xf32>
    %497 = math.rsqrt %496 : vector<16x1xf32>
    %498 = vector.broadcast %497 : vector<16x1xf32> to vector<16x32xf32>
    %499 = arith.mulf %494, %498 : vector<16x32xf32>
    %500 = vector.broadcast %479 : vector<1x32xf32> to vector<16x32xf32>
    %501 = arith.mulf %499, %500 : vector<16x32xf32>
    %502 = vector.broadcast %481 : vector<1x32xf32> to vector<16x32xf32>
    %503 = arith.addf %501, %502 : vector<16x32xf32>
    %504 = vector.extract_strided_slice %503 {offsets = [0, 0], sizes = [1, 32], strides = [1, 1]} : vector<16x32xf32> to vector<1x32xf32>
    %505 = vector.extract_strided_slice %503 {offsets = [8, 0], sizes = [1, 32], strides = [1, 1]} : vector<16x32xf32> to vector<1x32xf32>
    %506 = tpu.concatenate %504, %505 in 0 : vector<1x32xf32>, vector<1x32xf32> -> vector<2x32xf32>
    %c0_182 = arith.constant 0 : index
    %c0_183 = arith.constant 0 : index
    %507 = vector.load %arg17[%c0_182, %c0_183] : memref<32x32xf32, #tpu.memory_space<vmem>>, vector<32x32xf32>
    %cst_184 = arith.constant dense<0.000000e+00> : vector<2x32xf32>
    %508 = tpu.matmul %506, %507, %cst_184 {dimension_numbers = #tpu.dot_dimension_numbers<[1], [0], [0], [1], [0, 0, 1, 1], [], []>} : vector<2x32xf32>, vector<32x32xf32>, vector<2x32xf32> -> vector<2x32xf32>
    %c0_185 = arith.constant 0 : index
    %c0_186 = arith.constant 0 : index
    %509 = vector.load %arg18[%c0_185, %c0_186] : memref<1x32xf32, #tpu.memory_space<vmem>>, vector<1x32xf32>
    %510 = vector.broadcast %509 : vector<1x32xf32> to vector<2x32xf32>
    %511 = arith.addf %508, %510 : vector<2x32xf32>
    %512 = math.tanh %511 : vector<2x32xf32>
    %c0_187 = arith.constant 0 : index
    %c0_188 = arith.constant 0 : index
    %513 = vector.load %arg19[%c0_187, %c0_188] : memref<32x128xf32, #tpu.memory_space<vmem>>, vector<32x128xf32>
    %cst_189 = arith.constant dense<0.000000e+00> : vector<2x128xf32>
    %514 = tpu.matmul %512, %513, %cst_189 {dimension_numbers = #tpu.dot_dimension_numbers<[1], [0], [0], [1], [0, 0, 1, 1], [], []>} : vector<2x32xf32>, vector<32x128xf32>, vector<2x128xf32> -> vector<2x128xf32>
    %c0_190 = arith.constant 0 : index
    %c0_191 = arith.constant 0 : index
    %515 = vector.load %arg20[%c0_190, %c0_191] : memref<1x128xf32, #tpu.memory_space<vmem>>, vector<1x128xf32>
    %516 = vector.broadcast %515 : vector<1x128xf32> to vector<2x128xf32>
    %517 = arith.addf %514, %516 : vector<2x128xf32>
    %c0_192 = arith.constant 0 : index
    %c0_193 = arith.constant 0 : index
    %518 = vector.load %arg21[%c0_192, %c0_193] : memref<2x128xf32, #tpu.memory_space<vmem>>, vector<2x128xf32>
    tpu.vector_store %arg21[%c0_192, %c0_193], %517 {strides = array<i32>} : memref<2x128xf32, #tpu.memory_space<vmem>>, vector<2x128xf32>,
    return
  }
  func.func @transform_0(%arg0: i32) -> (i32, i32) {
    %c0_i32 = arith.constant 0 : i32
    %c0_i32_0 = arith.constant 0 : i32
    %c0_i32_1 = arith.constant 0 : i32
    return %c0_i32, %c0_i32_0 : i32, i32
  }
  func.func @transform_1(%arg0: i32) -> (i32, i32) {
    %c0_i32 = arith.constant 0 : i32
    %c0_i32_0 = arith.constant 0 : i32
    %c0_i32_1 = arith.constant 0 : i32
    return %c0_i32, %c0_i32_0 : i32, i32
  }
  func.func @transform_2(%arg0: i32) -> (i32, i32) {
    %c0_i32 = arith.constant 0 : i32
    %c0_i32_0 = arith.constant 0 : i32
    %c0_i32_1 = arith.constant 0 : i32
    return %c0_i32, %c0_i32_0 : i32, i32
  }
  func.func @transform_3(%arg0: i32) -> (i32, i32) {
    %c0_i32 = arith.constant 0 : i32
    %c0_i32_0 = arith.constant 0 : i32
    %c0_i32_1 = arith.constant 0 : i32
    return %c0_i32, %c0_i32_0 : i32, i32
  }
  func.func @transform_4(%arg0: i32) -> (i32, i32, i32) {
    %c0_i32 = arith.constant 0 : i32
    %c0_i32_0 = arith.constant 0 : i32
    %c0_i32_1 = arith.constant 0 : i32
    %c0_i32_2 = arith.constant 0 : i32
    return %c0_i32, %c0_i32_0, %c0_i32_1 : i32, i32, i32
  }
  func.func @transform_5(%arg0: i32) -> (i32, i32, i32) {
    %c0_i32 = arith.constant 0 : i32
    %c0_i32_0 = arith.constant 0 : i32
    %c0_i32_1 = arith.constant 0 : i32
    %c0_i32_2 = arith.constant 0 : i32
    return %c0_i32, %c0_i32_0, %c0_i32_1 : i32, i32, i32
  }
  func.func @transform_6(%arg0: i32) -> (i32, i32, i32) {
    %c0_i32 = arith.constant 0 : i32
    %c0_i32_0 = arith.constant 0 : i32
    %c0_i32_1 = arith.constant 0 : i32
    %c0_i32_2 = arith.constant 0 : i32
    return %c0_i32, %c0_i32_0, %c0_i32_1 : i32, i32, i32
  }
  func.func @transform_7(%arg0: i32) -> (i32, i32, i32) {
    %c0_i32 = arith.constant 0 : i32
    %c0_i32_0 = arith.constant 0 : i32
    %c0_i32_1 = arith.constant 0 : i32
    %c0_i32_2 = arith.constant 0 : i32
    return %c0_i32, %c0_i32_0, %c0_i32_1 : i32, i32, i32
  }
  func.func @transform_8(%arg0: i32) -> (i32, i32, i32) {
    %c0_i32 = arith.constant 0 : i32
    %c0_i32_0 = arith.constant 0 : i32
    %c0_i32_1 = arith.constant 0 : i32
    %c0_i32_2 = arith.constant 0 : i32
    return %c0_i32, %c0_i32_0, %c0_i32_1 : i32, i32, i32
  }
  func.func @transform_9(%arg0: i32) -> (i32, i32, i32) {
    %c0_i32 = arith.constant 0 : i32
    %c0_i32_0 = arith.constant 0 : i32
    %c0_i32_1 = arith.constant 0 : i32
    %c0_i32_2 = arith.constant 0 : i32
    return %c0_i32, %c0_i32_0, %c0_i32_1 : i32, i32, i32
  }
  func.func @transform_10(%arg0: i32) -> (i32, i32, i32) {
    %c0_i32 = arith.constant 0 : i32
    %c0_i32_0 = arith.constant 0 : i32
    %c0_i32_1 = arith.constant 0 : i32
    %c0_i32_2 = arith.constant 0 : i32
    return %c0_i32, %c0_i32_0, %c0_i32_1 : i32, i32, i32
  }
  func.func @transform_11(%arg0: i32) -> (i32, i32, i32) {
    %c0_i32 = arith.constant 0 : i32
    %c0_i32_0 = arith.constant 0 : i32
    %c0_i32_1 = arith.constant 0 : i32
    %c0_i32_2 = arith.constant 0 : i32
    return %c0_i32, %c0_i32_0, %c0_i32_1 : i32, i32, i32
  }
  func.func @transform_12(%arg0: i32) -> (i32, i32, i32) {
    %c0_i32 = arith.constant 0 : i32
    %c0_i32_0 = arith.constant 0 : i32
    %c0_i32_1 = arith.constant 0 : i32
    %c0_i32_2 = arith.constant 0 : i32
    return %c0_i32, %c0_i32_0, %c0_i32_1 : i32, i32, i32
  }
  func.func @transform_13(%arg0: i32) -> (i32, i32, i32) {
    %c0_i32 = arith.constant 0 : i32
    %c0_i32_0 = arith.constant 0 : i32
    %c0_i32_1 = arith.constant 0 : i32
    %c0_i32_2 = arith.constant 0 : i32
    return %c0_i32, %c0_i32_0, %c0_i32_1 : i32, i32, i32
  }
  func.func @transform_14(%arg0: i32) -> (i32, i32, i32) {
    %c0_i32 = arith.constant 0 : i32
    %c0_i32_0 = arith.constant 0 : i32
    %c0_i32_1 = arith.constant 0 : i32
    %c0_i32_2 = arith.constant 0 : i32
    return %c0_i32, %c0_i32_0, %c0_i32_1 : i32, i32, i32
  }
  func.func @transform_15(%arg0: i32) -> (i32, i32, i32) {
    %c0_i32 = arith.constant 0 : i32
    %c0_i32_0 = arith.constant 0 : i32
    %c0_i32_1 = arith.constant 0 : i32
    %c0_i32_2 = arith.constant 0 : i32
    return %c0_i32, %c0_i32_0, %c0_i32_1 : i32, i32, i32
  }
  func.func @transform_16(%arg0: i32) -> (i32, i32) {
    %c0_i32 = arith.constant 0 : i32
    %c0_i32_0 = arith.constant 0 : i32
    %c0_i32_1 = arith.constant 0 : i32
    return %c0_i32, %c0_i32_0 : i32, i32
  }
  func.func @transform_17(%arg0: i32) -> (i32, i32) {
    %c0_i32 = arith.constant 0 : i32
    %c0_i32_0 = arith.constant 0 : i32
    %c0_i32_1 = arith.constant 0 : i32
    return %c0_i32, %c0_i32_0 : i32, i32
  }
  func.func @transform_18(%arg0: i32) -> (i32, i32) {
    %c0_i32 = arith.constant 0 : i32
    %c0_i32_0 = arith.constant 0 : i32
    %c0_i32_1 = arith.constant 0 : i32
    return %c0_i32, %c0_i32_0 : i32, i32
  }
  func.func @transform_19(%arg0: i32) -> (i32, i32) {
    %c0_i32 = arith.constant 0 : i32
    %c0_i32_0 = arith.constant 0 : i32
    %c0_i32_1 = arith.constant 0 : i32
    return %c0_i32, %c0_i32_0 : i32, i32
  }
  func.func @transform_20(%arg0: i32) -> (i32, i32) {
    %c0_i32 = arith.constant 0 : i32
    %c0_i32_0 = arith.constant 0 : i32
    %c0_i32_1 = arith.constant 0 : i32
    return %c0_i32, %c0_i32_0 : i32, i32
  }
}

</mosaic_0001>

<bundles_post_ra>
// kernel: tpu_custom_call.1
= control target key start
LH: loop header
LB: loop body
LE: loop exit
PB: predicated region body
PF: predicated region fallthrough
CT: control target
= control target key end

     0   :  { %s6138_s0 = inlined_call_operand.hbm [shape: f32[16,32], index: 0, kind: input, shape index: {}]   ;;  %s6139_s1 = inlined_call_operand.hbm [shape: f32[2,8], index: 1, kind: input, shape index: {}]   ;;  %s6140_s2 = inlined_call_operand.hbm [shape: f32[1,32], index: 2, kind: input, shape index: {}]   ;;  %s6141_s3 = inlined_call_operand.hbm [shape: f32[1,32], index: 3, kind: input, shape index: {}]   ;;  %s6142_s4 = inlined_call_operand.vmem [shape: f32[2,32,96], index: 4, kind: input, shape index: {}]   ;;  %s6143_s5 = inlined_call_operand.hbm [shape: f32[2,1,96], index: 5, kind: input, shape index: {}]   ;;  %s6144_s6 = inlined_call_operand.vmem [shape: f32[2,32,32], index: 6, kind: input, shape index: {}]   ;;  %s6145_s7 = inlined_call_operand.hbm [shape: f32[2,1,32], index: 7, kind: input, shape index: {}]   ;;  %s6146_s8 = inlined_call_operand.hbm [shape: f32[2,1,32], index: 8, kind: input, shape index: {}]   ;;  %s6147_s9 = inlined_call_operand.hbm [shape: f32[2,1,32], index: 9, kind: input, shape index: {}]   ;;  %s6148_s10 = inlined_call_operand.vmem [shape: f32[2,32,64], index: 10, kind: input, shape index: {}]   ;;  %s6149_s11 = inlined_call_operand.hbm [shape: f32[2,1,64], index: 11, kind: input, shape index: {}]   ;;  %s6150_s12 = inlined_call_operand.vmem [shape: f32[2,64,32], index: 12, kind: input, shape index: {}]   ;;  %s6151_s13 = inlined_call_operand.hbm [shape: f32[2,1,32], index: 13, kind: input, shape index: {}]   ;;  %s6152_s14 = inlined_call_operand.hbm [shape: f32[2,1,32], index: 14, kind: input, shape index: {}]   ;;  %s6153_s15 = inlined_call_operand.hbm [shape: f32[2,1,32], index: 15, kind: input, shape index: {}]   ;;  %s6154_s16 = inlined_call_operand.vmem [shape: f32[32,32], index: 16, kind: input, shape index: {}]   ;;  %s6155_s17 = inlined_call_operand.hbm [shape: f32[1,32], index: 17, kind: input, shape index: {}]   ;;  %s6156_s18 = inlined_call_operand.vmem [shape: f32[32,128], index: 18, kind: input, shape index: {}]   ;;  %s6157_s19 = inlined_call_operand.vmem [shape: f32[1,128], index: 19, kind: input, shape index: {}]   ;;  %s6158_s20 = inlined_call_operand.hbm [shape: f32[2,128], index: 20, kind: output, shape index: {}]  }
   0x1   :  { %6166 = sst [smem:[#allocation32_spill]] %s6138_s0 }
   0x2   :  { %6167 = sst [smem:[#allocation33_spill]] %s6139_s1 }
   0x3   :  { %6168 = sst [smem:[#allocation34_spill]] %s6140_s2 }
   0x4   :  { %6169 = sst [smem:[#allocation35_spill]] %s6141_s3 }
   0x5   :  { %6170 = sst [smem:[#allocation36_spill]] %s6142_s4 }
   0x6   :  { %25 = vsyncpa [#allocation3], 0 }
   0x7   :  { %26 = vsyncpa [#allocation6], 0 }
   0x8   :  { %27 = vsyncpa [#allocation9], 0 }
   0x9   :  { %28 = vsyncpa [#allocation12], 0 }
   0xa   :  { %29 = vsyncpa [#allocation15], 0 }
   0xb   :  { %30 = vsyncpa [#allocation18], 0 }
   0xc   :  { %31 = vsyncpa [#allocation21], 0 }
   0xd   :  { %32 = vsyncpa [#allocation4], 0  ;;  %s5228_s1 = smov [#allocation5]   ;;  %s5229_s23 = smov [#allocation8]  }
   0xe   :  { %s51_s22 = sshll.u32 %s5228_s1, 4  ;;  %s71_s24 = sshll.u32 %s5229_s23, 4  ;;  %s52_s22 = int_to_ptr.vmem [resolvable:$true] %s51_s22  ;;  %s72_s24 = int_to_ptr.vmem [resolvable:$true] %s71_s24 }
   0xf   :  { %s6171_s3 = sld [smem:[#allocation33_spill]] }
  0x15   :  { %s4904_s26 = scalar_lea.hbm %s6171_s3, 32 }
  0x16   :  { %p4905_p0 = scmp.ne.s32.totalorder %s6171_s3, %s4904_s26  ;;  %p4908_p1 = scmp.lt.u32.totalorder %s4904_s26, %s6171_s3 }
  0x18   :  { %p4910_p2 = pnand %p4908_p1, %p4905_p0 }
  0x1a   :  { %4913 = shalt.err (!%p4910_p2)
}
  0x1b   :  { %s4914_s30 = scalar_lea.vmem %s52_s22, 32  ;;  %p4919_p4 = scmp.lt.s32.totalorder %s52_s22, %s52_s22 }
  0x1c   :  { %p4915_p3 = scmp.ne.s32.totalorder %s52_s22, %s4914_s30  ;;  %p4920_p5 = scmp.lt.s32.totalorder %s4914_s30, %s4914_s30 }
  0x1e   :  { %p4921_p6 = por %p4920_p5, %p4919_p4 }
  0x20   :  { %p4922_p7 = pnand %p4921_p6, %p4915_p3 }
  0x22   :  { %4925 = shalt.err (!%p4922_p7)
}
  0x23   :  { %54 = dma.hbm_to_vmem [thread:$0]  %s6171_s3, 32, %s52_s22, [#allocation6]  }
  0x24   :  { %s6172_s2 = sld [smem:[#allocation35_spill]] }
  0x2a   :  { %s4926_s25 = scalar_lea.hbm %s6172_s2, 16 }
  0x2b   :  { %p4927_p8 = scmp.ne.s32.totalorder %s6172_s2, %s4926_s25  ;;  %p4930_p9 = scmp.lt.u32.totalorder %s4926_s25, %s6172_s2 }
  0x2d   :  { %p4932_p10 = pnand %p4930_p9, %p4927_p8 }
  0x2f   :  { %4935 = shalt.err (!%p4932_p10)
}
  0x30   :  { %s4936_s29 = scalar_lea.vmem %s72_s24, 16  ;;  %s4940_s30 = scalar_lea.vmem %s72_s24, 32 }
  0x31   :  { %p4937_p11 = scmp.ne.s32.totalorder %s72_s24, %s4936_s29  ;;  %p4941_p12 = scmp.lt.s32.totalorder %s72_s24, %s72_s24 }
  0x32   :  { %p4942_p13 = scmp.lt.s32.totalorder %s4940_s30, %s4936_s29 }
  0x34   :  { %p4943_p0 = por %p4942_p13, %p4941_p12 }
  0x36   :  { %p4944_p1 = pnand %p4943_p0, %p4937_p11 }
  0x38   :  { %4947 = shalt.err (!%p4944_p1)
}
  0x39   :  { %74 = dma.hbm_to_vmem [thread:$0]  %s6172_s2, 16, %s72_s24, [#allocation9]  }
  0x3a   :  { %s5230_s0 = smov [#allocation11]   ;;  %s5231_s1 = smov [#allocation14]  }
  0x3b   :  { %s96_s21 = sshll.u32 %s5230_s0, 4  ;;  %s120_s23 = sshll.u32 %s5231_s1, 4  ;;  %s97_s21 = int_to_ptr.vmem [resolvable:$true] %s96_s21  ;;  %s5390_s23 = int_to_ptr.vmem [resolvable:$true] %s120_s23 }
  0x3c   :  { %s4948_s28 = scalar_lea.hbm %s6145_s7, 32 }
  0x3d   :  { %p4949_p2 = scmp.ne.s32.totalorder %s6145_s7, %s4948_s28  ;;  %p4952_p3 = scmp.lt.u32.totalorder %s4948_s28, %s6145_s7 }
  0x3f   :  { %p4954_p4 = pnand %p4952_p3, %p4949_p2 }
  0x41   :  { %4957 = shalt.err (!%p4954_p4)
}
  0x42   :  { %s4958_s24 = scalar_lea.vmem %s97_s21, 32  ;;  %p4963_p6 = scmp.lt.s32.totalorder %s97_s21, %s97_s21 }
  0x43   :  { %p4959_p5 = scmp.ne.s32.totalorder %s97_s21, %s4958_s24  ;;  %p4964_p7 = scmp.lt.s32.totalorder %s4958_s24, %s4958_s24 }
  0x45   :  { %p4965_p8 = por %p4964_p7, %p4963_p6 }
  0x47   :  { %p4966_p9 = pnand %p4965_p8, %p4959_p5 }
  0x49   :  { %4969 = shalt.err (!%p4966_p9)
}
  0x4a   :  { %s6164_s2 = smov 16   ;;  %s5233_s22 = smov 1  }
  0x4b   :  { %102 = dma.hbm_to_vmem [thread:$0]  %s6145_s7, 32, %s97_s21, [#allocation12], %s6164_s2, %s6164_s2, %s5233_s22  }
  0x4c   :  { %s4970_s27 = scalar_lea.hbm %s6147_s9, 32 }
  0x4d   :  { %p4971_p10 = scmp.ne.s32.totalorder %s6147_s9, %s4970_s27  ;;  %p4974_p11 = scmp.lt.u32.totalorder %s4970_s27, %s6147_s9 }
  0x4f   :  { %p4976_p12 = pnand %p4974_p11, %p4971_p10 }
  0x51   :  { %4979 = shalt.err (!%p4976_p12)
}
  0x52   :  { %s4980_s30 = scalar_lea.vmem %s5390_s23, 32  ;;  %p4985_p0 = scmp.lt.s32.totalorder %s5390_s23, %s5390_s23 }
  0x53   :  { %p4981_p13 = scmp.ne.s32.totalorder %s5390_s23, %s4980_s30  ;;  %p4986_p1 = scmp.lt.s32.totalorder %s4980_s30, %s4980_s30 }
  0x55   :  { %p4987_p2 = por %p4986_p1, %p4985_p0 }
  0x57   :  { %p4988_p3 = pnand %p4987_p2, %p4981_p13 }
  0x59   :  { %4991 = shalt.err (!%p4988_p3)
}
  0x5a   :  { %126 = dma.hbm_to_vmem [thread:$0]  %s6147_s9, 32, %s5390_s23, [#allocation15], %s6164_s2, %s6164_s2, %s5233_s22  }
  0x5b   :  { %s5234_s24 = smov [#allocation17]   ;;  %s5235_s0 = smov [#allocation20]  }
  0x5c   :  { %s148_s3 = sshll.u32 %s5234_s24, 4  ;;  %s172_s1 = sshll.u32 %s5235_s0, 4  ;;  %s149_s3 = int_to_ptr.vmem [resolvable:$true] %s148_s3  ;;  %s5427_s1 = int_to_ptr.vmem [resolvable:$true] %s172_s1 }
  0x5d   :  { %s4992_s28 = scalar_lea.hbm %s6151_s13, 32 }
  0x5e   :  { %p4993_p4 = scmp.ne.s32.totalorder %s6151_s13, %s4992_s28  ;;  %p4996_p5 = scmp.lt.u32.totalorder %s4992_s28, %s6151_s13 }
  0x60   :  { %p4998_p6 = pnand %p4996_p5, %p4993_p4 }
  0x62   :  { %5001 = shalt.err (!%p4998_p6)
}
  0x63   :  { %s5002_s9 = scalar_lea.vmem %s149_s3, 32  ;;  %p5007_p8 = scmp.lt.s32.totalorder %s149_s3, %s149_s3 }
  0x64   :  { %p5003_p7 = scmp.ne.s32.totalorder %s149_s3, %s5002_s9  ;;  %p5008_p9 = scmp.lt.s32.totalorder %s5002_s9, %s5002_s9 }
  0x66   :  { %p5009_p10 = por %p5008_p9, %p5007_p8 }
  0x68   :  { %p5010_p11 = pnand %p5009_p10, %p5003_p7 }
  0x6a   :  { %5013 = shalt.err (!%p5010_p11)
}
  0x6b   :  { %154 = dma.hbm_to_vmem [thread:$0]  %s6151_s13, 32, %s149_s3, [#allocation18], %s6164_s2, %s6164_s2, %s5233_s22  }
  0x6c   :  { %s5014_s0 = scalar_lea.hbm %s6153_s15, 32 }
  0x6d   :  { %p5015_p12 = scmp.ne.s32.totalorder %s6153_s15, %s5014_s0  ;;  %p5018_p13 = scmp.lt.u32.totalorder %s5014_s0, %s6153_s15 }
  0x6f   :  { %p5020_p0 = pnand %p5018_p13, %p5015_p12 }
  0x71   :  { %5023 = shalt.err (!%p5020_p0)
}
  0x72   :  { %s5024_s4 = scalar_lea.vmem %s5427_s1, 32  ;;  %p5029_p2 = scmp.lt.s32.totalorder %s5427_s1, %s5427_s1 }
  0x73   :  { %p5025_p1 = scmp.ne.s32.totalorder %s5427_s1, %s5024_s4  ;;  %p5030_p3 = scmp.lt.s32.totalorder %s5024_s4, %s5024_s4 }
  0x75   :  { %p5031_p4 = por %p5030_p3, %p5029_p2 }
  0x77   :  { %p5032_p5 = pnand %p5031_p4, %p5025_p1 }
  0x79   :  { %5035 = shalt.err (!%p5032_p5)
}
  0x7a   :  { %178 = dma.hbm_to_vmem [thread:$0]  %s6153_s15, 32, %s5427_s1, [#allocation21], %s6164_s2, %s6164_s2, %s5233_s22  }
  0x7b   :  { %s5236_s29 = smov [#allocation2]   ;;  %s6173_s7 = sld [smem:[#allocation32_spill]] }
  0x7c   :  { %s38_s30 = sshll.u32 %s5236_s29, 4  ;;  %s39_s30 = int_to_ptr.vmem [resolvable:$true] %s38_s30 }
  0x81   :  { %s5036_s21 = scalar_lea.hbm %s6173_s7, 256 }
  0x82   :  { %p5037_p6 = scmp.ne.s32.totalorder %s6173_s7, %s5036_s21  ;;  %p5040_p7 = scmp.lt.u32.totalorder %s5036_s21, %s6173_s7 }
  0x84   :  { %p5042_p8 = pnand %p5040_p7, %p5037_p6 }
  0x86   :  { %5045 = shalt.err (!%p5042_p8)
}
  0x87   :  { %s5046_s28 = scalar_lea.vmem %s39_s30, 256  ;;  %p5051_p10 = scmp.lt.s32.totalorder %s39_s30, %s39_s30 }
  0x88   :  { %p5047_p9 = scmp.ne.s32.totalorder %s39_s30, %s5046_s28  ;;  %p5052_p11 = scmp.lt.s32.totalorder %s5046_s28, %s5046_s28 }
  0x8a   :  { %p5053_p12 = por %p5052_p11, %p5051_p10 }
  0x8c   :  { %p5054_p13 = pnand %p5053_p12, %p5047_p9 }
  0x8e   :  { %5057 = shalt.err (!%p5054_p13)
}
  0x8f   :  { %s5237_s15 = smov 128   ;;  %s5238_s1 = smov 8  }
  0x90   :  { %44 = dma.hbm_to_vmem [thread:$0]  %s6173_s7, 256, %s39_s30, [#allocation3], %s5237_s15, %s5237_s15, %s5238_s1  }
  0x91   :  { %s5239_s13 = smov [#allocation7]   ;;  %s5240_s29 = smov [#allocation10]  }
  0x92   :  { %s61_s3 = sshll.u32 %s5239_s13, 4  ;;  %s82_s9 = sshll.u32 %s5240_s29, 4  ;;  %s62_s3 = int_to_ptr.vmem [resolvable:$true] %s61_s3  ;;  %s83_s9 = int_to_ptr.vmem [resolvable:$true] %s82_s9 }
  0x93   :  { %s6174_s24 = sld [smem:[#allocation34_spill]] }
  0x99   :  { %s5058_s0 = scalar_lea.hbm %s6174_s24, 16 }
  0x9a   :  { %p5059_p0 = scmp.ne.s32.totalorder %s6174_s24, %s5058_s0  ;;  %p5062_p1 = scmp.lt.u32.totalorder %s5058_s0, %s6174_s24 }
  0x9c   :  { %p5064_p2 = pnand %p5062_p1, %p5059_p0 }
  0x9e   :  { %5067 = shalt.err (!%p5064_p2)
}
  0x9f   :  { %s5068_s30 = scalar_lea.vmem %s62_s3, 16  ;;  %s5072_s7 = scalar_lea.vmem %s62_s3, 32 }
  0xa0   :  { %p5069_p3 = scmp.ne.s32.totalorder %s62_s3, %s5068_s30  ;;  %p5073_p4 = scmp.lt.s32.totalorder %s62_s3, %s62_s3 }
  0xa1   :  { %p5074_p5 = scmp.lt.s32.totalorder %s5072_s7, %s5068_s30 }
  0xa3   :  { %p5075_p6 = por %p5074_p5, %p5073_p4 }
  0xa5   :  { %p5076_p7 = pnand %p5075_p6, %p5069_p3 }
  0xa7   :  { %5079 = shalt.err (!%p5076_p7)
}
  0xa8   :  { %64 = dma.hbm_to_vmem [thread:$0]  %s6174_s24, 16, %s62_s3, [#allocation6]  }
  0xa9   :  { %s5080_s2 = scalar_lea.hbm %s6143_s5, 32 }
  0xaa   :  { %p5081_p8 = scmp.ne.s32.totalorder %s6143_s5, %s5080_s2  ;;  %p5084_p9 = scmp.lt.u32.totalorder %s5080_s2, %s6143_s5 }
  0xac   :  { %p5086_p10 = pnand %p5084_p9, %p5081_p8 }
  0xae   :  { %5089 = shalt.err (!%p5086_p10)
}
  0xaf   :  { %s5090_s25 = scalar_lea.vmem %s83_s9, 32  ;;  %p5095_p12 = scmp.lt.s32.totalorder %s83_s9, %s83_s9 }
  0xb0   :  { %p5091_p11 = scmp.ne.s32.totalorder %s83_s9, %s5090_s25  ;;  %p5096_p13 = scmp.lt.s32.totalorder %s5090_s25, %s5090_s25 }
  0xb2   :  { %p5097_p0 = por %p5096_p13, %p5095_p12 }
  0xb4   :  { %p5098_p1 = pnand %p5097_p0, %p5091_p11 }
  0xb6   :  { %5101 = shalt.err (!%p5098_p1)
}
  0xb7   :  { %s6175_s3 = smov 16   ;;  %s5241_s28 = smov [#allocation13]  }
  0xb8   :  { %88 = dma.hbm_to_vmem [thread:$0]  %s6143_s5, 32, %s83_s9, [#allocation9], %s6175_s3, %s6175_s3, %s5233_s22  }
  0xb9   :  { %s108_s30 = sshll.u32 %s5241_s28, 4  ;;  %s5242_s7 = smov [#allocation16]   ;;  %s109_s30 = int_to_ptr.vmem [resolvable:$true] %s108_s30 }
  0xba   :  { %s134_s15 = sshll.u32 %s5242_s7, 4  ;;  %s5102_s13 = scalar_lea.hbm %s6146_s8, 32  ;;  %s135_s15 = int_to_ptr.vmem [resolvable:$true] %s134_s15 }
  0xbb   :  { %p5103_p2 = scmp.ne.s32.totalorder %s6146_s8, %s5102_s13  ;;  %p5106_p3 = scmp.lt.u32.totalorder %s5102_s13, %s6146_s8 }
  0xbd   :  { %p5108_p4 = pnand %p5106_p3, %p5103_p2 }
  0xbf   :  { %5111 = shalt.err (!%p5108_p4)
}
  0xc0   :  { %s5112_s5 = scalar_lea.vmem %s109_s30, 32  ;;  %p5117_p6 = scmp.lt.s32.totalorder %s109_s30, %s109_s30 }
  0xc1   :  { %p5113_p5 = scmp.ne.s32.totalorder %s109_s30, %s5112_s5  ;;  %p5118_p7 = scmp.lt.s32.totalorder %s5112_s5, %s5112_s5 }
  0xc3   :  { %p5119_p8 = por %p5118_p7, %p5117_p6 }
  0xc5   :  { %p5120_p9 = pnand %p5119_p8, %p5113_p5 }
  0xc7   :  { %5123 = shalt.err (!%p5120_p9)
}
  0xc8   :  { %114 = dma.hbm_to_vmem [thread:$0]  %s6146_s8, 32, %s109_s30, [#allocation12], %s6175_s3, %s6175_s3, %s5233_s22  }
  0xc9   :  { %s5124_s27 = scalar_lea.hbm %s6149_s11, 32 }
  0xca   :  { %p5125_p10 = scmp.ne.s32.totalorder %s6149_s11, %s5124_s27  ;;  %p5128_p11 = scmp.lt.u32.totalorder %s5124_s27, %s6149_s11 }
  0xcc   :  { %p5130_p12 = pnand %p5128_p11, %p5125_p10 }
  0xce   :  { %5133 = shalt.err (!%p5130_p12)
}
  0xcf   :  { %s5134_s13 = scalar_lea.vmem %s135_s15, 32  ;;  %p5139_p0 = scmp.lt.s32.totalorder %s135_s15, %s135_s15 }
  0xd0   :  { %p5135_p13 = scmp.ne.s32.totalorder %s135_s15, %s5134_s13  ;;  %p5140_p1 = scmp.lt.s32.totalorder %s5134_s13, %s5134_s13 }
  0xd2   :  { %p5141_p2 = por %p5140_p1, %p5139_p0 }
  0xd4   :  { %p5142_p3 = pnand %p5141_p2, %p5135_p13 }
  0xd6   :  { %5145 = shalt.err (!%p5142_p3)
}
  0xd7   :  { %140 = dma.hbm_to_vmem [thread:$0]  %s6149_s11, 32, %s135_s15, [#allocation15], %s6175_s3, %s6175_s3, %s5233_s22  }
  0xd8   :  { %s5243_s2 = smov [#allocation19]   ;;  %s5244_s23 = smov [#allocation22]  }
  0xd9   :  { %s160_s29 = sshll.u32 %s5243_s2, 4  ;;  %s187_s21 = sshll.u32 %s5244_s23, 4  ;;  %s161_s29 = int_to_ptr.vmem [resolvable:$true] %s160_s29  ;;  %s188_s21 = int_to_ptr.vmem [resolvable:$true] %s187_s21 }
  0xda   :  { %s5146_s0 = scalar_lea.hbm %s6152_s14, 32 }
  0xdb   :  { %p5147_p4 = scmp.ne.s32.totalorder %s6152_s14, %s5146_s0  ;;  %p5150_p5 = scmp.lt.u32.totalorder %s5146_s0, %s6152_s14 }
  0xdd   :  { %p5152_p6 = pnand %p5150_p5, %p5147_p4 }
  0xdf   :  { %5155 = shalt.err (!%p5152_p6)
}
  0xe0   :  { %s5156_s11 = scalar_lea.vmem %s161_s29, 32  ;;  %p5161_p8 = scmp.lt.s32.totalorder %s161_s29, %s161_s29 }
  0xe1   :  { %p5157_p7 = scmp.ne.s32.totalorder %s161_s29, %s5156_s11  ;;  %p5162_p9 = scmp.lt.s32.totalorder %s5156_s11, %s5156_s11 }
  0xe3   :  { %p5163_p10 = por %p5162_p9, %p5161_p8 }
  0xe5   :  { %p5164_p11 = pnand %p5163_p10, %p5157_p7 }
  0xe7   :  { %5167 = shalt.err (!%p5164_p11)
}
  0xe8   :  { %166 = dma.hbm_to_vmem [thread:$0]  %s6152_s14, 32, %s161_s29, [#allocation18], %s6175_s3, %s6175_s3, %s5233_s22  }
  0xe9   :  { %s5168_s13 = scalar_lea.hbm %s6155_s17, 16 }
  0xea   :  { %p5169_p12 = scmp.ne.s32.totalorder %s6155_s17, %s5168_s13  ;;  %p5172_p13 = scmp.lt.u32.totalorder %s5168_s13, %s6155_s17 }
  0xec   :  { %p5174_p0 = pnand %p5172_p13, %p5169_p12 }
  0xee   :  { %5177 = shalt.err (!%p5174_p0)
}
  0xef   :  { %s5178_s5 = scalar_lea.vmem %s188_s21, 16  ;;  %s5182_s9 = scalar_lea.vmem %s188_s21, 32 }
  0xf0   :  { %p5179_p1 = scmp.ne.s32.totalorder %s188_s21, %s5178_s5  ;;  %p5183_p2 = scmp.lt.s32.totalorder %s188_s21, %s188_s21 }
  0xf1   :  { %p5184_p3 = scmp.lt.s32.totalorder %s5182_s9, %s5178_s5 }
  0xf3   :  { %p5185_p4 = por %p5184_p3, %p5183_p2 }
  0xf5   :  { %p5186_p5 = pnand %p5185_p4, %p5179_p1 }
  0xf7   :  { %5189 = shalt.err (!%p5186_p5)
}
  0xf8   :  { %190 = dma.hbm_to_vmem [thread:$0]  %s6155_s17, 16, %s188_s21, [#allocation21]  }
  0xf9   :  { %5212 = dma.done.wait [#allocation3], 256  }
  0xfa   :  { %5213 = vsyncadd [#allocation3], 4294967040 }
  0xfb   :  { %5214 = dma.done.wait [#allocation6], 48  }
  0xfc   :  { %5215 = vsyncadd [#allocation6], 4294967248 }
  0xfd   :  { %5216 = dma.done.wait [#allocation9], 48  }
  0xfe   :  { %5217 = vsyncadd [#allocation9], 4294967248 }
  0xff   :  { %5218 = dma.done.wait [#allocation12], 64  }
 0x100   :  { %5219 = vsyncadd [#allocation12], 4294967232 }
 0x101   :  { %5220 = dma.done.wait [#allocation15], 64  }
 0x102   :  { %5221 = vsyncadd [#allocation15], 4294967232 }
 0x103   :  { %5222 = dma.done.wait [#allocation18], 64  }
 0x104   :  { %5223 = vsyncadd [#allocation18], 4294967232 }
 0x105   :  { %5224 = dma.done.wait [#allocation21], 48  }
 0x106   :  { %5225 = vsyncadd [#allocation21], 4294967248  ;;  %vm238_vm0 = vcmask 261120   ;;  %v234_v0 = vld [vmem:[#allocation2] sm:$0xff]  ;;  %v235_v1 = vld [vmem:[#allocation2 + $0x8] sm:$0xff]  ;;  %s6176_s21 = sld [smem:[#allocation36_spill]]  ;;  %v375_v56 = vlaneseq }
 0x107   :  { %v239_v2 = vsel %vm238_vm0, %v234_v0, 0.0  ;;  %v242_v3 = vsel %vm238_vm0, %v235_v1, 0.0  ;;  %v4163_v27 = vld [vmem:[#allocation7] ss:$0 sm:$0xff]  ;;  %v4164_v29 = vld [vmem:[#allocation8] ss:$0 sm:$0xff] }
 0x108   :  { %240 = vadd.xlane.f32.xlu0 %v239_v2  ;;  %v5245_v36 = vmov 0.0   ;;  %vm5246_vm1 = vmmov 0   ;;  %v4165_v37 = vld [vmem:[#allocation10] ss:$0 sm:$0xff]  ;;  %s5247_s15 = smov 88   ;;  %s5248_s7 = smov 96  }
 0x109   :  { %4410 = vmatprep.subr.mxu1 %v5245_v36  ;;  %4412 = vmatprep.mubr.msk.f32.mxu1 %vm5246_vm1, %v5245_v36  ;;  %s5249_s26 = smov 120   ;;  %s5250_s4 = smov 112   ;;  %vm382_vm2 = vcmask 64512   ;;  %v376_v57 = vshrl.u32 %v375_v56, 7  ;;  %v282_v59 = vld [vmem:[#allocation5] sm:$0x3] }
 0x10a   :  { %s5251_s13 = smov 80   ;;  %s5252_s8 = smov 104   ;;  %vm1052_vm3 = vcmask 130048   ;;  %vm1054_vm4 = vcmask 195584   ;;  %vm1997_vm5 = vcmask 523264   ;;  %vm3970_vm6 = vcmask 1040384  }
 0x10b   :  { %s5253_s30 = smov 72   ;;  %v377_v58 = vsub.s32 0, %v376_v57  ;;  %s5254_s2 = smov 64  }
 0x10c   :  { %243 = vadd.xlane.f32.xlu0 %v242_v3  ;;  %v283_v14 = vld [vmem:[%s6176_s21] sm:$0xff]  ;;  %v284_v15 = vld [vmem:[%s6176_s21 + $0x8] sm:$0xff]  ;;  %v285_v16 = vld [vmem:[%s6176_s21 + $0x10] sm:$0xff]  ;;  %s5255_s23 = smov 48   ;;  %s5256_s5 = smov 40  }
 0x10d   :  { %v4685_v17 = vpack.c.bf16 %v284_v15, %v283_v14  ;;  %v286_v18 = vld [vmem:[%s6176_s21 + $0x18] sm:$0xff]  ;;  %v5662_v60 = vrot.slane %v282_v59, %v377_v58  ;;  %s5257_s9 = smov 56   ;;  %s5258_s28 = smov 24  }
 0x10e   :  { %v4689_v19 = vpack.c.bf16 %v286_v18, %v285_v16  ;;  %s5260_s14 = smov [#allocation23]  }
 0x10f   :  { %4686 = vmatprep.subr.bf16.mxu0 %v4685_v17  ;;  %s4148_s22 = sshll.u32 %s5260_s14, 4  ;;  %s4149_s22 = int_to_ptr.vmem [resolvable:$true] %s4148_s22 }
 0x110   :  { %4688 = vmatpush3.bf16.msra.mxu0 %v4685_v17  ;;  %p5195_p7 = scmp.lt.s32.totalorder %s4149_s22, %s4149_s22 }
 0x111   :  { %4690 = vmatprep.subr.bf16.mxu0 %v4689_v19 }
 0x114   :  { %4692 = vmatpush3.bf16.msra.mxu0 %v4689_v19 }
 0x115   :  { %4420 = vmatprep.subr.mxu0 %v5245_v36 }
 0x195   :  { %v241_v4 = vpop.xlane.xlu0 %240 }
 0x196   :  { %v246_v5 = vmul.f32 0.03125, %v241_v4 }
 0x198   :  { %v248_v6 = vsub.f32 %v234_v0, %v246_v5 }
 0x199   :  { %v244_v7 = vpop.xlane.xlu0 %243 }
 0x19a   :  { %v247_v8 = vmul.f32 0.03125, %v244_v7  ;;  %v250_v9 = vmul.f32 %v248_v6, %v248_v6 }
 0x19c   :  { %v249_v10 = vsub.f32 %v235_v1, %v247_v8  ;;  %v252_v11 = vsel %vm238_vm0, %v250_v9, 0.0  ;;  %v1058_v8 = vsub.s32 1, %v376_v57 }
 0x19d   :  { %253 = vadd.xlane.f32.xlu1 %v252_v11 }
 0x19e   :  { %v251_v12 = vmul.f32 %v249_v10, %v249_v10 }
 0x1a0   :  { %v255_v13 = vsel %vm238_vm0, %v251_v12, 0.0 }
 0x1a1   :  { %256 = vadd.xlane.f32.xlu1 %v255_v13  ;;  %v5674_v13 = vrot.slane %v282_v59, %v1058_v8 }
 0x22a   :  { %v254_v20 = vpop.xlane.xlu1 %253 }
 0x22b   :  { %v258_v21 = vmul.f32 0.03125, %v254_v20 }
 0x22d   :  { %v260_v22 = vadd.f32 1e-12, %v258_v21 }
 0x22e   :  { %v257_v23 = vpop.xlane.xlu1 %256 }
 0x22f   :  { %4810 = vrsqrt.f32 %v260_v22  ;;  %v259_v24 = vmul.f32 0.03125, %v257_v23 }
 0x231   :  { %v261_v25 = vadd.f32 1e-12, %v259_v24 }
 0x233   :  { %4812 = vrsqrt.f32 %v261_v25 }
 0x239   :  { %v4811_v26 = vpop.eup %4810 }
 0x23a   :  { %v264_v28 = vmul.f32 %v4811_v26, %v248_v6 }
 0x23c   :  { %v272_v30 = vmul.f32 %v4163_v27, %v264_v28 }
 0x23d   :  { %v4813_v31 = vpop.eup %4812 }
 0x23e   :  { %v265_v32 = vmul.f32 %v4813_v31, %v249_v10  ;;  %v5577_v33 = vadd.f32 %v4164_v29, %v272_v30 }
 0x240   :  { %v273_v34 = vmul.f32 %v4163_v27, %v265_v32  ;;  %4407 = vmatprep.mubr.msk.f32.mxu0 %vm238_vm0, %v5577_v33 }
 0x242   :  { %v5581_v35 = vadd.f32 %v4164_v29, %v273_v34 }
 0x244   :  { %4408 = vmatmul.mubr.msk.f32.vlgmr.msra.gmra.mrb[0].mxu0 %vm238_vm0, %v5581_v35 }
 0x245   :  { %4422 = vmatprep.mubr.msk.f32.mxu0 %vm5246_vm1, %v5245_v36 }
 0x317   :  { %v4409_v38 = vpop.f32.mrb[0].mxu0 }
 0x318   :  { %v366_v39 = vpop.f32.mrb[1].mxu0  ;;  %v5605_v41 = vadd.f32 %v4409_v38, %v4165_v37 }
 0x319   :  { %v5591_v40 = vadd.f32 %v4165_v37, %v366_v39 }
 0x31b   :  { %546 = vrot.lane.b32.xlu1 %v5591_v40, %s5247_s15  ;;  %380 = vrot.lane.b32.xlu0 %v5591_v40, %s5248_s7 }
 0x31f   :  { %544 = vrot.lane.b32.xlu1 %v5591_v40, %s5249_s26  ;;  %709 = vrot.lane.b32.xlu0 %v5591_v40, %s5250_s4 }
 0x323   :  { %711 = vrot.lane.b32.xlu1 %v5591_v40, %s5251_s13  ;;  %874 = vrot.lane.b32.xlu0 %v5591_v40, %s5252_s8 }
 0x327   :  { %876 = vrot.lane.b32.xlu1 %v5591_v40, %s5253_s30  ;;  %1226 = vrot.lane.b32.xlu0 %v5605_v41, %s5247_s15 }
 0x32b   :  { %1061 = vrot.lane.b32.xlu1 %v5605_v41, %s5248_s7  ;;  %1391 = vrot.lane.b32.xlu0 %v5605_v41, %s5251_s13 }
 0x32f   :  { %1224 = vrot.lane.b32.xlu1 %v5605_v41, %s5249_s26  ;;  %1556 = vrot.lane.b32.xlu0 %v5605_v41, %s5253_s30 }
 0x333   :  { %1389 = vrot.lane.b32.xlu1 %v5605_v41, %s5250_s4 }
 0x337   :  { %1554 = vrot.lane.b32.xlu1 %v5605_v41, %s5252_s8 }
 0x38d   :  { %v547_v42 = vpop.permute.xlu1 %546  ;;  %v381_v43 = vpop.permute.xlu0 %380 }
 0x38e   :  { %4411 = vmatpush3.xpose.msk.msra.mxu1 %vm382_vm2, %v381_v43  ;;  %4421 = vmatpush3.xpose.msk.msra.mxu0 %vm382_vm2, %v547_v42 }
 0x38f   :  { %4430 = vmatprep.subr.mxu0 %v5245_v36  ;;  %4415 = vmatprep.subr.mxu1 %v5245_v36 }
 0x391   :  { %v545_v44 = vpop.permute.xlu1 %544  ;;  %4413 = vmatmul.mubr.msk.f32.vlgmr.msra.gmra.mrb[0].mxu1 %vm382_vm2, %v5591_v40  ;;  %v710_v45 = vpop.permute.xlu0 %709 }
 0x392   :  { %4423 = vmatmul.mubr.msk.f32.vlgmr.msra.gmra.mrb[2].mxu0 %vm382_vm2, %v545_v44  ;;  %4417 = vmatprep.mubr.msk.f32.mxu1 %vm5246_vm1, %v5245_v36 }
 0x393   :  { %4432 = vmatprep.mubr.msk.f32.mxu0 %vm5246_vm1, %v5245_v36 }
 0x395   :  { %v712_v46 = vpop.permute.xlu1 %711  ;;  %v875_v47 = vpop.permute.xlu0 %874 }
 0x396   :  { %4431 = vmatpush3.xpose.msk.msra.mxu0 %vm382_vm2, %v712_v46 }
 0x397   :  { %4440 = vmatprep.subr.mxu0 %v5245_v36 }
 0x399   :  { %v877_v48 = vpop.permute.xlu1 %876  ;;  %4433 = vmatmul.mubr.msk.f32.vlgmr.msra.gmra.mrb[4].mxu0 %vm382_vm2, %v710_v45  ;;  %v1227_v49 = vpop.permute.xlu0 %1226 }
 0x39a   :  { %4441 = vmatpush3.xpose.msk.msra.mxu0 %vm382_vm2, %v877_v48  ;;  %4442 = vmatprep.mubr.msk.f32.mxu0 %vm5246_vm1, %v5245_v36 }
 0x39b   :  { %4450 = vmatprep.subr.mxu0 %v5245_v36 }
 0x39d   :  { %v1062_v50 = vpop.permute.xlu1 %1061  ;;  %4443 = vmatmul.mubr.msk.f32.vlgmr.msra.gmra.mrb[6].mxu0 %vm382_vm2, %v875_v47  ;;  %v1392_v52 = vpop.permute.xlu0 %1391 }
 0x39e   :  { %4451 = vmatpush3.xpose.msk.msra.mxu0 %vm382_vm2, %v1062_v50  ;;  %4452 = vmatprep.mubr.msk.f32.mxu0 %vm5246_vm1, %v5245_v36 }
 0x39f   :  { %4460 = vmatprep.subr.mxu0 %v5245_v36 }
 0x3a1   :  { %v1225_v51 = vpop.permute.xlu1 %1224  ;;  %4453 = vmatmul.mubr.msk.f32.vlgmr.msra.gmra.mrb[8].mxu0 %vm382_vm2, %v5605_v41  ;;  %v1557_v54 = vpop.permute.xlu0 %1556 }
 0x3a2   :  { %4461 = vmatpush3.xpose.msk.msra.mxu0 %vm382_vm2, %v1227_v49  ;;  %4462 = vmatprep.mubr.msk.f32.mxu0 %vm5246_vm1, %v5245_v36 }
 0x3a3   :  { %4470 = vmatprep.subr.mxu0 %v5245_v36 }
 0x3a5   :  { %4463 = vmatmul.mubr.msk.f32.vlgmr.msra.gmra.mrb[10].mxu0 %vm382_vm2, %v1225_v51  ;;  %v1390_v53 = vpop.permute.xlu1 %1389 }
 0x3a6   :  { %4471 = vmatpush3.xpose.msk.msra.mxu0 %vm382_vm2, %v1392_v52  ;;  %4472 = vmatprep.mubr.msk.f32.mxu0 %vm5246_vm1, %v5245_v36 }
 0x3a7   :  { %4480 = vmatprep.subr.mxu0 %v5245_v36 }
 0x3a9   :  { %4473 = vmatmul.mubr.msk.f32.vlgmr.msra.gmra.mrb[12].mxu0 %vm382_vm2, %v1390_v53  ;;  %v1555_v55 = vpop.permute.xlu1 %1554 }
 0x3aa   :  { %4481 = vmatpush3.xpose.msk.msra.mxu0 %vm382_vm2, %v1557_v54  ;;  %4482 = vmatprep.mubr.msk.f32.mxu0 %vm5246_vm1, %v5245_v36 }
 0x3ad   :  { %4483 = vmatmul.mubr.msk.f32.vlgmr.msra.gmra.mrb[14].mxu0 %vm382_vm2, %v1555_v55 }
 0x464   :  { %v453_v61 = vpop.f32.mrb[0].mxu1 }
 0x465   :  { %v454_v62 = vadd.f32 %v453_v61, %v5662_v60  ;;  %v4414_v63 = vpop.f32.mrb[1].mxu1  ;;  %v618_v0 = vpop.f32.mrb[2].mxu0 }
 0x466   :  { %v619_v1 = vadd.f32 %v618_v0, %v5662_v60  ;;  %v4424_v2 = vpop.f32.mrb[3].mxu0 }
 0x467   :  { %v457_v3 = vsel %vm382_vm2, %v454_v62, -inf }
 0x468   :  { %458 = vmax.xlane.f32.xlu0 %v457_v3  ;;  %v622_v4 = vsel %vm382_vm2, %v619_v1, -inf }
 0x469   :  { %623 = vmax.xlane.f32.xlu1 %v622_v4 }
 0x46c   :  { %v783_v5 = vpop.f32.mrb[4].mxu0 }
 0x46d   :  { %v5669_v6 = vadd.f32 %v783_v5, %v5662_v60  ;;  %v4434_v7 = vpop.f32.mrb[5].mxu0 }
 0x46f   :  { %v787_v9 = vsel %vm382_vm2, %v5669_v6, -inf }
 0x470   :  { %788 = vmax.xlane.f32.xlu0 %v787_v9  ;;  %v948_v10 = vpop.f32.mrb[6].mxu0 }
 0x471   :  { %v949_v11 = vadd.f32 %v948_v10, %v5662_v60  ;;  %v4444_v12 = vpop.f32.mrb[7].mxu0 }
 0x473   :  { %v952_v14 = vsel %vm382_vm2, %v949_v11, -inf }
 0x474   :  { %953 = vmax.xlane.f32.xlu0 %v952_v14  ;;  %v1133_v15 = vpop.f32.mrb[8].mxu0 }
 0x475   :  { %v1134_v16 = vadd.f32 %v1133_v15, %v5674_v13  ;;  %v4454_v17 = vpop.f32.mrb[9].mxu0 }
 0x477   :  { %v1137_v18 = vsel %vm382_vm2, %v1134_v16, -inf }
 0x478   :  { %1138 = vmax.xlane.f32.xlu0 %v1137_v18  ;;  %v1298_v19 = vpop.f32.mrb[10].mxu0 }
 0x479   :  { %v1299_v20 = vadd.f32 %v1298_v19, %v5674_v13  ;;  %v4464_v21 = vpop.f32.mrb[11].mxu0 }
 0x47b   :  { %v1302_v22 = vsel %vm382_vm2, %v1299_v20, -inf }
 0x47c   :  { %1303 = vmax.xlane.f32.xlu1 %v1302_v22  ;;  %v1463_v23 = vpop.f32.mrb[12].mxu0 }
 0x47d   :  { %v1464_v24 = vadd.f32 %v1463_v23, %v5674_v13  ;;  %v4474_v25 = vpop.f32.mrb[13].mxu0 }
 0x47f   :  { %v1467_v26 = vsel %vm382_vm2, %v1464_v24, -inf }
 0x480   :  { %1468 = vmax.xlane.f32.xlu0 %v1467_v26  ;;  %v1628_v27 = vpop.f32.mrb[14].mxu0 }
 0x481   :  { %v4484_v28 = vpop.f32.mrb[15].mxu0  ;;  %v1629_v29 = vadd.f32 %v1628_v27, %v5674_v13 }
 0x483   :  { %v1632_v30 = vsel %vm382_vm2, %v1629_v29, -inf }
 0x48d   :  { %468 = vrot.lane.b32.xlu1 %v5591_v40, %s5254_s2 }
 0x4b1   :  { %1633 = vmax.xlane.f32.xlu1 %v1632_v30 }
 0x4c2   :  { %798 = vrot.lane.b32.xlu1 %v5591_v40, %s5255_s23 }
 0x4c6   :  { %963 = vrot.lane.b32.xlu1 %v5591_v40, %s5256_s5 }
 0x4ca   :  { %1148 = vrot.lane.b32.xlu1 %v5605_v41, %s5254_s2 }
 0x4f5   :  { %v459_v31 = vpop.xlane.xlu0 %458 }
 0x4f6   :  { %v460_v32 = vsub.f32 %v454_v62, %v459_v31  ;;  %v624_v34 = vpop.xlane.xlu1 %623 }
 0x4f7   :  { %v625_v37 = vsub.f32 %v619_v1, %v624_v34 }
 0x4f8   :  { %v461_v38 = vmul.f32 1.442695, %v460_v32 }
 0x4f9   :  { %v626_v39 = vmul.f32 1.442695, %v625_v37 }
 0x4fa   :  { %4814 = vpow2.f32 %v461_v38 }
 0x4fb   :  { %4816 = vpow2.f32 %v626_v39 }
 0x4fd   :  { %v789_v42 = vpop.xlane.xlu0 %788 }
 0x4fe   :  { %v790_v54 = vsub.f32 %v5669_v6, %v789_v42 }
 0x500   :  { %v791_v56 = vmul.f32 1.442695, %v790_v54  ;;  %v1735_v54 = vld [vmem:[%s6144_s6 + $0x8] sm:$0xff] }
 0x501   :  { %v954_v43 = vpop.xlane.xlu0 %953 }
 0x502   :  { %v955_v44 = vsub.f32 %v949_v11, %v954_v43 }
 0x504   :  { %v4815_v45 = vpop.eup %4814  ;;  %v956_v46 = vmul.f32 1.442695, %v955_v44 }
 0x505   :  { %v5693_v47 = vpop.eup %4816  ;;  %v463_v48 = vsel %vm382_vm2, %v4815_v45, 0.0  ;;  %v1139_v55 = vpop.xlane.xlu0 %1138 }
 0x506   :  { %4818 = vpow2.f32 %v956_v46  ;;  %464 = vadd.xlane.f32.xlu0 %v463_v48  ;;  %v628_v49 = vsel %vm382_vm2, %v5693_v47, 0.0  ;;  %v1140_v57 = vsub.f32 %v1134_v16, %v1139_v55 }
 0x507   :  { %629 = vadd.xlane.f32.xlu1 %v628_v49  ;;  %4820 = vpow2.f32 %v791_v56 }
 0x508   :  { %v1141_v59 = vmul.f32 1.442695, %v1140_v57 }
 0x509   :  { %v1304_v50 = vpop.xlane.xlu1 %1303 }
 0x50a   :  { %4822 = vpow2.f32 %v1141_v59  ;;  %v1305_v62 = vsub.f32 %v1299_v20, %v1304_v50  ;;  %v1737_v59 = vld [vmem:[%s6144_s6 + $0x18] sm:$0xff] }
 0x50c   :  { %v1306_v0 = vmul.f32 1.442695, %v1305_v62 }
 0x50d   :  { %v469_v51 = vpop.permute.xlu1 %468  ;;  %v1469_v58 = vpop.xlane.xlu0 %1468 }
 0x50e   :  { %4416 = vmatpush3.msra.mxu1 %v469_v51  ;;  %v1470_v61 = vsub.f32 %v1464_v24, %v1469_v58  ;;  %v1736_v58 = vld [vmem:[%s6144_s6 + $0x10] sm:$0xff] }
 0x50f   :  { %4425 = vmatprep.subr.mxu1 %v5245_v36  ;;  %v4697_v62 = vpack.c.bf16 %v1737_v59, %v1736_v58 }
 0x510   :  { %v5699_v52 = vpop.eup %4818  ;;  %v1471_v63 = vmul.f32 1.442695, %v1470_v61 }
 0x511   :  { %v958_v53 = vsel %vm382_vm2, %v5699_v52, 0.0  ;;  %v4821_v1 = vpop.eup %4820 }
 0x512   :  { %959 = vadd.xlane.f32.xlu1 %v958_v53  ;;  %4824 = vpow2.f32 %v1471_v63  ;;  %v1734_v53 = vld [vmem:[%s6144_s6] sm:$0xff] }
 0x513   :  { %4826 = vpow2.f32 %v1306_v0  ;;  %v4693_v56 = vpack.c.bf16 %v1735_v54, %v1734_v53  ;;  %v4195_v54 = vld [vmem:[#allocation13] ss:$0 sm:$0xff] }
 0x514   :  { %v4823_v2 = vpop.eup %4822 }
 0x515   :  { %v1143_v4 = vsel %vm382_vm2, %v4823_v2, 0.0  ;;  %4694 = vmatprep.subr.bf16.mxu0 %v4693_v56 }
 0x516   :  { %4696 = vmatpush3.bf16.msra.mxu0 %v4693_v56  ;;  %v4196_v56 = vld [vmem:[#allocation14] ss:$0 sm:$0xff] }
 0x517   :  { %4698 = vmatprep.subr.bf16.mxu0 %v4697_v62 }
 0x51a   :  { %4700 = vmatpush3.bf16.msra.mxu0 %v4697_v62 }
 0x51c   :  { %633 = vrot.lane.b32.xlu0 %v5591_v40, %s5257_s9  ;;  %v793_v40 = vsel %vm382_vm2, %v4821_v1, 0.0  ;;  %v5710_v5 = vpop.eup %4824 }
 0x51d   :  { %v1473_v8 = vsel %vm382_vm2, %v5710_v5, 0.0  ;;  %v4827_v9 = vpop.eup %4826 }
 0x51e   :  { %v1308_v10 = vsel %vm382_vm2, %v4827_v9, 0.0 }
 0x523   :  { %1313 = vrot.lane.b32.xlu1 %v5605_v41, %s5257_s9 }
 0x53b   :  { %794 = vadd.xlane.f32.xlu0 %v793_v40 }
 0x53e   :  { %v1634_v3 = vpop.xlane.xlu1 %1633 }
 0x53f   :  { %v1635_v6 = vsub.f32 %v1629_v29, %v1634_v3  ;;  %1144 = vadd.xlane.f32.xlu0 %v1143_v4 }
 0x541   :  { %v1636_v7 = vmul.f32 1.442695, %v1635_v6 }
 0x542   :  { %v799_v14 = vpop.permute.xlu1 %798 }
 0x543   :  { %4828 = vpow2.f32 %v1636_v7  ;;  %1474 = vadd.xlane.f32.xlu0 %v1473_v8 }
 0x546   :  { %v964_v15 = vpop.permute.xlu1 %963 }
 0x547   :  { %1309 = vadd.xlane.f32.xlu1 %v1308_v10 }
 0x54a   :  { %v1149_v16 = vpop.permute.xlu1 %1148 }
 0x54d   :  { %v5715_v11 = vpop.eup %4828 }
 0x54e   :  { %v1638_v12 = vsel %vm382_vm2, %v5715_v11, 0.0 }
 0x54f   :  { %1639 = vadd.xlane.f32.xlu0 %v1638_v12 }
 0x558   :  { %1643 = vrot.lane.b32.xlu1 %v5605_v41, %s5256_s5 }
 0x565   :  { %1478 = vrot.lane.b32.xlu0 %v5605_v41, %s5255_s23 }
 0x593   :  { %v465_v17 = vpop.xlane.xlu0 %464 }
 0x594   :  { %4830 = vrcp.f32 %v465_v17  ;;  %v630_v18 = vpop.xlane.xlu1 %629 }
 0x595   :  { %4832 = vrcp.f32 %v630_v18 }
 0x597   :  { %v634_v22 = vpop.permute.xlu0 %633 }
 0x59e   :  { %v4831_v19 = vpop.eup %4830 }
 0x59f   :  { %v467_v20 = vmul.f32 %v4831_v19, %v4815_v45  ;;  %v4833_v21 = vpop.eup %4832  ;;  %v960_v41 = vpop.xlane.xlu1 %959 }
 0x5a0   :  { %v632_v23 = vmul.f32 %v4833_v21, %v5693_v47 }
 0x5a1   :  { %4418 = vmatmul.mubr.msk.f32.vlgmr.msra.gmra.mrb[2].mxu1 %vm382_vm2, %v467_v20  ;;  %v4192_v20 = vld [vmem:[#allocation11] ss:$0 sm:$0xff] }
 0x5a2   :  { %4426 = vmatpush3.msra.mxu1 %v634_v22  ;;  %4427 = vmatprep.mubr.msk.f32.mxu1 %vm5246_vm1, %v5245_v36 }
 0x5a3   :  { %4435 = vmatprep.subr.mxu1 %v5245_v36  ;;  %v1314_v26 = vpop.permute.xlu1 %1313 }
 0x5a5   :  { %4428 = vmatmul.mubr.msk.f32.vlgmr.msra.gmra.mrb[4].mxu1 %vm382_vm2, %v632_v23 }
 0x5a6   :  { %4436 = vmatpush3.msra.mxu1 %v799_v14  ;;  %4437 = vmatprep.mubr.msk.f32.mxu1 %vm5246_vm1, %v5245_v36 }
 0x5a7   :  { %4445 = vmatprep.subr.mxu1 %v5245_v36 }
 0x5c8   :  { %v795_v24 = vpop.xlane.xlu0 %794 }
 0x5c9   :  { %4834 = vrcp.f32 %v795_v24 }
 0x5ca   :  { %4836 = vrcp.f32 %v960_v41 }
 0x5cc   :  { %v1145_v25 = vpop.xlane.xlu0 %1144 }
 0x5cd   :  { %4838 = vrcp.f32 %v1145_v25 }
 0x5d0   :  { %v1475_v29 = vpop.xlane.xlu0 %1474 }
 0x5d3   :  { %v4835_v27 = vpop.eup %4834 }
 0x5d4   :  { %v797_v28 = vmul.f32 %v4835_v27, %v4821_v1  ;;  %v1310_v30 = vpop.xlane.xlu1 %1309  ;;  %v4837_v31 = vpop.eup %4836 }
 0x5d5   :  { %4840 = vrcp.f32 %v1310_v30  ;;  %v962_v32 = vmul.f32 %v4837_v31, %v5699_v52 }
 0x5d6   :  { %4438 = vmatmul.mubr.msk.f32.vlgmr.msra.gmra.mrb[6].mxu1 %vm382_vm2, %v797_v28  ;;  %4842 = vrcp.f32 %v1475_v29 }
 0x5d7   :  { %4446 = vmatpush3.msra.mxu1 %v964_v15  ;;  %4447 = vmatprep.mubr.msk.f32.mxu1 %vm5246_vm1, %v5245_v36  ;;  %v4839_v34 = vpop.eup %4838 }
 0x5d8   :  { %4455 = vmatprep.subr.mxu1 %v5245_v36  ;;  %v1147_v37 = vmul.f32 %v4839_v34, %v4823_v2  ;;  %v1644_v46 = vpop.permute.xlu1 %1643 }
 0x5da   :  { %4448 = vmatmul.mubr.msk.f32.vlgmr.msra.gmra.mrb[8].mxu1 %vm382_vm2, %v962_v32 }
 0x5db   :  { %4456 = vmatpush3.msra.mxu1 %v1149_v16  ;;  %4457 = vmatprep.mubr.msk.f32.mxu1 %vm5246_vm1, %v5245_v36 }
 0x5dc   :  { %v1640_v38 = vpop.xlane.xlu0 %1639  ;;  %4465 = vmatprep.subr.mxu1 %v5245_v36 }
 0x5dd   :  { %4844 = vrcp.f32 %v1640_v38 }
 0x5de   :  { %4458 = vmatmul.mubr.msk.f32.vlgmr.msra.gmra.mrb[10].mxu1 %vm382_vm2, %v1147_v37 }
 0x5df   :  { %v4841_v39 = vpop.eup %4840  ;;  %4466 = vmatpush3.msra.mxu1 %v1314_v26  ;;  %4467 = vmatprep.mubr.msk.f32.mxu1 %vm5246_vm1, %v5245_v36 }
 0x5e0   :  { %v1312_v42 = vmul.f32 %v4841_v39, %v4827_v9  ;;  %v1479_v43 = vpop.permute.xlu0 %1478  ;;  %4475 = vmatprep.subr.mxu1 %v5245_v36  ;;  %v4843_v44 = vpop.eup %4842 }
 0x5e1   :  { %v1477_v45 = vmul.f32 %v4843_v44, %v5710_v5  ;;  %v1874_v44 = vld [vmem:[%s6148_s10 + $0x10] sm:$0xff] }
 0x5e2   :  { %4468 = vmatmul.mubr.msk.f32.vlgmr.msra.gmra.mrb[12].mxu1 %vm382_vm2, %v1312_v42  ;;  %v1873_v42 = vld [vmem:[%s6148_s10 + $0x8] sm:$0xff] }
 0x5e3   :  { %4476 = vmatpush3.msra.mxu1 %v1479_v43  ;;  %4477 = vmatprep.mubr.msk.f32.mxu1 %vm5246_vm1, %v5245_v36 }
 0x5e4   :  { %4485 = vmatprep.subr.mxu1 %v5245_v36 }
 0x5e6   :  { %4478 = vmatmul.mubr.msk.f32.vlgmr.msra.gmra.mrb[14].mxu1 %vm382_vm2, %v1477_v45  ;;  %v1875_v45 = vld [vmem:[%s6148_s10 + $0x18] sm:$0xff] }
 0x5e7   :  { %v4845_v47 = vpop.eup %4844  ;;  %4486 = vmatpush3.msra.mxu1 %v1644_v46  ;;  %4487 = vmatprep.mubr.msk.f32.mxu1 %vm5246_vm1, %v5245_v36  ;;  %v4705_v46 = vpack.c.bf16 %v1875_v45, %v1874_v44 }
 0x5e8   :  { %v1642_v48 = vmul.f32 %v4845_v47, %v5715_v11 }
 0x5ea   :  { %4488 = vmatmul.mubr.msk.f32.vlgmr.msra.gmra.mrb[16].mxu1 %vm382_vm2, %v1642_v48 }
 0x674   :  { %v540_v49 = vpop.f32.mrb[2].mxu1 }
 0x675   :  { %v4419_v50 = vpop.f32.mrb[3].mxu1 }
 0x678   :  { %v705_v51 = vpop.f32.mrb[4].mxu1 }
 0x679   :  { %1040 = vrot.lane.b32.xlu0 %v705_v51, %s5238_s1  ;;  %v4429_v52 = vpop.f32.mrb[5].mxu1 }
 0x6a9   :  { %v870_v55 = vpop.f32.mrb[6].mxu1 }
 0x6aa   :  { %1044 = vrot.lane.b32.xlu1 %v870_v55, %s6175_s3  ;;  %v4439_v57 = vpop.f32.mrb[7].mxu1 }
 0x6ad   :  { %v1035_v61 = vpop.f32.mrb[8].mxu1 }
 0x6ae   :  { %1048 = vrot.lane.b32.xlu1 %v1035_v61, %s5258_s28  ;;  %v4449_v63 = vpop.f32.mrb[9].mxu1 }
 0x6b1   :  { %v1220_v0 = vpop.f32.mrb[10].mxu1 }
 0x6b2   :  { %v4459_v1 = vpop.f32.mrb[11].mxu1 }
 0x6b3   :  { %v1983_v1 = vld [vmem:[%s6150_s12 + $0x8] sm:$0xff] }
 0x6b5   :  { %v1385_v40 = vpop.f32.mrb[12].mxu1 }
 0x6b6   :  { %1720 = vrot.lane.b32.xlu0 %v1385_v40, %s5238_s1  ;;  %v4469_v2 = vpop.f32.mrb[13].mxu1 }
 0x6b7   :  { %v1984_v2 = vld [vmem:[%s6150_s12 + $0x10] sm:$0xff] }
 0x6b9   :  { %v1550_v3 = vpop.f32.mrb[14].mxu1 }
 0x6ba   :  { %1724 = vrot.lane.b32.xlu0 %v1550_v3, %s6175_s3  ;;  %v4479_v4 = vpop.f32.mrb[15].mxu1  ;;  %v1985_v3 = vld [vmem:[%s6150_s12 + $0x18] sm:$0xff] }
 0x6bb   :  { %v4713_v4 = vpack.c.bf16 %v1985_v3, %v1984_v2 }
 0x6bd   :  { %v1715_v5 = vpop.f32.mrb[16].mxu1 }
 0x6be   :  { %1728 = vrot.lane.b32.xlu1 %v1715_v5, %s5258_s28  ;;  %v4489_v6 = vpop.f32.mrb[17].mxu1  ;;  %v1986_v5 = vld [vmem:[%s6150_s12 + $0x20] sm:$0xff] }
 0x6bf   :  { %v1987_v6 = vld [vmem:[%s6150_s12 + $0x28] sm:$0xff] }
 0x6eb   :  { %v1041_v7 = vpop.permute.xlu0 %1040 }
 0x6ec   :  { %v1051_v9 = vsel %vm382_vm2, %v540_v49, %v1041_v7  ;;  %v4717_v7 = vpack.c.bf16 %v1987_v6, %v1986_v5  ;;  %v4203_v5 = vld [vmem:[#allocation19] ss:$0 sm:$0xff] }
 0x71c   :  { %v1045_v8 = vpop.permute.xlu1 %1044 }
 0x71d   :  { %v1053_v10 = vsel %vm1052_vm3, %v1051_v9, %v1045_v8  ;;  %v1988_v8 = vld [vmem:[%s6150_s12 + $0x30] sm:$0xff]  ;;  %v1989_v9 = vld [vmem:[%s6150_s12 + $0x38] sm:$0xff] }
 0x720   :  { %v1049_v11 = vpop.permute.xlu1 %1048 }
 0x721   :  { %v1055_v12 = vsel %vm1054_vm4, %v1053_v10, %v1049_v11  ;;  %v4721_v10 = vpack.c.bf16 %v1989_v9, %v1988_v8  ;;  %v4197_v11 = vld [vmem:[#allocation16] ss:$0 sm:$0xff]  ;;  %v4204_v9 = vld [vmem:[#allocation20] ss:$0 sm:$0xff] }
 0x722   :  { %4498 = vmatprep.mubr.msk.f32.mxu0 %vm238_vm0, %v1055_v12 }
 0x728   :  { %v1721_v14 = vpop.permute.xlu0 %1720 }
 0x729   :  { %v1731_v16 = vsel %vm382_vm2, %v1220_v0, %v1721_v14  ;;  %v1982_v0 = vld [vmem:[%s6150_s12] sm:$0xff] }
 0x72a   :  { %v4709_v40 = vpack.c.bf16 %v1983_v1, %v1982_v0 }
 0x72c   :  { %v1725_v15 = vpop.permute.xlu0 %1724  ;;  %4710 = vmatprep.subr.bf16.mxu0 %v4709_v40 }
 0x72d   :  { %v1732_v17 = vsel %vm1052_vm3, %v1731_v16, %v1725_v15 }
 0x730   :  { %v1729_v18 = vpop.permute.xlu1 %1728 }
 0x731   :  { %v1733_v19 = vsel %vm1054_vm4, %v1732_v17, %v1729_v18 }
 0x732   :  { %4499 = vmatmul.mubr.msk.f32.vlgmr.msra.gmra.mrb[16].mxu0 %vm238_vm0, %v1733_v19 }
 0x733   :  { %4712 = vmatpush3.bf16.msra.mxu0 %v4709_v40 }
 0x734   :  { %4714 = vmatprep.subr.bf16.mxu0 %v4713_v4 }
 0x737   :  { %4716 = vmatpush3.bf16.msra.mxu0 %v4713_v4 }
 0x738   :  { %4718 = vmatprep.subr.bf16.mxu0 %v4717_v7 }
 0x73b   :  { %4720 = vmatpush3.bf16.msra.mxu0 %v4717_v7 }
 0x73c   :  { %4722 = vmatprep.subr.bf16.mxu0 %v4721_v10 }
 0x73f   :  { %4724 = vmatpush3.bf16.msra.mxu0 %v4721_v10 }
 0x740   :  { %4552 = vmatprep.subr.mxu0 %v5245_v36 }
 0x805   :  { %v4500_v21 = vpop.f32.mrb[16].mxu0 }
 0x806   :  { %v1823_v22 = vadd.f32 %v4500_v21, %v4192_v20  ;;  %v1817_v23 = vpop.f32.mrb[17].mxu0 }
 0x807   :  { %v1818_v41 = vadd.f32 %v4192_v20, %v1817_v23 }
 0x808   :  { %v1827_v24 = vadd.f32 %v1823_v22, %v5581_v35 }
 0x809   :  { %v1826_v25 = vadd.f32 %v1818_v41, %v5577_v33  ;;  %v1872_v33 = vld [vmem:[%s6148_s10] sm:$0xff] }
 0x80a   :  { %v1833_v26 = vsel %vm238_vm0, %v1827_v24, 0.0  ;;  %v4701_v43 = vpack.c.bf16 %v1873_v42, %v1872_v33 }
 0x80b   :  { %1834 = vadd.xlane.f32.xlu1 %v1833_v26  ;;  %v1830_v27 = vsel %vm238_vm0, %v1826_v25, 0.0 }
 0x80c   :  { %1831 = vadd.xlane.f32.xlu0 %v1830_v27  ;;  %4702 = vmatprep.subr.bf16.mxu1 %v4701_v43 }
 0x80d   :  { %4704 = vmatpush3.bf16.msra.mxu1 %v4701_v43 }
 0x80e   :  { %4706 = vmatprep.subr.bf16.mxu1 %v4705_v46 }
 0x811   :  { %4708 = vmatpush3.bf16.msra.mxu1 %v4705_v46 }
 0x898   :  { %v1835_v28 = vpop.xlane.xlu1 %1834 }
 0x899   :  { %v1837_v29 = vmul.f32 0.03125, %v1835_v28  ;;  %v1832_v30 = vpop.xlane.xlu0 %1831 }
 0x89a   :  { %v1836_v31 = vmul.f32 0.03125, %v1832_v30 }
 0x89b   :  { %v1839_v32 = vsub.f32 %v1827_v24, %v1837_v29 }
 0x89c   :  { %v1838_v34 = vsub.f32 %v1826_v25, %v1836_v31 }
 0x89d   :  { %v1841_v39 = vmul.f32 %v1839_v32, %v1839_v32 }
 0x89e   :  { %v1840_v37 = vmul.f32 %v1838_v34, %v1838_v34 }
 0x89f   :  { %v1845_v35 = vsel %vm238_vm0, %v1841_v39, 0.0 }
 0x8a0   :  { %v1842_v38 = vsel %vm238_vm0, %v1840_v37, 0.0  ;;  %v4200_v37 = vld [vmem:[#allocation17] ss:$0 sm:$0xff] }
 0x8a1   :  { %1843 = vadd.xlane.f32.xlu0 %v1842_v38 }
 0x8a5   :  { %1846 = vadd.xlane.f32.xlu0 %v1845_v35 }
 0x92e   :  { %v1844_v47 = vpop.xlane.xlu0 %1843 }
 0x92f   :  { %v1848_v48 = vmul.f32 0.03125, %v1844_v47 }
 0x931   :  { %v1850_v49 = vadd.f32 1e-12, %v1848_v48 }
 0x932   :  { %v1847_v50 = vpop.xlane.xlu0 %1846 }
 0x933   :  { %4846 = vrsqrt.f32 %v1850_v49  ;;  %v1849_v51 = vmul.f32 0.03125, %v1847_v50 }
 0x935   :  { %v1851_v52 = vadd.f32 1e-12, %v1849_v51 }
 0x937   :  { %4848 = vrsqrt.f32 %v1851_v52 }
 0x93d   :  { %v4847_v53 = vpop.eup %4846 }
 0x93e   :  { %v1854_v55 = vmul.f32 %v4847_v53, %v1838_v34 }
 0x940   :  { %v1862_v57 = vmul.f32 %v4195_v54, %v1854_v55 }
 0x941   :  { %v4849_v58 = vpop.eup %4848 }
 0x942   :  { %v1855_v59 = vmul.f32 %v4849_v58, %v1839_v32  ;;  %v1870_v61 = vadd.f32 %v4196_v56, %v1862_v57  ;;  %v4206_v57 = vld [vmem:[%s6176_s21 + $0x28] sm:$0xff] }
 0x944   :  { %v1863_v62 = vmul.f32 %v4195_v54, %v1855_v59  ;;  %4509 = vmatprep.mubr.msk.f32.mxu1 %vm238_vm0, %v1870_v61  ;;  %v4207_v59 = vld [vmem:[%s6176_s21 + $0x30] sm:$0xff] }
 0x946   :  { %v1871_v63 = vadd.f32 %v4196_v56, %v1863_v62  ;;  %v4205_v56 = vld [vmem:[%s6176_s21 + $0x20] sm:$0xff] }
 0x947   :  { %v4725_v58 = vpack.c.bf16 %v4206_v57, %v4205_v56 }
 0x948   :  { %4510 = vmatmul.mubr.msk.f32.vlgmr.msra.gmra.mrb[18].mxu1 %vm238_vm0, %v1871_v63 }
 0x949   :  { %4726 = vmatprep.subr.bf16.mxu1 %v4725_v58 }
 0x94a   :  { %4728 = vmatpush3.bf16.msra.mxu1 %v4725_v58 }
 0xa1b   :  { %v4511_v12 = vpop.f32.mrb[18].mxu1 }
 0xa1c   :  { %v1961_v14 = vadd.f32 %v4511_v12, %v4197_v11  ;;  %v1955_v15 = vpop.f32.mrb[19].mxu1 }
 0xa1d   :  { %v1956_v16 = vadd.f32 %v4197_v11, %v1955_v15  ;;  %v4209_v15 = vld [vmem:[#allocation10 + $0x1] ss:$0 sm:$0xff] }
 0xa1e   :  { %v1965_v17 = vmul.f32 %v1961_v14, %v1961_v14 }
 0xa1f   :  { %v1964_v18 = vmul.f32 %v1956_v16, %v1956_v16 }
 0xa20   :  { %v1967_v19 = vmul.f32 %v1965_v17, %v1961_v14 }
 0xa21   :  { %v1966_v20 = vmul.f32 %v1964_v18, %v1956_v16 }
 0xa22   :  { %v1969_v21 = vmul.f32 0.044715, %v1967_v19 }
 0xa23   :  { %v1968_v22 = vmul.f32 0.044715, %v1966_v20 }
 0xa24   :  { %v1971_v23 = vadd.f32 %v1969_v21, %v1961_v14 }
 0xa25   :  { %v1970_v41 = vadd.f32 %v1968_v22, %v1956_v16 }
 0xa26   :  { %v1973_v24 = vmul.f32 0.7978846, %v1971_v23 }
 0xa27   :  { %v1972_v25 = vmul.f32 0.7978846, %v1970_v41 }
 0xa28   :  { %4850 = vtanh.f32 %v1973_v24 }
 0xa29   :  { %4852 = vtanh.f32 %v1972_v25 }
 0xa32   :  { %v4851_v26 = vpop.eup %4850 }
 0xa33   :  { %v4853_v27 = vpop.eup %4852  ;;  %v1977_v28 = vadd.f32 1.0, %v4851_v26 }
 0xa34   :  { %v1976_v29 = vadd.f32 1.0, %v4853_v27 }
 0xa35   :  { %v1979_v30 = vmul.f32 0.5, %v1977_v28 }
 0xa36   :  { %v1978_v31 = vmul.f32 0.5, %v1976_v29 }
 0xa37   :  { %v1981_v34 = vmul.f32 %v1979_v30, %v1961_v14 }
 0xa38   :  { %v1980_v32 = vmul.f32 %v1978_v31, %v1956_v16 }
 0xa3a   :  { %4528 = vmatprep.mubr.msk.f32.mxu0 %vm1997_vm5, %v1980_v32 }
 0xa3b   :  { %4529 = vmatmul.mubr.msk.f32.vlgmr.msra.gmra.mrb[18].mxu0 %vm1997_vm5, %v1981_v34 }
 0xa3c   :  { %4554 = vmatprep.mubr.msk.f32.mxu0 %vm5246_vm1, %v5245_v36 }
 0xb0e   :  { %v4530_v38 = vpop.f32.mrb[18].mxu0 }
 0xb0f   :  { %v2076_v39 = vadd.f32 %v4530_v38, %v4200_v37  ;;  %v2070_v35 = vpop.f32.mrb[19].mxu0 }
 0xb10   :  { %v2071_v33 = vadd.f32 %v4200_v37, %v2070_v35 }
 0xb11   :  { %v2080_v42 = vadd.f32 %v2076_v39, %v1871_v63 }
 0xb12   :  { %v2079_v43 = vadd.f32 %v2071_v33, %v1870_v61  ;;  %v4208_v61 = vld [vmem:[%s6176_s21 + $0x38] sm:$0xff] }
 0xb13   :  { %v2086_v44 = vsel %vm238_vm0, %v2080_v42, 0.0  ;;  %v4729_v62 = vpack.c.bf16 %v4208_v61, %v4207_v59 }
 0xb14   :  { %2087 = vadd.xlane.f32.xlu1 %v2086_v44  ;;  %v2083_v45 = vsel %vm238_vm0, %v2079_v43, 0.0 }
 0xb15   :  { %2084 = vadd.xlane.f32.xlu0 %v2083_v45  ;;  %4730 = vmatprep.subr.bf16.mxu1 %v4729_v62 }
 0xb16   :  { %4732 = vmatpush3.bf16.msra.mxu1 %v4729_v62 }
 0xb17   :  { %4542 = vmatprep.subr.mxu1 %v5245_v36 }
 0xba1   :  { %v2088_v46 = vpop.xlane.xlu1 %2087 }
 0xba2   :  { %v2090_v47 = vmul.f32 0.03125, %v2088_v46  ;;  %v2085_v48 = vpop.xlane.xlu0 %2084 }
 0xba3   :  { %v2089_v49 = vmul.f32 0.03125, %v2085_v48 }
 0xba4   :  { %v2092_v50 = vsub.f32 %v2080_v42, %v2090_v47 }
 0xba5   :  { %v2091_v51 = vsub.f32 %v2079_v43, %v2089_v49 }
 0xba6   :  { %v2094_v52 = vmul.f32 %v2092_v50, %v2092_v50 }
 0xba7   :  { %v2093_v53 = vmul.f32 %v2091_v51, %v2091_v51 }
 0xba8   :  { %v2098_v54 = vsel %vm238_vm0, %v2094_v52, 0.0 }
 0xba9   :  { %2099 = vadd.xlane.f32.xlu1 %v2098_v54  ;;  %v2095_v55 = vsel %vm238_vm0, %v2093_v53, 0.0 }
 0xbaa   :  { %2096 = vadd.xlane.f32.xlu0 %v2095_v55 }
 0xc36   :  { %v2100_v63 = vpop.xlane.xlu1 %2099 }
 0xc37   :  { %v2102_v0 = vmul.f32 0.03125, %v2100_v63  ;;  %v2097_v1 = vpop.xlane.xlu0 %2096 }
 0xc38   :  { %v2101_v40 = vmul.f32 0.03125, %v2097_v1 }
 0xc39   :  { %v2104_v2 = vadd.f32 1e-12, %v2102_v0 }
 0xc3a   :  { %v2103_v3 = vadd.f32 1e-12, %v2101_v40 }
 0xc3b   :  { %4854 = vrsqrt.f32 %v2104_v2 }
 0xc3c   :  { %4856 = vrsqrt.f32 %v2103_v3 }
 0xc45   :  { %v4855_v4 = vpop.eup %4854 }
 0xc46   :  { %v4857_v6 = vpop.eup %4856  ;;  %v2108_v7 = vmul.f32 %v4855_v4, %v2092_v50 }
 0xc47   :  { %v2107_v8 = vmul.f32 %v4857_v6, %v2091_v51 }
 0xc48   :  { %v2116_v10 = vmul.f32 %v4203_v5, %v2108_v7 }
 0xc49   :  { %v2115_v11 = vmul.f32 %v4203_v5, %v2107_v8 }
 0xc4a   :  { %v5849_v14 = vadd.f32 %v4204_v9, %v2116_v10 }
 0xc4b   :  { %v5847_v12 = vadd.f32 %v4204_v9, %v2115_v11 }
 0xc4d   :  { %4539 = vmatprep.mubr.msk.f32.mxu1 %vm238_vm0, %v5847_v12 }
 0xc4e   :  { %4540 = vmatmul.mubr.msk.f32.vlgmr.msra.gmra.mrb[20].mxu1 %vm238_vm0, %v5849_v14 }
 0xc4f   :  { %4544 = vmatprep.mubr.msk.f32.mxu1 %vm5246_vm1, %v5245_v36 }
 0xd21   :  { %v4541_v16 = vpop.f32.mrb[20].mxu1 }
 0xd22   :  { %v2210_v17 = vpop.f32.mrb[21].mxu1  ;;  %v5871_v19 = vadd.f32 %v4541_v16, %v4209_v15 }
 0xd23   :  { %v5857_v18 = vadd.f32 %v4209_v15, %v2210_v17 }
 0xd25   :  { %2385 = vrot.lane.b32.xlu1 %v5857_v18, %s5247_s15  ;;  %2220 = vrot.lane.b32.xlu0 %v5857_v18, %s5248_s7 }
 0xd29   :  { %2383 = vrot.lane.b32.xlu1 %v5857_v18, %s5249_s26  ;;  %2548 = vrot.lane.b32.xlu0 %v5857_v18, %s5250_s4 }
 0xd2d   :  { %2550 = vrot.lane.b32.xlu1 %v5857_v18, %s5251_s13  ;;  %2713 = vrot.lane.b32.xlu0 %v5857_v18, %s5252_s8 }
 0xd31   :  { %2715 = vrot.lane.b32.xlu1 %v5857_v18, %s5253_s30  ;;  %3059 = vrot.lane.b32.xlu0 %v5871_v19, %s5247_s15 }
 0xd35   :  { %2894 = vrot.lane.b32.xlu1 %v5871_v19, %s5248_s7  ;;  %3224 = vrot.lane.b32.xlu0 %v5871_v19, %s5251_s13 }
 0xd39   :  { %3057 = vrot.lane.b32.xlu1 %v5871_v19, %s5249_s26  ;;  %3389 = vrot.lane.b32.xlu0 %v5871_v19, %s5253_s30 }
 0xd3d   :  { %3222 = vrot.lane.b32.xlu1 %v5871_v19, %s5250_s4 }
 0xd41   :  { %3387 = vrot.lane.b32.xlu1 %v5871_v19, %s5252_s8 }
 0xd97   :  { %v2386_v20 = vpop.permute.xlu1 %2385  ;;  %v2221_v21 = vpop.permute.xlu0 %2220 }
 0xd98   :  { %4543 = vmatpush3.xpose.msk.msra.mxu1 %vm382_vm2, %v2221_v21  ;;  %4553 = vmatpush3.xpose.msk.msra.mxu0 %vm382_vm2, %v2386_v20 }
 0xd99   :  { %4562 = vmatprep.subr.mxu0 %v5245_v36  ;;  %4547 = vmatprep.subr.mxu1 %v5245_v36 }
 0xd9b   :  { %v2384_v22 = vpop.permute.xlu1 %2383  ;;  %4545 = vmatmul.mubr.msk.f32.vlgmr.msra.gmra.mrb[22].mxu1 %vm382_vm2, %v5857_v18  ;;  %v2549_v23 = vpop.permute.xlu0 %2548 }
 0xd9c   :  { %4555 = vmatmul.mubr.msk.f32.vlgmr.msra.gmra.mrb[20].mxu0 %vm382_vm2, %v2384_v22  ;;  %4549 = vmatprep.mubr.msk.f32.mxu1 %vm5246_vm1, %v5245_v36 }
 0xd9d   :  { %4564 = vmatprep.mubr.msk.f32.mxu0 %vm5246_vm1, %v5245_v36 }
 0xd9f   :  { %v2551_v41 = vpop.permute.xlu1 %2550  ;;  %v2714_v24 = vpop.permute.xlu0 %2713 }
 0xda0   :  { %4563 = vmatpush3.xpose.msk.msra.mxu0 %vm382_vm2, %v2551_v41 }
 0xda1   :  { %4572 = vmatprep.subr.mxu0 %v5245_v36 }
 0xda3   :  { %v2716_v25 = vpop.permute.xlu1 %2715  ;;  %4565 = vmatmul.mubr.msk.f32.vlgmr.msra.gmra.mrb[22].mxu0 %vm382_vm2, %v2549_v23  ;;  %v3060_v26 = vpop.permute.xlu0 %3059 }
 0xda4   :  { %4573 = vmatpush3.xpose.msk.msra.mxu0 %vm382_vm2, %v2716_v25  ;;  %4574 = vmatprep.mubr.msk.f32.mxu0 %vm5246_vm1, %v5245_v36 }
 0xda5   :  { %4582 = vmatprep.subr.mxu0 %v5245_v36 }
 0xda7   :  { %v2895_v27 = vpop.permute.xlu1 %2894  ;;  %4575 = vmatmul.mubr.msk.f32.vlgmr.msra.gmra.mrb[24].mxu0 %vm382_vm2, %v2714_v24  ;;  %v3225_v29 = vpop.permute.xlu0 %3224 }
 0xda8   :  { %4583 = vmatpush3.xpose.msk.msra.mxu0 %vm382_vm2, %v2895_v27  ;;  %4584 = vmatprep.mubr.msk.f32.mxu0 %vm5246_vm1, %v5245_v36 }
 0xda9   :  { %4592 = vmatprep.subr.mxu0 %v5245_v36 }
 0xdab   :  { %v3058_v28 = vpop.permute.xlu1 %3057  ;;  %4585 = vmatmul.mubr.msk.f32.vlgmr.msra.gmra.mrb[26].mxu0 %vm382_vm2, %v5871_v19  ;;  %v3390_v31 = vpop.permute.xlu0 %3389 }
 0xdac   :  { %4593 = vmatpush3.xpose.msk.msra.mxu0 %vm382_vm2, %v3060_v26  ;;  %4594 = vmatprep.mubr.msk.f32.mxu0 %vm5246_vm1, %v5245_v36 }
 0xdad   :  { %4602 = vmatprep.subr.mxu0 %v5245_v36 }
 0xdaf   :  { %4595 = vmatmul.mubr.msk.f32.vlgmr.msra.gmra.mrb[28].mxu0 %vm382_vm2, %v3058_v28  ;;  %v3223_v30 = vpop.permute.xlu1 %3222 }
 0xdb0   :  { %4603 = vmatpush3.xpose.msk.msra.mxu0 %vm382_vm2, %v3225_v29  ;;  %4604 = vmatprep.mubr.msk.f32.mxu0 %vm5246_vm1, %v5245_v36 }
 0xdb1   :  { %4612 = vmatprep.subr.mxu0 %v5245_v36 }
 0xdb3   :  { %4605 = vmatmul.mubr.msk.f32.vlgmr.msra.gmra.mrb[30].mxu0 %vm382_vm2, %v3223_v30  ;;  %v3388_v32 = vpop.permute.xlu1 %3387 }
 0xdb4   :  { %4613 = vmatpush3.xpose.msk.msra.mxu0 %vm382_vm2, %v3390_v31  ;;  %4614 = vmatprep.mubr.msk.f32.mxu0 %vm5246_vm1, %v5245_v36 }
 0xdb7   :  { %4615 = vmatmul.mubr.msk.f32.vlgmr.msra.gmra.mrb[32].mxu0 %vm382_vm2, %v3388_v32 }
 0xe6e   :  { %v2292_v34 = vpop.f32.mrb[22].mxu1 }
 0xe6f   :  { %v2293_v37 = vadd.f32 %v2292_v34, %v5662_v60  ;;  %v4546_v38 = vpop.f32.mrb[23].mxu1  ;;  %v2457_v39 = vpop.f32.mrb[20].mxu0 }
 0xe70   :  { %v2458_v35 = vadd.f32 %v2457_v39, %v5662_v60  ;;  %v4556_v33 = vpop.f32.mrb[21].mxu0 }
 0xe71   :  { %v2296_v42 = vsel %vm382_vm2, %v2293_v37, -inf }
 0xe72   :  { %2297 = vmax.xlane.f32.xlu0 %v2296_v42  ;;  %v2461_v43 = vsel %vm382_vm2, %v2458_v35, -inf }
 0xe73   :  { %2462 = vmax.xlane.f32.xlu1 %v2461_v43 }
 0xe76   :  { %v2622_v44 = vpop.f32.mrb[22].mxu0 }
 0xe77   :  { %v5933_v45 = vadd.f32 %v2622_v44, %v5662_v60  ;;  %v4566_v46 = vpop.f32.mrb[23].mxu0 }
 0xe79   :  { %v2626_v47 = vsel %vm382_vm2, %v5933_v45, -inf }
 0xe7a   :  { %2627 = vmax.xlane.f32.xlu0 %v2626_v47  ;;  %v2787_v48 = vpop.f32.mrb[24].mxu0 }
 0xe7b   :  { %v2788_v49 = vadd.f32 %v2787_v48, %v5662_v60  ;;  %v4576_v50 = vpop.f32.mrb[25].mxu0 }
 0xe7d   :  { %v2791_v51 = vsel %vm382_vm2, %v2788_v49, -inf }
 0xe7e   :  { %2792 = vmax.xlane.f32.xlu0 %v2791_v51  ;;  %v2966_v52 = vpop.f32.mrb[26].mxu0 }
 0xe7f   :  { %v2967_v53 = vadd.f32 %v2966_v52, %v5674_v13  ;;  %v4586_v54 = vpop.f32.mrb[27].mxu0 }
 0xe81   :  { %v2970_v55 = vsel %vm382_vm2, %v2967_v53, -inf }
 0xe82   :  { %2971 = vmax.xlane.f32.xlu0 %v2970_v55  ;;  %v3131_v56 = vpop.f32.mrb[28].mxu0 }
 0xe83   :  { %v3132_v57 = vadd.f32 %v3131_v56, %v5674_v13  ;;  %v4596_v58 = vpop.f32.mrb[29].mxu0 }
 0xe85   :  { %v3135_v59 = vsel %vm382_vm2, %v3132_v57, -inf }
 0xe86   :  { %3136 = vmax.xlane.f32.xlu1 %v3135_v59  ;;  %v3296_v61 = vpop.f32.mrb[30].mxu0 }
 0xe87   :  { %v3297_v60 = vadd.f32 %v3296_v61, %v5674_v13  ;;  %v4606_v62 = vpop.f32.mrb[31].mxu0 }
 0xe89   :  { %v3300_v63 = vsel %vm382_vm2, %v3297_v60, -inf }
 0xe8a   :  { %3301 = vmax.xlane.f32.xlu0 %v3300_v63  ;;  %v3461_v0 = vpop.f32.mrb[32].mxu0 }
 0xe8b   :  { %v4616_v1 = vpop.f32.mrb[33].mxu0  ;;  %v3462_v40 = vadd.f32 %v3461_v0, %v5674_v13 }
 0xe8d   :  { %v3465_v2 = vsel %vm382_vm2, %v3462_v40, -inf }
 0xe97   :  { %2307 = vrot.lane.b32.xlu1 %v5857_v18, %s5254_s2 }
 0xebb   :  { %3466 = vmax.xlane.f32.xlu1 %v3465_v2 }
 0xecc   :  { %2637 = vrot.lane.b32.xlu1 %v5857_v18, %s5255_s23 }
 0xed0   :  { %2802 = vrot.lane.b32.xlu1 %v5857_v18, %s5256_s5 }
 0xed4   :  { %2981 = vrot.lane.b32.xlu1 %v5871_v19, %s5254_s2 }
 0xeff   :  { %v2298_v3 = vpop.xlane.xlu0 %2297 }
 0xf00   :  { %v2299_v4 = vsub.f32 %v2293_v37, %v2298_v3  ;;  %v2463_v5 = vpop.xlane.xlu1 %2462 }
 0xf01   :  { %v2464_v6 = vsub.f32 %v2458_v35, %v2463_v5 }
 0xf02   :  { %v2300_v7 = vmul.f32 1.442695, %v2299_v4 }
 0xf03   :  { %v2465_v8 = vmul.f32 1.442695, %v2464_v6 }
 0xf04   :  { %4858 = vpow2.f32 %v2300_v7 }
 0xf05   :  { %4860 = vpow2.f32 %v2465_v8 }
 0xf07   :  { %v2628_v13 = vpop.xlane.xlu0 %2627 }
 0xf08   :  { %v2629_v24 = vsub.f32 %v5933_v45, %v2628_v13 }
 0xf0a   :  { %v2630_v26 = vmul.f32 1.442695, %v2629_v24 }
 0xf0b   :  { %v2793_v9 = vpop.xlane.xlu0 %2792 }
 0xf0c   :  { %v2794_v10 = vsub.f32 %v2788_v49, %v2793_v9 }
 0xf0e   :  { %v4859_v11 = vpop.eup %4858  ;;  %v2795_v15 = vmul.f32 1.442695, %v2794_v10 }
 0xf0f   :  { %v5955_v16 = vpop.eup %4860  ;;  %v2302_v17 = vsel %vm382_vm2, %v4859_v11, 0.0  ;;  %v2972_v25 = vpop.xlane.xlu0 %2971 }
 0xf10   :  { %4862 = vpow2.f32 %v2795_v15  ;;  %2303 = vadd.xlane.f32.xlu0 %v2302_v17  ;;  %v2467_v20 = vsel %vm382_vm2, %v5955_v16, 0.0  ;;  %v2973_v27 = vsub.f32 %v2967_v53, %v2972_v25 }
 0xf11   :  { %2468 = vadd.xlane.f32.xlu1 %v2467_v20  ;;  %4864 = vpow2.f32 %v2630_v26  ;;  %v4238_v26 = vld [vmem:[%s6144_s6 + $0x30] sm:$0xff] }
 0xf12   :  { %v2974_v29 = vmul.f32 1.442695, %v2973_v27  ;;  %v4239_v27 = vld [vmem:[%s6144_s6 + $0x38] sm:$0xff] }
 0xf13   :  { %v3137_v21 = vpop.xlane.xlu1 %3136 }
 0xf14   :  { %4866 = vpow2.f32 %v2974_v29  ;;  %v3138_v31 = vsub.f32 %v3132_v57, %v3137_v21  ;;  %v4737_v29 = vpack.c.bf16 %v4239_v27, %v4238_v26 }
 0xf16   :  { %v3139_v34 = vmul.f32 1.442695, %v3138_v31 }
 0xf17   :  { %v2308_v22 = vpop.permute.xlu1 %2307  ;;  %v3302_v28 = vpop.xlane.xlu0 %3301 }
 0xf18   :  { %4548 = vmatpush3.msra.mxu1 %v2308_v22  ;;  %v3303_v30 = vsub.f32 %v3297_v60, %v3302_v28  ;;  %v4236_v22 = vld [vmem:[%s6144_s6 + $0x20] sm:$0xff] }
 0xf19   :  { %4557 = vmatprep.subr.mxu1 %v5245_v36 }
 0xf1a   :  { %v5961_v23 = vpop.eup %4862  ;;  %v3304_v32 = vmul.f32 1.442695, %v3303_v30 }
 0xf1b   :  { %v2797_v41 = vsel %vm382_vm2, %v5961_v23, 0.0  ;;  %v4865_v37 = vpop.eup %4864 }
 0xf1c   :  { %2798 = vadd.xlane.f32.xlu1 %v2797_v41  ;;  %4868 = vpow2.f32 %v3304_v32 }
 0xf1d   :  { %4870 = vpow2.f32 %v3139_v34 }
 0xf1e   :  { %v4867_v38 = vpop.eup %4866 }
 0xf1f   :  { %v2976_v35 = vsel %vm382_vm2, %v4867_v38, 0.0 }
 0xf26   :  { %2472 = vrot.lane.b32.xlu0 %v5857_v18, %s5257_s9  ;;  %v2632_v18 = vsel %vm382_vm2, %v4865_v37, 0.0  ;;  %v5972_v33 = vpop.eup %4868 }
 0xf27   :  { %v3306_v44 = vsel %vm382_vm2, %v5972_v33, 0.0  ;;  %v4871_v45 = vpop.eup %4870 }
 0xf28   :  { %v3141_v46 = vsel %vm382_vm2, %v4871_v45, 0.0 }
 0xf2d   :  { %3146 = vrot.lane.b32.xlu1 %v5871_v19, %s5257_s9 }
 0xf45   :  { %2633 = vadd.xlane.f32.xlu0 %v2632_v18 }
 0xf48   :  { %v3467_v39 = vpop.xlane.xlu1 %3466 }
 0xf49   :  { %v3468_v42 = vsub.f32 %v3462_v40, %v3467_v39  ;;  %2977 = vadd.xlane.f32.xlu0 %v2976_v35 }
 0xf4b   :  { %v3469_v43 = vmul.f32 1.442695, %v3468_v42 }
 0xf4c   :  { %v2638_v49 = vpop.permute.xlu1 %2637 }
 0xf4d   :  { %4872 = vpow2.f32 %v3469_v43  ;;  %3307 = vadd.xlane.f32.xlu0 %v3306_v44 }
 0xf50   :  { %v2803_v50 = vpop.permute.xlu1 %2802 }
 0xf51   :  { %3142 = vadd.xlane.f32.xlu1 %v3141_v46 }
 0xf54   :  { %v2982_v51 = vpop.permute.xlu1 %2981 }
 0xf57   :  { %v5977_v47 = vpop.eup %4872 }
 0xf58   :  { %v3471_v48 = vsel %vm382_vm2, %v5977_v47, 0.0 }
 0xf59   :  { %3472 = vadd.xlane.f32.xlu0 %v3471_v48 }
 0xf62   :  { %3476 = vrot.lane.b32.xlu1 %v5871_v19, %s5256_s5 }
 0xf6f   :  { %3311 = vrot.lane.b32.xlu0 %v5871_v19, %s5255_s23 }
 0xf9d   :  { %v2304_v52 = vpop.xlane.xlu0 %2303 }
 0xf9e   :  { %4874 = vrcp.f32 %v2304_v52  ;;  %v2469_v53 = vpop.xlane.xlu1 %2468 }
 0xf9f   :  { %4876 = vrcp.f32 %v2469_v53  ;;  %v4240_v53 = vld [vmem:[#allocation11 + $0x1] ss:$0 sm:$0xff] }
 0xfa1   :  { %v2473_v57 = vpop.permute.xlu0 %2472 }
 0xfa8   :  { %v4875_v54 = vpop.eup %4874 }
 0xfa9   :  { %v2306_v55 = vmul.f32 %v4875_v54, %v4859_v11  ;;  %v4877_v56 = vpop.eup %4876  ;;  %v2799_v19 = vpop.xlane.xlu1 %2798 }
 0xfaa   :  { %v2471_v58 = vmul.f32 %v4877_v56, %v5955_v16 }
 0xfab   :  { %4550 = vmatmul.mubr.msk.f32.vlgmr.msra.gmra.mrb[24].mxu1 %vm382_vm2, %v2306_v55 }
 0xfac   :  { %4558 = vmatpush3.msra.mxu1 %v2473_v57  ;;  %4559 = vmatprep.mubr.msk.f32.mxu1 %vm5246_vm1, %v5245_v36 }
 0xfad   :  { %4567 = vmatprep.subr.mxu1 %v5245_v36  ;;  %v3147_v60 = vpop.permute.xlu1 %3146 }
 0xfaf   :  { %4560 = vmatmul.mubr.msk.f32.vlgmr.msra.gmra.mrb[26].mxu1 %vm382_vm2, %v2471_v58 }
 0xfb0   :  { %4568 = vmatpush3.msra.mxu1 %v2638_v49  ;;  %4569 = vmatprep.mubr.msk.f32.mxu1 %vm5246_vm1, %v5245_v36 }
 0xfb1   :  { %4577 = vmatprep.subr.mxu1 %v5245_v36 }
 0xfd2   :  { %v2634_v59 = vpop.xlane.xlu0 %2633 }
 0xfd3   :  { %4878 = vrcp.f32 %v2634_v59 }
 0xfd4   :  { %4880 = vrcp.f32 %v2799_v19 }
 0xfd6   :  { %v2978_v61 = vpop.xlane.xlu0 %2977 }
 0xfd7   :  { %4882 = vrcp.f32 %v2978_v61 }
 0xfda   :  { %v3308_v0 = vpop.xlane.xlu0 %3307 }
 0xfdd   :  { %v4879_v62 = vpop.eup %4878 }
 0xfde   :  { %v2636_v63 = vmul.f32 %v4879_v62, %v4865_v37  ;;  %v3143_v1 = vpop.xlane.xlu1 %3142  ;;  %v4881_v40 = vpop.eup %4880 }
 0xfdf   :  { %4884 = vrcp.f32 %v3143_v1  ;;  %v2801_v2 = vmul.f32 %v4881_v40, %v5961_v23  ;;  %v4237_v23 = vld [vmem:[%s6144_s6 + $0x28] sm:$0xff] }
 0xfe0   :  { %4570 = vmatmul.mubr.msk.f32.vlgmr.msra.gmra.mrb[28].mxu1 %vm382_vm2, %v2636_v63  ;;  %4886 = vrcp.f32 %v3308_v0  ;;  %v4733_v24 = vpack.c.bf16 %v4237_v23, %v4236_v22  ;;  %v4244_v23 = vld [vmem:[#allocation14 + $0x1] ss:$0 sm:$0xff] }
 0xfe1   :  { %4578 = vmatpush3.msra.mxu1 %v2803_v50  ;;  %4579 = vmatprep.mubr.msk.f32.mxu1 %vm5246_vm1, %v5245_v36  ;;  %v4883_v3 = vpop.eup %4882 }
 0xfe2   :  { %4587 = vmatprep.subr.mxu1 %v5245_v36  ;;  %v2980_v4 = vmul.f32 %v4883_v3, %v4867_v38  ;;  %v3477_v10 = vpop.permute.xlu1 %3476  ;;  %4734 = vmatprep.subr.bf16.mxu0 %v4733_v24 }
 0xfe3   :  { %4736 = vmatpush3.bf16.msra.mxu0 %v4733_v24 }
 0xfe4   :  { %4580 = vmatmul.mubr.msk.f32.vlgmr.msra.gmra.mrb[30].mxu1 %vm382_vm2, %v2801_v2  ;;  %4738 = vmatprep.subr.bf16.mxu0 %v4737_v29 }
 0xfe5   :  { %4588 = vmatpush3.msra.mxu1 %v2982_v51  ;;  %4589 = vmatprep.mubr.msk.f32.mxu1 %vm5246_vm1, %v5245_v36 }
 0xfe6   :  { %v3473_v5 = vpop.xlane.xlu0 %3472  ;;  %4597 = vmatprep.subr.mxu1 %v5245_v36 }
 0xfe7   :  { %4888 = vrcp.f32 %v3473_v5  ;;  %4740 = vmatpush3.bf16.msra.mxu0 %v4737_v29  ;;  %v4246_v5 = vld [vmem:[%s6148_s10 + $0x28] sm:$0xff]  ;;  %v4252_v29 = vld [vmem:[%s6150_s12 + $0x40] sm:$0xff] }
 0xfe8   :  { %4590 = vmatmul.mubr.msk.f32.vlgmr.msra.gmra.mrb[32].mxu1 %vm382_vm2, %v2980_v4 }
 0xfe9   :  { %v4885_v6 = vpop.eup %4884  ;;  %4598 = vmatpush3.msra.mxu1 %v3147_v60  ;;  %4599 = vmatprep.mubr.msk.f32.mxu1 %vm5246_vm1, %v5245_v36 }
 0xfea   :  { %v3145_v7 = vmul.f32 %v4885_v6, %v4871_v45  ;;  %v3312_v8 = vpop.permute.xlu0 %3311  ;;  %4607 = vmatprep.subr.mxu1 %v5245_v36  ;;  %v4887_v13 = vpop.eup %4886 }
 0xfeb   :  { %v3310_v9 = vmul.f32 %v4887_v13, %v5972_v33 }
 0xfec   :  { %4600 = vmatmul.mubr.msk.f32.vlgmr.msra.gmra.mrb[34].mxu1 %vm382_vm2, %v3145_v7  ;;  %v4247_v7 = vld [vmem:[%s6148_s10 + $0x30] sm:$0xff] }
 0xfed   :  { %4608 = vmatpush3.msra.mxu1 %v3312_v8  ;;  %4609 = vmatprep.mubr.msk.f32.mxu1 %vm5246_vm1, %v5245_v36  ;;  %v4248_v8 = vld [vmem:[%s6148_s10 + $0x38] sm:$0xff] }
 0xfee   :  { %4617 = vmatprep.subr.mxu1 %v5245_v36  ;;  %v4745_v13 = vpack.c.bf16 %v4248_v8, %v4247_v7 }
 0xff0   :  { %4610 = vmatmul.mubr.msk.f32.vlgmr.msra.gmra.mrb[36].mxu1 %vm382_vm2, %v3310_v9 }
 0xff1   :  { %v4889_v11 = vpop.eup %4888  ;;  %4618 = vmatpush3.msra.mxu1 %v3477_v10  ;;  %4619 = vmatprep.mubr.msk.f32.mxu1 %vm5246_vm1, %v5245_v36 }
 0xff2   :  { %v3475_v15 = vmul.f32 %v4889_v11, %v5977_v47 }
 0xff4   :  { %4620 = vmatmul.mubr.msk.f32.vlgmr.msra.gmra.mrb[38].mxu1 %vm382_vm2, %v3475_v15 }
0x107e   :  { %v2379_v16 = vpop.f32.mrb[24].mxu1 }
0x107f   :  { %v4551_v17 = vpop.f32.mrb[25].mxu1 }
0x1082   :  { %v2544_v20 = vpop.f32.mrb[26].mxu1 }
0x1083   :  { %2879 = vrot.lane.b32.xlu0 %v2544_v20, %s5238_s1  ;;  %v4561_v21 = vpop.f32.mrb[27].mxu1 }
0x1084   :  { %v4243_v21 = vld [vmem:[#allocation13 + $0x1] ss:$0 sm:$0xff] }
0x10b3   :  { %v2709_v41 = vpop.f32.mrb[28].mxu1 }
0x10b4   :  { %2883 = vrot.lane.b32.xlu1 %v2709_v41, %s6175_s3  ;;  %v4571_v25 = vpop.f32.mrb[29].mxu1 }
0x10b7   :  { %v2874_v28 = vpop.f32.mrb[30].mxu1 }
0x10b8   :  { %2887 = vrot.lane.b32.xlu1 %v2874_v28, %s5258_s28  ;;  %v4581_v30 = vpop.f32.mrb[31].mxu1 }
0x10b9   :  { %v4253_v30 = vld [vmem:[%s6150_s12 + $0x48] sm:$0xff] }
0x10bb   :  { %v3053_v31 = vpop.f32.mrb[32].mxu1 }
0x10bc   :  { %v4591_v32 = vpop.f32.mrb[33].mxu1 }
0x10bd   :  { %v4254_v32 = vld [vmem:[%s6150_s12 + $0x50] sm:$0xff] }
0x10bf   :  { %v3218_v34 = vpop.f32.mrb[34].mxu1 }
0x10c0   :  { %3553 = vrot.lane.b32.xlu0 %v3218_v34, %s5238_s1  ;;  %v4601_v37 = vpop.f32.mrb[35].mxu1  ;;  %v4255_v34 = vld [vmem:[%s6150_s12 + $0x58] sm:$0xff] }
0x10c1   :  { %v4753_v37 = vpack.c.bf16 %v4255_v34, %v4254_v32 }
0x10c3   :  { %v3383_v18 = vpop.f32.mrb[36].mxu1 }
0x10c4   :  { %3557 = vrot.lane.b32.xlu0 %v3383_v18, %s6175_s3  ;;  %v4611_v38 = vpop.f32.mrb[37].mxu1  ;;  %v4256_v18 = vld [vmem:[%s6150_s12 + $0x60] sm:$0xff] }
0x10c5   :  { %v4257_v38 = vld [vmem:[%s6150_s12 + $0x68] sm:$0xff] }
0x10c7   :  { %v3548_v39 = vpop.f32.mrb[38].mxu1 }
0x10c8   :  { %3561 = vrot.lane.b32.xlu1 %v3548_v39, %s5258_s28  ;;  %v4621_v35 = vpop.f32.mrb[39].mxu1  ;;  %v4757_v39 = vpack.c.bf16 %v4257_v38, %v4256_v18 }
0x10c9   :  { %v4258_v35 = vld [vmem:[%s6150_s12 + $0x70] sm:$0xff] }
0x10f5   :  { %v2880_v33 = vpop.permute.xlu0 %2879 }
0x10f6   :  { %v2890_v43 = vsel %vm382_vm2, %v2379_v16, %v2880_v33  ;;  %v4259_v33 = vld [vmem:[%s6150_s12 + $0x78] sm:$0xff] }
0x1126   :  { %v2884_v42 = vpop.permute.xlu1 %2883 }
0x1127   :  { %v2891_v44 = vsel %vm1052_vm3, %v2890_v43, %v2884_v42  ;;  %v4761_v42 = vpack.c.bf16 %v4259_v33, %v4258_v35  ;;  %v4249_v43 = vld [vmem:[#allocation16 + $0x1] ss:$0 sm:$0xff]  ;;  %v4264_v35 = vld [vmem:[#allocation20 + $0x1] ss:$0 sm:$0xff] }
0x112a   :  { %v2888_v45 = vpop.permute.xlu1 %2887 }
0x112b   :  { %v2892_v46 = vsel %vm1054_vm4, %v2891_v44, %v2888_v45 }
0x112c   :  { %4630 = vmatprep.mubr.msk.f32.mxu0 %vm238_vm0, %v2892_v46 }
0x1132   :  { %v3554_v47 = vpop.permute.xlu0 %3553 }
0x1133   :  { %v3564_v49 = vsel %vm382_vm2, %v3053_v31, %v3554_v47  ;;  %v4749_v31 = vpack.c.bf16 %v4253_v30, %v4252_v29 }
0x1135   :  { %4750 = vmatprep.subr.bf16.mxu0 %v4749_v31 }
0x1136   :  { %v3558_v48 = vpop.permute.xlu0 %3557 }
0x1137   :  { %v3565_v50 = vsel %vm1052_vm3, %v3564_v49, %v3558_v48 }
0x113a   :  { %v3562_v51 = vpop.permute.xlu1 %3561 }
0x113b   :  { %v3566_v52 = vsel %vm1054_vm4, %v3565_v50, %v3562_v51 }
0x113c   :  { %4631 = vmatmul.mubr.msk.f32.vlgmr.msra.gmra.mrb[34].mxu0 %vm238_vm0, %v3566_v52 }
0x113d   :  { %4752 = vmatpush3.bf16.msra.mxu0 %v4749_v31 }
0x113e   :  { %4754 = vmatprep.subr.bf16.mxu0 %v4753_v37 }
0x1141   :  { %4756 = vmatpush3.bf16.msra.mxu0 %v4753_v37  ;;  %v4263_v37 = vld [vmem:[#allocation19 + $0x1] ss:$0 sm:$0xff] }
0x1142   :  { %4758 = vmatprep.subr.bf16.mxu0 %v4757_v39 }
0x1145   :  { %4760 = vmatpush3.bf16.msra.mxu0 %v4757_v39 }
0x1146   :  { %4762 = vmatprep.subr.bf16.mxu0 %v4761_v42 }
0x1149   :  { %4764 = vmatpush3.bf16.msra.mxu0 %v4761_v42 }
0x120f   :  { %v4632_v54 = vpop.f32.mrb[34].mxu0 }
0x1210   :  { %v3658_v55 = vadd.f32 %v4632_v54, %v4240_v53  ;;  %v3652_v56 = vpop.f32.mrb[35].mxu0 }
0x1211   :  { %v3653_v57 = vadd.f32 %v4240_v53, %v3652_v56 }
0x1212   :  { %v3662_v58 = vadd.f32 %v3658_v55, %v5849_v14 }
0x1213   :  { %v3661_v19 = vadd.f32 %v3653_v57, %v5847_v12  ;;  %v4245_v12 = vld [vmem:[%s6148_s10 + $0x20] sm:$0xff] }
0x1214   :  { %v3670_v59 = vsel %vm238_vm0, %v3662_v58, 0.0  ;;  %v4741_v6 = vpack.c.bf16 %v4246_v5, %v4245_v12 }
0x1215   :  { %3671 = vadd.xlane.f32.xlu1 %v3670_v59  ;;  %v3667_v61 = vsel %vm238_vm0, %v3661_v19, 0.0 }
0x1216   :  { %3668 = vadd.xlane.f32.xlu0 %v3667_v61  ;;  %4742 = vmatprep.subr.bf16.mxu1 %v4741_v6 }
0x1217   :  { %4744 = vmatpush3.bf16.msra.mxu1 %v4741_v6 }
0x1218   :  { %4746 = vmatprep.subr.bf16.mxu1 %v4745_v13 }
0x121b   :  { %4748 = vmatpush3.bf16.msra.mxu1 %v4745_v13 }
0x12a2   :  { %v3672_v60 = vpop.xlane.xlu1 %3671 }
0x12a3   :  { %v3674_v62 = vmul.f32 0.03125, %v3672_v60  ;;  %v3669_v63 = vpop.xlane.xlu0 %3668 }
0x12a4   :  { %v3673_v0 = vmul.f32 0.03125, %v3669_v63 }
0x12a5   :  { %v3676_v1 = vsub.f32 %v3662_v58, %v3674_v62 }
0x12a6   :  { %v3675_v40 = vsub.f32 %v3661_v19, %v3673_v0 }
0x12a7   :  { %v3678_v4 = vmul.f32 %v3676_v1, %v3676_v1 }
0x12a8   :  { %v3677_v2 = vmul.f32 %v3675_v40, %v3675_v40 }
0x12a9   :  { %v3682_v14 = vsel %vm238_vm0, %v3678_v4, 0.0 }
0x12aa   :  { %v3679_v3 = vsel %vm238_vm0, %v3677_v2, 0.0 }
0x12ab   :  { %3680 = vadd.xlane.f32.xlu0 %v3679_v3 }
0x12af   :  { %3683 = vadd.xlane.f32.xlu0 %v3682_v14 }
0x1338   :  { %v3681_v9 = vpop.xlane.xlu0 %3680 }
0x1339   :  { %v3685_v10 = vmul.f32 0.03125, %v3681_v9 }
0x133b   :  { %v3687_v11 = vadd.f32 1e-12, %v3685_v10 }
0x133c   :  { %v3684_v15 = vpop.xlane.xlu0 %3683 }
0x133d   :  { %4890 = vrsqrt.f32 %v3687_v11  ;;  %v3686_v16 = vmul.f32 0.03125, %v3684_v15 }
0x133f   :  { %v3688_v17 = vadd.f32 1e-12, %v3686_v16 }
0x1341   :  { %4892 = vrsqrt.f32 %v3688_v17 }
0x1347   :  { %v4891_v20 = vpop.eup %4890 }
0x1348   :  { %v3691_v22 = vmul.f32 %v4891_v20, %v3675_v40 }
0x134a   :  { %v3699_v41 = vmul.f32 %v4243_v21, %v3691_v22  ;;  %v3973_v22 = vld [vmem:[%s6154_s16 + $0x8] sm:$0xff] }
0x134b   :  { %v4893_v24 = vpop.eup %4892 }
0x134c   :  { %v3692_v25 = vmul.f32 %v4893_v24, %v3676_v1  ;;  %v3707_v26 = vadd.f32 %v4244_v23, %v3699_v41  ;;  %v4260_v1 = vld [vmem:[#allocation17 + $0x1] ss:$0 sm:$0xff]  ;;  %v3974_v41 = vld [vmem:[%s6154_s16 + $0x10] sm:$0xff]  ;;  %v3975_v24 = vld [vmem:[%s6154_s16 + $0x18] sm:$0xff] }
0x134e   :  { %v3700_v27 = vmul.f32 %v4243_v21, %v3692_v25  ;;  %4641 = vmatprep.mubr.msk.f32.mxu1 %vm238_vm0, %v3707_v26  ;;  %v3972_v21 = vld [vmem:[%s6154_s16] sm:$0xff]  ;;  %v5259_v25 = vmov 0.0|0.0  }
0x134f   :  { %4765 = vmatprep.subr.bf16.mxu1 %v5259_v25 }
0x1350   :  { %v3708_v28 = vadd.f32 %v4244_v23, %v3700_v27  ;;  %v4766_v23 = vpack.c.bf16 %v3973_v22, %v3972_v21 }
0x1352   :  { %4642 = vmatmul.mubr.msk.f32.vlgmr.msra.gmra.mrb[40].mxu1 %vm238_vm0, %v3708_v28 }
0x1353   :  { %4671 = vmatprep.mubr.msk.f32.mxu1 %vm5246_vm1, %v5245_v36  ;;  %4767 = vmatpush3.bf16.msra.mxu1 %v4766_v23 }
0x1354   :  { %4768 = vmatprep.subr.bf16.mxu1 %v5259_v25 }
0x1425   :  { %v4643_v44 = vpop.f32.mrb[40].mxu1 }
0x1426   :  { %v3800_v45 = vadd.f32 %v4643_v44, %v4249_v43  ;;  %v3794_v46 = vpop.f32.mrb[41].mxu1 }
0x1427   :  { %v3795_v47 = vadd.f32 %v4249_v43, %v3794_v46 }
0x1428   :  { %v3804_v48 = vmul.f32 %v3800_v45, %v3800_v45 }
0x1429   :  { %v3803_v49 = vmul.f32 %v3795_v47, %v3795_v47 }
0x142a   :  { %v3806_v50 = vmul.f32 %v3804_v48, %v3800_v45  ;;  %v4058_v48 = vld [vmem:[%s6156_s18 + $0x8] sm:$0xff] }
0x142b   :  { %v3805_v51 = vmul.f32 %v3803_v49, %v3795_v47  ;;  %v4059_v49 = vld [vmem:[%s6156_s18 + $0x10] sm:$0xff] }
0x142c   :  { %v3808_v52 = vmul.f32 0.044715, %v3806_v50 }
0x142d   :  { %v3807_v53 = vmul.f32 0.044715, %v3805_v51  ;;  %v4060_v51 = vld [vmem:[%s6156_s18 + $0x18] sm:$0xff] }
0x142e   :  { %v3810_v54 = vadd.f32 %v3808_v52, %v3800_v45  ;;  %v4775_v52 = vpack.c.bf16 %v4060_v51, %v4059_v49 }
0x142f   :  { %v3809_v55 = vadd.f32 %v3807_v53, %v3795_v47 }
0x1430   :  { %v3812_v56 = vmul.f32 0.7978846, %v3810_v54 }
0x1431   :  { %v3811_v57 = vmul.f32 0.7978846, %v3809_v55 }
0x1432   :  { %4894 = vtanh.f32 %v3812_v56 }
0x1433   :  { %4896 = vtanh.f32 %v3811_v57  ;;  %v4267_v57 = vld [vmem:[%s6157_s19] ss:$0 sm:$0xff] }
0x143c   :  { %v4895_v58 = vpop.eup %4894 }
0x143d   :  { %v4897_v19 = vpop.eup %4896  ;;  %v3816_v59 = vadd.f32 1.0, %v4895_v58 }
0x143e   :  { %v3815_v61 = vadd.f32 1.0, %v4897_v19 }
0x143f   :  { %v3818_v60 = vmul.f32 0.5, %v3816_v59 }
0x1440   :  { %v3817_v62 = vmul.f32 0.5, %v3815_v61 }
0x1441   :  { %v3820_v0 = vmul.f32 %v3818_v60, %v3800_v45 }
0x1442   :  { %v3819_v63 = vmul.f32 %v3817_v62, %v3795_v47  ;;  %v4057_v47 = vld [vmem:[%s6156_s18] sm:$0xff]  ;;  %s5190_s18 = scalar_lea.vmem %s4149_s22, 32 }
0x1443   :  { %v4772_v50 = vpack.c.bf16 %v4058_v48, %v4057_v47  ;;  %p5191_p6 = scmp.ne.s32.totalorder %s4149_s22, %s5190_s18  ;;  %p5196_p8 = scmp.lt.s32.totalorder %s5190_s18, %s5190_s18 }
0x1444   :  { %4660 = vmatprep.mubr.msk.f32.mxu0 %vm1997_vm5, %v3819_v63 }
0x1445   :  { %4661 = vmatmul.mubr.msk.f32.vlgmr.msra.gmra.mrb[36].mxu0 %vm1997_vm5, %v3820_v0  ;;  %p5197_p9 = por %p5196_p8, %p5195_p7 }
0x1447   :  { %p5198_p10 = pnand %p5197_p9, %p5191_p6 }
0x1518   :  { %v4662_v40 = vpop.f32.mrb[36].mxu0 }
0x1519   :  { %v3916_v2 = vadd.f32 %v4662_v40, %v4260_v1  ;;  %v3910_v3 = vpop.f32.mrb[37].mxu0 }
0x151a   :  { %v3911_v4 = vadd.f32 %v4260_v1, %v3910_v3 }
0x151b   :  { %v3920_v14 = vadd.f32 %v3916_v2, %v3708_v28 }
0x151c   :  { %v3919_v12 = vadd.f32 %v3911_v4, %v3707_v26  ;;  %v4769_v26 = vpack.c.bf16 %v3975_v24, %v3974_v41 }
0x151d   :  { %v3928_v5 = vsel %vm238_vm0, %v3920_v14, 0.0 }
0x151e   :  { %3929 = vadd.xlane.f32.xlu0 %v3928_v5  ;;  %v3925_v6 = vsel %vm238_vm0, %v3919_v12, 0.0  ;;  %4770 = vmatpush3.bf16.msra.mxu1 %v4769_v26 }
0x151f   :  { %3926 = vadd.xlane.f32.xlu1 %v3925_v6  ;;  %4771 = vmatprep.subr.bf16.mxu1 %v5259_v25 }
0x15ab   :  { %v3930_v7 = vpop.xlane.xlu0 %3929 }
0x15ac   :  { %v3932_v8 = vmul.f32 0.03125, %v3930_v7  ;;  %v3927_v13 = vpop.xlane.xlu1 %3926 }
0x15ad   :  { %v3931_v9 = vmul.f32 0.03125, %v3927_v13 }
0x15ae   :  { %v3934_v10 = vsub.f32 %v3920_v14, %v3932_v8 }
0x15af   :  { %v3933_v11 = vsub.f32 %v3919_v12, %v3931_v9 }
0x15b0   :  { %v3936_v15 = vmul.f32 %v3934_v10, %v3934_v10 }
0x15b1   :  { %v3935_v16 = vmul.f32 %v3933_v11, %v3933_v11 }
0x15b2   :  { %v3940_v17 = vsel %vm238_vm0, %v3936_v15, 0.0 }
0x15b3   :  { %3941 = vadd.xlane.f32.xlu0 %v3940_v17  ;;  %v3937_v20 = vsel %vm238_vm0, %v3935_v16, 0.0 }
0x15b4   :  { %3938 = vadd.xlane.f32.xlu1 %v3937_v20 }
0x1640   :  { %v3942_v27 = vpop.xlane.xlu0 %3941 }
0x1641   :  { %v3944_v28 = vmul.f32 0.03125, %v3942_v27  ;;  %v3939_v29 = vpop.xlane.xlu1 %3938 }
0x1642   :  { %v3943_v30 = vmul.f32 0.03125, %v3939_v29 }
0x1643   :  { %v3946_v31 = vadd.f32 1e-12, %v3944_v28 }
0x1644   :  { %v3945_v32 = vadd.f32 1e-12, %v3943_v30 }
0x1645   :  { %4898 = vrsqrt.f32 %v3946_v31 }
0x1646   :  { %4900 = vrsqrt.f32 %v3945_v32 }
0x164f   :  { %v4899_v34 = vpop.eup %4898 }
0x1650   :  { %v4901_v18 = vpop.eup %4900  ;;  %v3950_v38 = vmul.f32 %v4899_v34, %v3934_v10 }
0x1651   :  { %v3949_v39 = vmul.f32 %v4901_v18, %v3933_v11 }
0x1652   :  { %v3958_v33 = vmul.f32 %v4263_v37, %v3950_v38 }
0x1653   :  { %v3957_v42 = vmul.f32 %v4263_v37, %v3949_v39 }
0x1654   :  { %v3966_v43 = vadd.f32 %v4264_v35, %v3958_v33 }
0x1655   :  { %v3965_v44 = vadd.f32 %v4264_v35, %v3957_v42 }
0x1656   :  { %v3968_v45 = vrot.slane %v3966_v43, 7 }
0x1658   :  { %v3971_v46 = vsel %vm3970_vm6, %v3965_v44, %v3968_v45 }
0x1659   :  { %4672 = vmatmul.mubr.msk.f32.vlgmr.msra.gmra.mrb[42].mxu1 %vm238_vm0, %v3971_v46 }
0x165a   :  { %4682 = vmatprep.mubr.msk.f32.mxu1 %vm5246_vm1, %v5245_v36  ;;  %4773 = vmatpush3.bf16.msra.mxu1 %v4772_v50  ;;  %v4265_v36 = vld [vmem:[#allocation22] ss:$0 sm:$0xff] }
0x165b   :  { %4774 = vmatprep.subr.bf16.mxu1 %v5259_v25 }
0x165e   :  { %4776 = vmatpush3.bf16.msra.mxu1 %v4775_v52 }
0x172c   :  { %v4052_v53 = vpop.f32.mrb[42].mxu1 }
0x172d   :  { %v4053_v54 = vadd.f32 %v4265_v36, %v4052_v53  ;;  %v4673_v55 = vpop.f32.mrb[43].mxu1 }
0x172f   :  { %4902 = vtanh.f32 %v4053_v54 }
0x1739   :  { %v4903_v56 = vpop.eup %4902 }
0x173a   :  { %4683 = vmatmul.mubr.msk.f32.vlgmr.msra.gmra.mrb[44].mxu1 %vm238_vm0, %v4903_v56 }
0x180d   :  { %v4137_v58 = vpop.f32.mrb[44].mxu1 }
0x180e   :  { %v4138_v19 = vadd.f32 %v4267_v57, %v4137_v58  ;;  %v4684_v59 = vpop.f32.mrb[45].mxu1 }
0x1810   :  { %4141 = vst [vmem:[#allocation23] sm:$0x3] %v4138_v19 }
0x1811   :  { %5201 = shalt.err (!%p5198_p10)
}
0x1812   :  { %s5202_s21 = scalar_lea.hbm %s6158_s20, 32 }
0x1813   :  { %p5203_p11 = scmp.ne.s32.totalorder %s6158_s20, %s5202_s21  ;;  %p5206_p12 = scmp.lt.u32.totalorder %s5202_s21, %s6158_s20 }
0x1815   :  { %p5208_p13 = pnand %p5206_p12, %p5203_p11 }
0x1817   :  { %5211 = shalt.err (!%p5208_p13)
}
0x1818   :  { %4151 = dma.vmem_to_hbm [thread:$0]  %s4149_s22, 32, %s6158_s20, [#allocation4]  }
0x1819   :  { %5226 = dma.done.wait [#allocation4], 32  }
0x181a   :  { %5227 = vsyncadd [#allocation4], 4294967264 }
0x181b   :  { %4155 = vsyncpa [#allocation3], 1 }
0x181c   :  { %4156 = vsyncpa [#allocation6], 1 }
0x181d   :  { %4157 = vsyncpa [#allocation9], 1 }
0x181e   :  { %4158 = vsyncpa [#allocation12], 1 }
0x181f   :  { %4159 = vsyncpa [#allocation15], 1 }
0x1820   :  { %4160 = vsyncpa [#allocation18], 1 }
0x1821   :  { %4161 = vsyncpa [#allocation21], 1 }
0x1822   :  { %4162 = vsyncpa [#allocation4], 1 }

</bundles_post_ra>
